<compile_context>
chip_gen: v7x
topology: tpu7x:2x2x1
jax: 0.10.0
libtpu: 0.0.40
codegen_flags: <defaults>
</compile_context>

<pallas_src>
import functools

import jax
import jax.numpy as jnp
import numpy as np
from jax.experimental import pallas as pl
from jax.experimental.pallas import tpu as pltpu

OUT_PAD = 128  # lane-dense packed output width: [ features | logits | zero pad ]


# ---------------- fused Pallas kernel (one grid step == one x image) ----------------

def cnn_prompt_fused_kernel(xp_ref, pp_ref, cw_ref, cb_ref, hw_ref, hb_ref, out_ref, *, gamma):
    # xp_ref: (1, H+2, W+2, Cin)  zero-padded x image for this step (compute dtype)
    # pp_ref: (1, P+2, P+2, Cin)  zero-padded prompt image (constant block -> DMA'd once)
    # cw_ref: (9, Cin, Cout)      conv weights, tap-major (compute dtype)
    # cb_ref: (1, Cout)           conv bias (f32)
    # hw_ref: (Cout, OUT_PAD)     packed head [ I_Cout | fc_w | 0 ] (f32)
    # hb_ref: (1, OUT_PAD)        packed head bias [ 0 | fc_b | 0 ] (f32)
    # out_ref:(1, 1, OUT_PAD)     packed [ features | logits | 0 ] row (f32)
    cout = cw_ref.shape[2]

    def backbone_feat(img):
        # img: (Hs+2, Ws+2, Cin) padded image, already resident in VMEM.
        hs = img.shape[0] - 2
        ws = img.shape[1] - 2
        cin = img.shape[2]
        acc = jnp.zeros((hs * ws, cout), jnp.float32)
        # In-kernel im2col: 9 statically shifted taps -> 9 small MXU GEMMs, f32 accumulate.
        for t in range(9):
            dy, dx = t // 3, t % 3
            tap = img[dy:dy + hs, dx:dx + ws, :].reshape(hs * ws, cin)
            acc = acc + jnp.dot(tap, cw_ref[t], preferred_element_type=jnp.float32)
        acts = jnp.maximum(acc + cb_ref[...], 0.0)                          # bias + ReLU (VPU)
        return jnp.sum(acts, axis=0, keepdims=True) * (1.0 / (hs * ws))     # GAP -> (1, Cout)

    x_feat = backbone_feat(xp_ref[...][0])
    p_feat = backbone_feat(pp_ref[...][0])
    feats = x_feat + gamma * p_feat                                         # combine (VPU)
    # Packed, lane-dense head: out[:, :C] = features, out[:, C:C+NC] = fc(features).
    out = jnp.dot(feats, hw_ref[...], preferred_element_type=jnp.float32) + hb_ref[...]
    out_ref[...] = out.reshape(out_ref.shape)


# ---------------- wrapper ----------------

class CNNPromptNetPallas:
    """Mirrors CNNPromptNet forward: shared backbone on x and prompt, combine, fc."""

    def __init__(self, key, *, in_ch=3, out_dim=32, nb_classes=10,
                 prompt_size=32, gamma=1.0, compute_dtype=jnp.float32):
        assert out_dim + nb_classes <= OUT_PAD
        self.gamma = float(gamma)
        self.feature_dim = out_dim           # IncrementalNet._feature_dim
        self.nb_classes = nb_classes
        self.prompt_size = prompt_size
        self.compute_dtype = compute_dtype

        k_cw, k_cb, k_fw, k_fb, k_p = jax.random.split(key, 5)
        # simplified backbone: 3x3 same conv (HWIO) -> ReLU -> GAP
        w = 0.1 * jax.random.normal(k_cw, (3, 3, in_ch, out_dim), jnp.float32)
        self.conv_w_hwio = w
        # tap-major weights for the in-kernel im2col GEMMs (precomputed once, shape-static).
        self.conv_w_taps = w.reshape(9, in_ch, out_dim).astype(compute_dtype)
        self.conv_b = 0.1 * jax.random.normal(k_cb, (1, out_dim), jnp.float32)
        # fc head as produced by update_fc(nb_classes): Linear(feature_dim, nb_classes)
        self.fc_w = 0.1 * jax.random.normal(k_fw, (out_dim, nb_classes), jnp.float32)
        self.fc_b = 0.1 * jax.random.normal(k_fb, (1, nb_classes), jnp.float32)
        # self.prompt = nn.Parameter(rand((1, 3, prompt_size, prompt_size)))  (uniform [0,1))
        self.prompt = jax.random.uniform(k_p, (1, in_ch, prompt_size, prompt_size), jnp.float32)

        # lane-dense packed head: one (Cout, 128) GEMM emits [features | logits | 0].
        head_w = np.zeros((out_dim, OUT_PAD), np.float32)
        head_w[:, :out_dim] = np.eye(out_dim, dtype=np.float32)
        head_w[:, out_dim:out_dim + nb_classes] = np.asarray(self.fc_w)
        head_b = np.zeros((1, OUT_PAD), np.float32)
        head_b[0, out_dim:out_dim + nb_classes] = np.asarray(self.fc_b[0])
        self.head_w = jnp.asarray(head_w)
        self.head_b = jnp.asarray(head_b)

        # padded NHWC prompt, precomputed once (the PyTorch .expand(B,...) is exact to
        # running the backbone once on the single prompt image, since rows are identical).
        p_nhwc = jnp.transpose(self.prompt, (0, 2, 3, 1))
        self.prompt_pad = jnp.pad(p_nhwc, ((0, 0), (1, 1), (1, 1), (0, 0))).astype(compute_dtype)

        self._forward = jax.jit(self._forward_impl)

    def _forward_impl(self, x_nchw):
        B, Cin, H, W = x_nchw.shape
        P = self.prompt_size
        C, NC = self.feature_dim, self.nb_classes

        x = jnp.transpose(x_nchw, (0, 2, 3, 1))                             # NCHW -> NHWC
        x_pad = jnp.pad(x, ((0, 0), (1, 1), (1, 1), (0, 0))).astype(self.compute_dtype)

        kernel = functools.partial(cnn_prompt_fused_kernel, gamma=self.gamma)
        packed = pl.pallas_call(
            kernel,
            out_shape=jax.ShapeDtypeStruct((B, 1, OUT_PAD), jnp.float32),
            grid=(B,),
            in_specs=[
                pl.BlockSpec((1, H + 2, W + 2, Cin), lambda b: (b, 0, 0, 0)),   # x image b
                pl.BlockSpec((1, P + 2, P + 2, Cin), lambda b: (0, 0, 0, 0)),   # shared prompt
                pl.BlockSpec((9, Cin, C), lambda b: (0, 0, 0)),                 # conv weights
                pl.BlockSpec((1, C), lambda b: (0, 0)),                         # conv bias
                pl.BlockSpec((C, OUT_PAD), lambda b: (0, 0)),                   # packed head W
                pl.BlockSpec((1, OUT_PAD), lambda b: (0, 0)),                   # packed head b
            ],
            out_specs=pl.BlockSpec((1, 1, OUT_PAD), lambda b: (b, 0, 0)),
            compiler_params=pltpu.CompilerParams(
                dimension_semantics=("parallel",),            # use both TCs on v7x
                vmem_limit_bytes=32 * 1024 * 1024,
            ),
        )(x_pad, self.prompt_pad, self.conv_w_taps, self.conv_b, self.head_w, self.head_b)

        packed = packed.reshape(B, OUT_PAD)
        features = packed[:, :C]
        logits = packed[:, C:C + NC]
        return logits, features

    def forward(self, x_nchw):
        logits, features = self._forward(x_nchw)
        return {'logits': logits, 'features': features}

    # pure-JAX reference for correctness checking
    def forward_ref(self, x_nchw):
        B = x_nchw.shape[0]
        x = jnp.transpose(x_nchw, (0, 2, 3, 1))
        prompt_b = jnp.broadcast_to(self.prompt, (B,) + self.prompt.shape[1:])
        prompt = jnp.transpose(prompt_b, (0, 2, 3, 1))

        def backbone(inp):
            y = jax.lax.conv_general_dilated(
                inp, self.conv_w_hwio, window_strides=(1, 1), padding='SAME',
                dimension_numbers=('NHWC', 'HWIO', 'NHWC'))
            y = jnp.maximum(y + self.conv_b[0][None, None, None, :], 0.0)
            return jnp.mean(y, axis=(1, 2))

        x_out = backbone(x)
        prompt_out = backbone(prompt)
        features = x_out + self.gamma * prompt_out
        logits = features @ self.fc_w + self.fc_b
        return {'logits': logits, 'features': features}


if __name__ == "__main__":
    key = jax.random.PRNGKey(0)
    k_param, k_x = jax.random.split(key)

    # small shapes: batch=2, 3 channels (module's prompt is 3-channel), 16x16 spatial.
    net = CNNPromptNetPallas(k_param, in_ch=3, out_dim=32, nb_classes=10,
                             prompt_size=16, gamma=1.0)
    x = jax.random.normal(k_x, (2, 3, 16, 16), jnp.float32)   # NCHW, like PyTorch

    out = net.forward(x)
    jax.block_until_ready(out['logits'])
    jax.block_until_ready(out['features'])

    ref = net.forward_ref(x)
    for name in ('features', 'logits'):
        np.testing.assert_allclose(np.asarray(out[name]), np.asarray(ref[name]),
                                   rtol=1e-4, atol=1e-4)
    assert out['features'].shape == (2, 32)
    assert out['logits'].shape == (2, 10)

    # bf16 GEMM inputs (f32 accumulate): the memory-bound byte-savings path for v6e/v7x.
    net_bf16 = CNNPromptNetPallas(k_param, in_ch=3, out_dim=32, nb_classes=10,
                                  prompt_size=16, gamma=1.0, compute_dtype=jnp.bfloat16)
    out_bf16 = net_bf16.forward(x)
    jax.block_until_ready(out_bf16['logits'])
    for name in ('features', 'logits'):
        np.testing.assert_allclose(np.asarray(out_bf16[name]), np.asarray(ref[name]),
                                   rtol=3e-2, atol=3e-2)

    print("KERNEL_OK")
</pallas_src>

<mosaic_0001>
module attributes {stable_mosaic.version = 11 : i64} {
  func.func @cnn_prompt_fused_kernel(%arg0: i32, %arg1: memref<1x18x18x3xf32, #tpu.memory_space<vmem>>, %arg2: memref<1x18x18x3xf32, #tpu.memory_space<vmem>>, %arg3: memref<9x3x32xf32, #tpu.memory_space<vmem>>, %arg4: memref<1x32xf32, #tpu.memory_space<vmem>>, %arg5: memref<32x128xf32, #tpu.memory_space<vmem>>, %arg6: memref<1x128xf32, #tpu.memory_space<vmem>>, %arg7: memref<1x1x128xf32, #tpu.memory_space<vmem>>) attributes {dimension_semantics = [#tpu.dimension_semantics<parallel>], iteration_bounds = array<i64: 2>, scalar_prefetch = 0 : i64, scratch_operands = 0 : i64, tpu.core_type = #tpu.core_type<tc>, window_params = [{transform_indices = @transform_0, window_bounds = array<i64: 1, 18, 18, 3>}, {pipeline_mode = #tpu.pipeline_mode<synchronous>, transform_indices = @transform_1, window_bounds = array<i64: 1, 18, 18, 3>}, {pipeline_mode = #tpu.pipeline_mode<synchronous>, transform_indices = @transform_2, window_bounds = array<i64: 9, 3, 32>}, {pipeline_mode = #tpu.pipeline_mode<synchronous>, transform_indices = @transform_3, window_bounds = array<i64: 1, 32>}, {pipeline_mode = #tpu.pipeline_mode<synchronous>, transform_indices = @transform_4, window_bounds = array<i64: 32, 128>}, {pipeline_mode = #tpu.pipeline_mode<synchronous>, transform_indices = @transform_5, window_bounds = array<i64: 1, 128>}, {transform_indices = @transform_6, window_bounds = array<i64: 1, 1, 128>}]} {
    %c0 = arith.constant 0 : index
    %c0_0 = arith.constant 0 : index
    %c0_1 = arith.constant 0 : index
    %c0_2 = arith.constant 0 : index
    %0 = vector.load %arg1[%c0, %c0_0, %c0_1, %c0_2] : memref<1x18x18x3xf32, #tpu.memory_space<vmem>>, vector<1x18x18x3xf32>
    %1 = vector.shape_cast %0 : vector<1x18x18x3xf32> to vector<18x18x3xf32>
    %cst = arith.constant 0.000000e+00 : f32
    %2 = vector.broadcast %cst : f32 to vector<256x32xf32>
    %3 = vector.extract_strided_slice %1 {offsets = [0, 0, 0], sizes = [16, 16, 3], strides = [1, 1, 1]} : vector<18x18x3xf32> to vector<16x16x3xf32>
    %4 = vector.shape_cast %3 : vector<16x16x3xf32> to vector<256x3xf32>
    %c0_3 = arith.constant 0 : index
    %c0_4 = arith.constant 0 : index
    %c0_5 = arith.constant 0 : index
    %5 = vector.load %arg3[%c0_3, %c0_4, %c0_5] : memref<9x3x32xf32, #tpu.memory_space<vmem>>, vector<1x3x32xf32>
    %6 = vector.shape_cast %5 : vector<1x3x32xf32> to vector<3x32xf32>
    %cst_6 = arith.constant dense<0.000000e+00> : vector<256x32xf32>
    %7 = tpu.matmul %4, %6, %cst_6 {dimension_numbers = #tpu.dot_dimension_numbers<[1], [0], [0], [1], [0, 0, 1, 1], [], []>} : vector<256x3xf32>, vector<3x32xf32>, vector<256x32xf32> -> vector<256x32xf32>
    %8 = arith.addf %2, %7 : vector<256x32xf32>
    %9 = vector.extract_strided_slice %1 {offsets = [0, 1, 0], sizes = [16, 16, 3], strides = [1, 1, 1]} : vector<18x18x3xf32> to vector<16x16x3xf32>
    %10 = vector.shape_cast %9 : vector<16x16x3xf32> to vector<256x3xf32>
    %c1 = arith.constant 1 : index
    %c0_7 = arith.constant 0 : index
    %c0_8 = arith.constant 0 : index
    %11 = vector.load %arg3[%c1, %c0_7, %c0_8] : memref<9x3x32xf32, #tpu.memory_space<vmem>>, vector<1x3x32xf32>
    %12 = vector.shape_cast %11 : vector<1x3x32xf32> to vector<3x32xf32>
    %cst_9 = arith.constant dense<0.000000e+00> : vector<256x32xf32>
    %13 = tpu.matmul %10, %12, %cst_9 {dimension_numbers = #tpu.dot_dimension_numbers<[1], [0], [0], [1], [0, 0, 1, 1], [], []>} : vector<256x3xf32>, vector<3x32xf32>, vector<256x32xf32> -> vector<256x32xf32>
    %14 = arith.addf %8, %13 : vector<256x32xf32>
    %15 = vector.extract_strided_slice %1 {offsets = [0, 2, 0], sizes = [16, 16, 3], strides = [1, 1, 1]} : vector<18x18x3xf32> to vector<16x16x3xf32>
    %16 = vector.shape_cast %15 : vector<16x16x3xf32> to vector<256x3xf32>
    %c2 = arith.constant 2 : index
    %c0_10 = arith.constant 0 : index
    %c0_11 = arith.constant 0 : index
    %17 = vector.load %arg3[%c2, %c0_10, %c0_11] : memref<9x3x32xf32, #tpu.memory_space<vmem>>, vector<1x3x32xf32>
    %18 = vector.shape_cast %17 : vector<1x3x32xf32> to vector<3x32xf32>
    %cst_12 = arith.constant dense<0.000000e+00> : vector<256x32xf32>
    %19 = tpu.matmul %16, %18, %cst_12 {dimension_numbers = #tpu.dot_dimension_numbers<[1], [0], [0], [1], [0, 0, 1, 1], [], []>} : vector<256x3xf32>, vector<3x32xf32>, vector<256x32xf32> -> vector<256x32xf32>
    %20 = arith.addf %14, %19 : vector<256x32xf32>
    %21 = vector.extract_strided_slice %1 {offsets = [1, 0, 0], sizes = [16, 16, 3], strides = [1, 1, 1]} : vector<18x18x3xf32> to vector<16x16x3xf32>
    %22 = vector.shape_cast %21 : vector<16x16x3xf32> to vector<256x3xf32>
    %c3 = arith.constant 3 : index
    %c0_13 = arith.constant 0 : index
    %c0_14 = arith.constant 0 : index
    %23 = vector.load %arg3[%c3, %c0_13, %c0_14] : memref<9x3x32xf32, #tpu.memory_space<vmem>>, vector<1x3x32xf32>
    %24 = vector.shape_cast %23 : vector<1x3x32xf32> to vector<3x32xf32>
    %cst_15 = arith.constant dense<0.000000e+00> : vector<256x32xf32>
    %25 = tpu.matmul %22, %24, %cst_15 {dimension_numbers = #tpu.dot_dimension_numbers<[1], [0], [0], [1], [0, 0, 1, 1], [], []>} : vector<256x3xf32>, vector<3x32xf32>, vector<256x32xf32> -> vector<256x32xf32>
    %26 = arith.addf %20, %25 : vector<256x32xf32>
    %27 = vector.extract_strided_slice %1 {offsets = [1, 1, 0], sizes = [16, 16, 3], strides = [1, 1, 1]} : vector<18x18x3xf32> to vector<16x16x3xf32>
    %28 = vector.shape_cast %27 : vector<16x16x3xf32> to vector<256x3xf32>
    %c4 = arith.constant 4 : index
    %c0_16 = arith.constant 0 : index
    %c0_17 = arith.constant 0 : index
    %29 = vector.load %arg3[%c4, %c0_16, %c0_17] : memref<9x3x32xf32, #tpu.memory_space<vmem>>, vector<1x3x32xf32>
    %30 = vector.shape_cast %29 : vector<1x3x32xf32> to vector<3x32xf32>
    %cst_18 = arith.constant dense<0.000000e+00> : vector<256x32xf32>
    %31 = tpu.matmul %28, %30, %cst_18 {dimension_numbers = #tpu.dot_dimension_numbers<[1], [0], [0], [1], [0, 0, 1, 1], [], []>} : vector<256x3xf32>, vector<3x32xf32>, vector<256x32xf32> -> vector<256x32xf32>
    %32 = arith.addf %26, %31 : vector<256x32xf32>
    %33 = vector.extract_strided_slice %1 {offsets = [1, 2, 0], sizes = [16, 16, 3], strides = [1, 1, 1]} : vector<18x18x3xf32> to vector<16x16x3xf32>
    %34 = vector.shape_cast %33 : vector<16x16x3xf32> to vector<256x3xf32>
    %c5 = arith.constant 5 : index
    %c0_19 = arith.constant 0 : index
    %c0_20 = arith.constant 0 : index
    %35 = vector.load %arg3[%c5, %c0_19, %c0_20] : memref<9x3x32xf32, #tpu.memory_space<vmem>>, vector<1x3x32xf32>
    %36 = vector.shape_cast %35 : vector<1x3x32xf32> to vector<3x32xf32>
    %cst_21 = arith.constant dense<0.000000e+00> : vector<256x32xf32>
    %37 = tpu.matmul %34, %36, %cst_21 {dimension_numbers = #tpu.dot_dimension_numbers<[1], [0], [0], [1], [0, 0, 1, 1], [], []>} : vector<256x3xf32>, vector<3x32xf32>, vector<256x32xf32> -> vector<256x32xf32>
    %38 = arith.addf %32, %37 : vector<256x32xf32>
    %39 = vector.extract_strided_slice %1 {offsets = [2, 0, 0], sizes = [16, 16, 3], strides = [1, 1, 1]} : vector<18x18x3xf32> to vector<16x16x3xf32>
    %40 = vector.shape_cast %39 : vector<16x16x3xf32> to vector<256x3xf32>
    %c6 = arith.constant 6 : index
    %c0_22 = arith.constant 0 : index
    %c0_23 = arith.constant 0 : index
    %41 = vector.load %arg3[%c6, %c0_22, %c0_23] : memref<9x3x32xf32, #tpu.memory_space<vmem>>, vector<1x3x32xf32>
    %42 = vector.shape_cast %41 : vector<1x3x32xf32> to vector<3x32xf32>
    %cst_24 = arith.constant dense<0.000000e+00> : vector<256x32xf32>
    %43 = tpu.matmul %40, %42, %cst_24 {dimension_numbers = #tpu.dot_dimension_numbers<[1], [0], [0], [1], [0, 0, 1, 1], [], []>} : vector<256x3xf32>, vector<3x32xf32>, vector<256x32xf32> -> vector<256x32xf32>
    %44 = arith.addf %38, %43 : vector<256x32xf32>
    %45 = vector.extract_strided_slice %1 {offsets = [2, 1, 0], sizes = [16, 16, 3], strides = [1, 1, 1]} : vector<18x18x3xf32> to vector<16x16x3xf32>
    %46 = vector.shape_cast %45 : vector<16x16x3xf32> to vector<256x3xf32>
    %c7 = arith.constant 7 : index
    %c0_25 = arith.constant 0 : index
    %c0_26 = arith.constant 0 : index
    %47 = vector.load %arg3[%c7, %c0_25, %c0_26] : memref<9x3x32xf32, #tpu.memory_space<vmem>>, vector<1x3x32xf32>
    %48 = vector.shape_cast %47 : vector<1x3x32xf32> to vector<3x32xf32>
    %cst_27 = arith.constant dense<0.000000e+00> : vector<256x32xf32>
    %49 = tpu.matmul %46, %48, %cst_27 {dimension_numbers = #tpu.dot_dimension_numbers<[1], [0], [0], [1], [0, 0, 1, 1], [], []>} : vector<256x3xf32>, vector<3x32xf32>, vector<256x32xf32> -> vector<256x32xf32>
    %50 = arith.addf %44, %49 : vector<256x32xf32>
    %51 = vector.extract_strided_slice %1 {offsets = [2, 2, 0], sizes = [16, 16, 3], strides = [1, 1, 1]} : vector<18x18x3xf32> to vector<16x16x3xf32>
    %52 = vector.shape_cast %51 : vector<16x16x3xf32> to vector<256x3xf32>
    %c8 = arith.constant 8 : index
    %c0_28 = arith.constant 0 : index
    %c0_29 = arith.constant 0 : index
    %53 = vector.load %arg3[%c8, %c0_28, %c0_29] : memref<9x3x32xf32, #tpu.memory_space<vmem>>, vector<1x3x32xf32>
    %54 = vector.shape_cast %53 : vector<1x3x32xf32> to vector<3x32xf32>
    %cst_30 = arith.constant dense<0.000000e+00> : vector<256x32xf32>
    %55 = tpu.matmul %52, %54, %cst_30 {dimension_numbers = #tpu.dot_dimension_numbers<[1], [0], [0], [1], [0, 0, 1, 1], [], []>} : vector<256x3xf32>, vector<3x32xf32>, vector<256x32xf32> -> vector<256x32xf32>
    %56 = arith.addf %50, %55 : vector<256x32xf32>
    %c0_31 = arith.constant 0 : index
    %c0_32 = arith.constant 0 : index
    %57 = vector.load %arg4[%c0_31, %c0_32] : memref<1x32xf32, #tpu.memory_space<vmem>>, vector<1x32xf32>
    %58 = vector.broadcast %57 : vector<1x32xf32> to vector<256x32xf32>
    %59 = arith.addf %56, %58 : vector<256x32xf32>
    %cst_33 = arith.constant 0.000000e+00 : f32
    %60 = vector.broadcast %cst_33 : f32 to vector<256x32xf32>
    %61 = arith.maximumf %59, %60 : vector<256x32xf32>
    %cst_34 = arith.constant dense<0.000000e+00> : vector<32xf32>
    %62 = vector.multi_reduction <add>, %61, %cst_34 [0] : vector<256x32xf32> to vector<32xf32>
    %63 = vector.shape_cast %62 : vector<32xf32> to vector<1x32xf32>
    %cst_35 = arith.constant 3.906250e-03 : f32
    %64 = vector.broadcast %cst_35 : f32 to vector<1x32xf32>
    %65 = arith.mulf %63, %64 : vector<1x32xf32>
    %c0_36 = arith.constant 0 : index
    %c0_37 = arith.constant 0 : index
    %c0_38 = arith.constant 0 : index
    %c0_39 = arith.constant 0 : index
    %66 = vector.load %arg2[%c0_36, %c0_37, %c0_38, %c0_39] : memref<1x18x18x3xf32, #tpu.memory_space<vmem>>, vector<1x18x18x3xf32>
    %67 = vector.shape_cast %66 : vector<1x18x18x3xf32> to vector<18x18x3xf32>
    %cst_40 = arith.constant 0.000000e+00 : f32
    %68 = vector.broadcast %cst_40 : f32 to vector<256x32xf32>
    %69 = vector.extract_strided_slice %67 {offsets = [0, 0, 0], sizes = [16, 16, 3], strides = [1, 1, 1]} : vector<18x18x3xf32> to vector<16x16x3xf32>
    %70 = vector.shape_cast %69 : vector<16x16x3xf32> to vector<256x3xf32>
    %c0_41 = arith.constant 0 : index
    %c0_42 = arith.constant 0 : index
    %c0_43 = arith.constant 0 : index
    %71 = vector.load %arg3[%c0_41, %c0_42, %c0_43] : memref<9x3x32xf32, #tpu.memory_space<vmem>>, vector<1x3x32xf32>
    %72 = vector.shape_cast %71 : vector<1x3x32xf32> to vector<3x32xf32>
    %cst_44 = arith.constant dense<0.000000e+00> : vector<256x32xf32>
    %73 = tpu.matmul %70, %72, %cst_44 {dimension_numbers = #tpu.dot_dimension_numbers<[1], [0], [0], [1], [0, 0, 1, 1], [], []>} : vector<256x3xf32>, vector<3x32xf32>, vector<256x32xf32> -> vector<256x32xf32>
    %74 = arith.addf %68, %73 : vector<256x32xf32>
    %75 = vector.extract_strided_slice %67 {offsets = [0, 1, 0], sizes = [16, 16, 3], strides = [1, 1, 1]} : vector<18x18x3xf32> to vector<16x16x3xf32>
    %76 = vector.shape_cast %75 : vector<16x16x3xf32> to vector<256x3xf32>
    %c1_45 = arith.constant 1 : index
    %c0_46 = arith.constant 0 : index
    %c0_47 = arith.constant 0 : index
    %77 = vector.load %arg3[%c1_45, %c0_46, %c0_47] : memref<9x3x32xf32, #tpu.memory_space<vmem>>, vector<1x3x32xf32>
    %78 = vector.shape_cast %77 : vector<1x3x32xf32> to vector<3x32xf32>
    %cst_48 = arith.constant dense<0.000000e+00> : vector<256x32xf32>
    %79 = tpu.matmul %76, %78, %cst_48 {dimension_numbers = #tpu.dot_dimension_numbers<[1], [0], [0], [1], [0, 0, 1, 1], [], []>} : vector<256x3xf32>, vector<3x32xf32>, vector<256x32xf32> -> vector<256x32xf32>
    %80 = arith.addf %74, %79 : vector<256x32xf32>
    %81 = vector.extract_strided_slice %67 {offsets = [0, 2, 0], sizes = [16, 16, 3], strides = [1, 1, 1]} : vector<18x18x3xf32> to vector<16x16x3xf32>
    %82 = vector.shape_cast %81 : vector<16x16x3xf32> to vector<256x3xf32>
    %c2_49 = arith.constant 2 : index
    %c0_50 = arith.constant 0 : index
    %c0_51 = arith.constant 0 : index
    %83 = vector.load %arg3[%c2_49, %c0_50, %c0_51] : memref<9x3x32xf32, #tpu.memory_space<vmem>>, vector<1x3x32xf32>
    %84 = vector.shape_cast %83 : vector<1x3x32xf32> to vector<3x32xf32>
    %cst_52 = arith.constant dense<0.000000e+00> : vector<256x32xf32>
    %85 = tpu.matmul %82, %84, %cst_52 {dimension_numbers = #tpu.dot_dimension_numbers<[1], [0], [0], [1], [0, 0, 1, 1], [], []>} : vector<256x3xf32>, vector<3x32xf32>, vector<256x32xf32> -> vector<256x32xf32>
    %86 = arith.addf %80, %85 : vector<256x32xf32>
    %87 = vector.extract_strided_slice %67 {offsets = [1, 0, 0], sizes = [16, 16, 3], strides = [1, 1, 1]} : vector<18x18x3xf32> to vector<16x16x3xf32>
    %88 = vector.shape_cast %87 : vector<16x16x3xf32> to vector<256x3xf32>
    %c3_53 = arith.constant 3 : index
    %c0_54 = arith.constant 0 : index
    %c0_55 = arith.constant 0 : index
    %89 = vector.load %arg3[%c3_53, %c0_54, %c0_55] : memref<9x3x32xf32, #tpu.memory_space<vmem>>, vector<1x3x32xf32>
    %90 = vector.shape_cast %89 : vector<1x3x32xf32> to vector<3x32xf32>
    %cst_56 = arith.constant dense<0.000000e+00> : vector<256x32xf32>
    %91 = tpu.matmul %88, %90, %cst_56 {dimension_numbers = #tpu.dot_dimension_numbers<[1], [0], [0], [1], [0, 0, 1, 1], [], []>} : vector<256x3xf32>, vector<3x32xf32>, vector<256x32xf32> -> vector<256x32xf32>
    %92 = arith.addf %86, %91 : vector<256x32xf32>
    %93 = vector.extract_strided_slice %67 {offsets = [1, 1, 0], sizes = [16, 16, 3], strides = [1, 1, 1]} : vector<18x18x3xf32> to vector<16x16x3xf32>
    %94 = vector.shape_cast %93 : vector<16x16x3xf32> to vector<256x3xf32>
    %c4_57 = arith.constant 4 : index
    %c0_58 = arith.constant 0 : index
    %c0_59 = arith.constant 0 : index
    %95 = vector.load %arg3[%c4_57, %c0_58, %c0_59] : memref<9x3x32xf32, #tpu.memory_space<vmem>>, vector<1x3x32xf32>
    %96 = vector.shape_cast %95 : vector<1x3x32xf32> to vector<3x32xf32>
    %cst_60 = arith.constant dense<0.000000e+00> : vector<256x32xf32>
    %97 = tpu.matmul %94, %96, %cst_60 {dimension_numbers = #tpu.dot_dimension_numbers<[1], [0], [0], [1], [0, 0, 1, 1], [], []>} : vector<256x3xf32>, vector<3x32xf32>, vector<256x32xf32> -> vector<256x32xf32>
    %98 = arith.addf %92, %97 : vector<256x32xf32>
    %99 = vector.extract_strided_slice %67 {offsets = [1, 2, 0], sizes = [16, 16, 3], strides = [1, 1, 1]} : vector<18x18x3xf32> to vector<16x16x3xf32>
    %100 = vector.shape_cast %99 : vector<16x16x3xf32> to vector<256x3xf32>
    %c5_61 = arith.constant 5 : index
    %c0_62 = arith.constant 0 : index
    %c0_63 = arith.constant 0 : index
    %101 = vector.load %arg3[%c5_61, %c0_62, %c0_63] : memref<9x3x32xf32, #tpu.memory_space<vmem>>, vector<1x3x32xf32>
    %102 = vector.shape_cast %101 : vector<1x3x32xf32> to vector<3x32xf32>
    %cst_64 = arith.constant dense<0.000000e+00> : vector<256x32xf32>
    %103 = tpu.matmul %100, %102, %cst_64 {dimension_numbers = #tpu.dot_dimension_numbers<[1], [0], [0], [1], [0, 0, 1, 1], [], []>} : vector<256x3xf32>, vector<3x32xf32>, vector<256x32xf32> -> vector<256x32xf32>
    %104 = arith.addf %98, %103 : vector<256x32xf32>
    %105 = vector.extract_strided_slice %67 {offsets = [2, 0, 0], sizes = [16, 16, 3], strides = [1, 1, 1]} : vector<18x18x3xf32> to vector<16x16x3xf32>
    %106 = vector.shape_cast %105 : vector<16x16x3xf32> to vector<256x3xf32>
    %c6_65 = arith.constant 6 : index
    %c0_66 = arith.constant 0 : index
    %c0_67 = arith.constant 0 : index
    %107 = vector.load %arg3[%c6_65, %c0_66, %c0_67] : memref<9x3x32xf32, #tpu.memory_space<vmem>>, vector<1x3x32xf32>
    %108 = vector.shape_cast %107 : vector<1x3x32xf32> to vector<3x32xf32>
    %cst_68 = arith.constant dense<0.000000e+00> : vector<256x32xf32>
    %109 = tpu.matmul %106, %108, %cst_68 {dimension_numbers = #tpu.dot_dimension_numbers<[1], [0], [0], [1], [0, 0, 1, 1], [], []>} : vector<256x3xf32>, vector<3x32xf32>, vector<256x32xf32> -> vector<256x32xf32>
    %110 = arith.addf %104, %109 : vector<256x32xf32>
    %111 = vector.extract_strided_slice %67 {offsets = [2, 1, 0], sizes = [16, 16, 3], strides = [1, 1, 1]} : vector<18x18x3xf32> to vector<16x16x3xf32>
    %112 = vector.shape_cast %111 : vector<16x16x3xf32> to vector<256x3xf32>
    %c7_69 = arith.constant 7 : index
    %c0_70 = arith.constant 0 : index
    %c0_71 = arith.constant 0 : index
    %113 = vector.load %arg3[%c7_69, %c0_70, %c0_71] : memref<9x3x32xf32, #tpu.memory_space<vmem>>, vector<1x3x32xf32>
    %114 = vector.shape_cast %113 : vector<1x3x32xf32> to vector<3x32xf32>
    %cst_72 = arith.constant dense<0.000000e+00> : vector<256x32xf32>
    %115 = tpu.matmul %112, %114, %cst_72 {dimension_numbers = #tpu.dot_dimension_numbers<[1], [0], [0], [1], [0, 0, 1, 1], [], []>} : vector<256x3xf32>, vector<3x32xf32>, vector<256x32xf32> -> vector<256x32xf32>
    %116 = arith.addf %110, %115 : vector<256x32xf32>
    %117 = vector.extract_strided_slice %67 {offsets = [2, 2, 0], sizes = [16, 16, 3], strides = [1, 1, 1]} : vector<18x18x3xf32> to vector<16x16x3xf32>
    %118 = vector.shape_cast %117 : vector<16x16x3xf32> to vector<256x3xf32>
    %c8_73 = arith.constant 8 : index
    %c0_74 = arith.constant 0 : index
    %c0_75 = arith.constant 0 : index
    %119 = vector.load %arg3[%c8_73, %c0_74, %c0_75] : memref<9x3x32xf32, #tpu.memory_space<vmem>>, vector<1x3x32xf32>
    %120 = vector.shape_cast %119 : vector<1x3x32xf32> to vector<3x32xf32>
    %cst_76 = arith.constant dense<0.000000e+00> : vector<256x32xf32>
    %121 = tpu.matmul %118, %120, %cst_76 {dimension_numbers = #tpu.dot_dimension_numbers<[1], [0], [0], [1], [0, 0, 1, 1], [], []>} : vector<256x3xf32>, vector<3x32xf32>, vector<256x32xf32> -> vector<256x32xf32>
    %122 = arith.addf %116, %121 : vector<256x32xf32>
    %c0_77 = arith.constant 0 : index
    %c0_78 = arith.constant 0 : index
    %123 = vector.load %arg4[%c0_77, %c0_78] : memref<1x32xf32, #tpu.memory_space<vmem>>, vector<1x32xf32>
    %124 = vector.broadcast %123 : vector<1x32xf32> to vector<256x32xf32>
    %125 = arith.addf %122, %124 : vector<256x32xf32>
    %cst_79 = arith.constant 0.000000e+00 : f32
    %126 = vector.broadcast %cst_79 : f32 to vector<256x32xf32>
    %127 = arith.maximumf %125, %126 : vector<256x32xf32>
    %cst_80 = arith.constant dense<0.000000e+00> : vector<32xf32>
    %128 = vector.multi_reduction <add>, %127, %cst_80 [0] : vector<256x32xf32> to vector<32xf32>
    %129 = vector.shape_cast %128 : vector<32xf32> to vector<1x32xf32>
    %cst_81 = arith.constant 3.906250e-03 : f32
    %130 = vector.broadcast %cst_81 : f32 to vector<1x32xf32>
    %131 = arith.mulf %129, %130 : vector<1x32xf32>
    %cst_82 = arith.constant 1.000000e+00 : f32
    %132 = vector.broadcast %cst_82 : f32 to vector<1x32xf32>
    %133 = arith.mulf %132, %131 : vector<1x32xf32>
    %134 = arith.addf %65, %133 : vector<1x32xf32>
    %c0_83 = arith.constant 0 : index
    %c0_84 = arith.constant 0 : index
    %135 = vector.load %arg5[%c0_83, %c0_84] : memref<32x128xf32, #tpu.memory_space<vmem>>, vector<32x128xf32>
    %cst_85 = arith.constant dense<0.000000e+00> : vector<1x128xf32>
    %136 = tpu.matmul %134, %135, %cst_85 {dimension_numbers = #tpu.dot_dimension_numbers<[1], [0], [0], [1], [0, 0, 1, 1], [], []>} : vector<1x32xf32>, vector<32x128xf32>, vector<1x128xf32> -> vector<1x128xf32>
    %c0_86 = arith.constant 0 : index
    %c0_87 = arith.constant 0 : index
    %137 = vector.load %arg6[%c0_86, %c0_87] : memref<1x128xf32, #tpu.memory_space<vmem>>, vector<1x128xf32>
    %138 = arith.addf %136, %137 : vector<1x128xf32>
    %139 = vector.shape_cast %138 : vector<1x128xf32> to vector<1x1x128xf32>
    %c0_88 = arith.constant 0 : index
    %c0_89 = arith.constant 0 : index
    %c0_90 = arith.constant 0 : index
    %140 = vector.load %arg7[%c0_88, %c0_89, %c0_90] : memref<1x1x128xf32, #tpu.memory_space<vmem>>, vector<1x1x128xf32>
    tpu.vector_store %arg7[%c0_88, %c0_89, %c0_90], %139 {strides = array<i32>} : memref<1x1x128xf32, #tpu.memory_space<vmem>>, vector<1x1x128xf32>,
    return
  }
  func.func @transform_0(%arg0: i32) -> (i32, i32, i32, i32) {
    %c0_i32 = arith.constant 0 : i32
    %c0_i32_0 = arith.constant 0 : i32
    %c0_i32_1 = arith.constant 0 : i32
    %c0_i32_2 = arith.constant 0 : i32
    return %arg0, %c0_i32, %c0_i32_0, %c0_i32_1 : i32, i32, i32, i32
  }
  func.func @transform_1(%arg0: i32) -> (i32, i32, i32, i32) {
    %c0_i32 = arith.constant 0 : i32
    %c0_i32_0 = arith.constant 0 : i32
    %c0_i32_1 = arith.constant 0 : i32
    %c0_i32_2 = arith.constant 0 : i32
    %c0_i32_3 = arith.constant 0 : i32
    return %c0_i32, %c0_i32_0, %c0_i32_1, %c0_i32_2 : i32, i32, i32, i32
  }
  func.func @transform_2(%arg0: i32) -> (i32, i32, i32) {
    %c0_i32 = arith.constant 0 : i32
    %c0_i32_0 = arith.constant 0 : i32
    %c0_i32_1 = arith.constant 0 : i32
    %c0_i32_2 = arith.constant 0 : i32
    return %c0_i32, %c0_i32_0, %c0_i32_1 : i32, i32, i32
  }
  func.func @transform_3(%arg0: i32) -> (i32, i32) {
    %c0_i32 = arith.constant 0 : i32
    %c0_i32_0 = arith.constant 0 : i32
    %c0_i32_1 = arith.constant 0 : i32
    return %c0_i32, %c0_i32_0 : i32, i32
  }
  func.func @transform_4(%arg0: i32) -> (i32, i32) {
    %c0_i32 = arith.constant 0 : i32
    %c0_i32_0 = arith.constant 0 : i32
    %c0_i32_1 = arith.constant 0 : i32
    return %c0_i32, %c0_i32_0 : i32, i32
  }
  func.func @transform_5(%arg0: i32) -> (i32, i32) {
    %c0_i32 = arith.constant 0 : i32
    %c0_i32_0 = arith.constant 0 : i32
    %c0_i32_1 = arith.constant 0 : i32
    return %c0_i32, %c0_i32_0 : i32, i32
  }
  func.func @transform_6(%arg0: i32) -> (i32, i32, i32) {
    %c0_i32 = arith.constant 0 : i32
    %c0_i32_0 = arith.constant 0 : i32
    %c0_i32_1 = arith.constant 0 : i32
    return %arg0, %c0_i32, %c0_i32_0 : i32, i32, i32
  }
}

</mosaic_0001>

<bundles_post_ra>
// kernel: _forward_impl.1
= control target key start
LH: loop header
LB: loop body
LE: loop exit
PB: predicated region body
PF: predicated region fallthrough
CT: control target
= control target key end

     0   :  { %s8963_s21 = smov 0   ;;  %s11565_s0 = inlined_call_operand.vmem [shape: f32[2,18,18,3], index: 0, kind: input, shape index: {}]   ;;  %s11566_s1 = inlined_call_operand.vmem [shape: f32[1,18,18,3], index: 1, kind: input, shape index: {}]   ;;  %s11567_s2 = inlined_call_operand.vmem [shape: f32[9,3,32], index: 2, kind: input, shape index: {}]   ;;  %s11568_s3 = inlined_call_operand.vmem [shape: f32[1,32], index: 3, kind: input, shape index: {}]   ;;  %s11569_s4 = inlined_call_operand.vmem [shape: f32[32,128], index: 4, kind: input, shape index: {}]   ;;  %s11570_s5 = inlined_call_operand.vmem [shape: f32[1,128], index: 5, kind: input, shape index: {}]   ;;  %s11571_s6 = inlined_call_operand.vmem [shape: f32[2,1,128], index: 6, kind: output, shape index: {}]  }
   0x1 LB: > { %s6205_s22 = sadd.s32 4294967295, %s8923_s21   ;;  %p6209_p0 = scmp.ge.s32.totalorder %s8923_s21, 1  ;;  %s8923_s21 = sphi %s8963_s21, %s16_s21  }
   0x2   : > { %p212_p1 = scmp.lt.s32.totalorder %s8923_s21, 3 }
   0x4   : > { %p213_p2 = pnand %p6209_p0, %p212_p1 }
   0x6   : > { %216 = sbr.rel (%p213_p2) target bundleno = 1051 (0x41b), region = 44 }
   0xd   : > { %v6211_v0 = vld [vmem:[%s11567_s2 + $0x4] sm:$0x7]  ;;  %vm499_vm0 = vcmask 1042432   ;;  %vm351_vm1 = vcmask 1046528   ;;  %v8983_v2 = vld [vmem:[%s11566_s1 + $0x8] sm:$0xff]  ;;  %v8994_v5 = vld [vmem:[%s11566_s1 + $0x18] sm:$0xff] }
   0xe   : > { %v8977_v1 = vld [vmem:[%s11566_s1] sm:$0xff]  ;;  %7866 = vmatprep.subr.msk.mxu1 %vm499_vm0, %v6211_v0  ;;  %v8989_v4 = vld [vmem:[%s11566_s1 + $0x10] sm:$0x3]  ;;  %7416 = vmatprep.subr.msk.mxu0 %vm499_vm0, %v6211_v0  ;;  %p240_p3 = scmp.lt.s32.totalorder %s6205_s22, 1  ;;  %vm434_vm2 = vcmask 23552   ;;  %v3294_v6 = vrot.slane %v8983_v2, 1 }
   0xf   : > { %v3293_v3 = vrot.slane %v8977_v1, 1  ;;  %11850 = vst [vmem:[#allocation2_spill] sm:$0xff] %v8989_v4  ;;  %7867 = vmatpush3.msk.msra.mxu1 %vm499_vm0, %v6211_v0  ;;  %v3296_v7 = vrot.slane %v8989_v4, 1  ;;  %v9003_v8 = vld [vmem:[%s11566_s1 + $0x20] sm:$0xff]  ;;  %v3298_v9 = vrot.slane %v8994_v5, 1  ;;  %7417 = vmatpush3.msk.msra.mxu0 %vm499_vm0, %v6211_v0  ;;  %v9010_v10 = vld [vmem:[%s11566_s1 + $0x30] sm:$0xff] }
  0x10   : > { %v3299_v11 = vrot.slane %v9003_v8, 1  ;;  %v9016_v12 = vld [vmem:[%s11566_s1 + $0x28] sm:$0x3]  ;;  %s12266_s22 = smov (!%p240_p3, %s6205_s22), 1  ;;  %v302_v13 = vld [vmem:[%s11567_s2] sm:$0x7] }
  0x11   : > { %11851 = vst [vmem:[#allocation3_spill] sm:$0xff] %v9016_v12  ;;  %v3295_v14 = vsel %vm351_vm1, %v3293_v3, %v3294_v6  ;;  %v3297_v15 = vsel %vm351_vm1, %v3294_v6, %v3296_v7  ;;  %v3301_v16 = vrot.slane %v9016_v12, 1  ;;  %7466 = vmatprep.subr.msk.mxu0 %vm499_vm0, %v302_v13  ;;  %7916 = vmatprep.subr.msk.mxu1 %vm499_vm0, %v302_v13  ;;  %v9031_v17 = vld [vmem:[%s11566_s1 + $0x38] sm:$0xff]  ;;  %v3303_v18 = vrot.slane %v9010_v10, 1  ;;  %v9037_v19 = vld [vmem:[%s11566_s1 + $0x40] sm:$0x3]  ;;  %s247_s12 = scalar_lea.vmem %s11571_s6, %s12266_s22 }
  0x12   : > { %11852 = vst [vmem:[#allocation4_spill] sm:$0xff] %v9037_v19  ;;  %v9042_v20 = vld [vmem:[%s11566_s1 + $0x48] sm:$0xff]  ;;  %7868 = vmatprep.mubr.msk.f32.mxu1 %vm434_vm2, %v3295_v14  ;;  %v9046_v21 = vsel %vm351_vm1, %v3298_v9, %v3299_v11  ;;  %s8845_s25 = smul.u32 432, %s12266_s22  ;;  %v3304_v22 = vrot.slane %v9031_v17, 1  ;;  %v9053_v23 = vld [vmem:[%s11566_s1 + $0x50] sm:$0xff]  ;;  %v9058_v24 = vld [vmem:[%s11566_s1 + $0x60] sm:$0xff] }
  0x13   : > { %11853 = vst [vmem:[#allocation5_spill] sm:$0xff] %v9046_v21  ;;  %7869 = vmatmul.mubr.msk.f32.vlgmr.msra.gmra.mrb[0].mxu1 %vm434_vm2, %v3297_v15  ;;  %v3306_v25 = vrot.slane %v9037_v19, 1  ;;  %v9065_v26 = vld [vmem:[%s11566_s1 + $0x58] sm:$0x3]  ;;  %v9070_v27 = vsel %vm351_vm1, %v3299_v11, %v3301_v16  ;;  %v3308_v28 = vrot.slane %v9042_v20, 1  ;;  %v9082_v29 = vld [vmem:[%s11566_s1 + $0x68] sm:$0xff] }
  0x14   : > { %11854 = vst [vmem:[#allocation6_spill] sm:$0xff] %v9065_v26  ;;  %7871 = vmatprep.mubr.msk.f32.mxu1 %vm434_vm2, %v9046_v21  ;;  %11855 = vst [vmem:[#allocation7_spill] sm:$0xff] %v9070_v27  ;;  %s9075_s10 = scalar_lea.vmem %s11565_s0, %s8845_s25  ;;  %7917 = vmatpush3.msk.msra.mxu1 %vm499_vm0, %v302_v13  ;;  %v9094_v33 = vsel %vm351_vm1, %v3303_v18, %v3304_v22  ;;  %v3309_v34 = vrot.slane %v9053_v23, 1  ;;  %v3313_v35 = vrot.slane %v9058_v24, 1  ;;  %v3311_v41 = vrot.slane %v9065_v26, 1  ;;  %v9157_v60 = vld [vmem:[%s11566_s1 + $0x78] sm:$0xff] }
  0x15   : > { %v9085_v30 = vld [vmem:[%s9075_s10] sm:$0xff]  ;;  %v9088_v31 = vld [vmem:[%s9075_s10 + $0x8] sm:$0xff]  ;;  %v9091_v32 = vld [vmem:[%s9075_s10 + $0x10] sm:$0x3]  ;;  %11857 = vst [vmem:[#allocation9_spill] sm:$0xff] %v9094_v33  ;;  %v9111_v42 = vsel %vm351_vm1, %v3304_v22, %v3306_v25  ;;  %v3314_v57 = vrot.slane %v9082_v29, 1 }
  0x16   : > { %11856 = vst [vmem:[#allocation8_spill] sm:$0xff] %v9091_v32  ;;  %v352_v36 = vrot.slane %v9085_v30, 1  ;;  %v353_v37 = vrot.slane %v9088_v31, 1  ;;  %v355_v38 = vrot.slane %v9091_v32, 1  ;;  %v9102_v39 = vld [vmem:[%s9075_s10 + $0x18] sm:$0xff]  ;;  %v9105_v40 = vld [vmem:[%s9075_s10 + $0x20] sm:$0xff]  ;;  %v9143_v55 = vsel %vm351_vm1, %v3308_v28, %v3309_v34 }
  0x17   : > { %7872 = vmatmul.mubr.msk.f32.gmra.mrb[2].mxu1 %vm434_vm2, %v9070_v27  ;;  %11858 = vst [vmem:[#allocation10_spill] sm:$0xff] %v9111_v42  ;;  %v357_v43 = vrot.slane %v9102_v39, 1  ;;  %v358_v44 = vrot.slane %v9105_v40, 1  ;;  %v9116_v45 = vld [vmem:[%s9075_s10 + $0x28] sm:$0x3]  ;;  %v9119_v46 = vld [vmem:[%s9075_s10 + $0x30] sm:$0xff]  ;;  %v9177_v3 = vsel %vm351_vm1, %v3309_v34, %v3311_v41  ;;  %v9193_v14 = vsel %vm351_vm1, %v3313_v35, %v3314_v57 }
  0x18   : > { %11859 = vst [vmem:[#allocation11_spill] sm:$0xff] %v9116_v45  ;;  %v9122_v47 = vld [vmem:[%s9075_s10 + $0x38] sm:$0xff]  ;;  %v354_v48 = vsel %vm351_vm1, %v352_v36, %v353_v37  ;;  %v356_v49 = vsel %vm351_vm1, %v353_v37, %v355_v38  ;;  %7874 = vmatprep.mubr.msk.f32.mxu1 %vm434_vm2, %v9094_v33  ;;  %v360_v50 = vrot.slane %v9116_v45, 1  ;;  %v362_v51 = vrot.slane %v9119_v46, 1  ;;  %v9131_v52 = vld [vmem:[%s9075_s10 + $0x40] sm:$0x3] }
  0x19   : > { %11860 = vst [vmem:[#allocation12_spill] sm:$0xff] %v9131_v52  ;;  %v9136_v53 = vld [vmem:[%s11566_s1 + $0x70] sm:$0x3]  ;;  %7418 = vmatprep.mubr.msk.f32.mxu0 %vm434_vm2, %v354_v48  ;;  %v9140_v54 = vsel %vm351_vm1, %v357_v43, %v358_v44  ;;  %11863 = vst [vmem:[#allocation15_spill] sm:$0xff] %v9143_v55  ;;  %v363_v56 = vrot.slane %v9122_v47, 1  ;;  %v9148_v58 = vld [vmem:[%s9075_s10 + $0x48] sm:$0xff] }
  0x1a   : > { %11861 = vst [vmem:[#allocation13_spill] sm:$0xff] %v9136_v53  ;;  %11862 = vst [vmem:[#allocation14_spill] sm:$0xff] %v9140_v54  ;;  %v9151_v59 = vld [vmem:[%s9075_s10 + $0x50] sm:$0xff]  ;;  %7419 = vmatmul.mubr.msk.f32.vlgmr.msra.gmra.mrb[0].mxu0 %vm434_vm2, %v356_v49  ;;  %v9162_v61 = vld [vmem:[%s11566_s1 + $0x80] sm:$0xff]  ;;  %v9168_v62 = vsel %vm351_vm1, %v358_v44, %v360_v50  ;;  %v365_v63 = vrot.slane %v9131_v52, 1  ;;  %v3316_v0 = vrot.slane %v9136_v53, 1 }
  0x1b   : > { %7467 = vmatpush3.msk.msra.mxu0 %vm499_vm0, %v302_v13  ;;  %7875 = vmatmul.mubr.msk.f32.gmra.mrb[4].mxu1 %vm434_vm2, %v9111_v42  ;;  %11864 = vst [vmem:[#allocation16_spill] sm:$0xff] %v9168_v62  ;;  %11865 = vst [vmem:[#allocation17_spill] sm:$0xff] %v9177_v3  ;;  %v9180_v6 = vsel %vm351_vm1, %v362_v51, %v363_v56  ;;  %v367_v7 = vrot.slane %v9148_v58, 1  ;;  %v368_v9 = vrot.slane %v9151_v59, 1  ;;  %v9185_v11 = vld [vmem:[%s9075_s10 + $0x58] sm:$0x3] }
  0x1c   : > { %7421 = vmatprep.mubr.msk.f32.mxu0 %vm434_vm2, %v9140_v54  ;;  %7877 = vmatprep.mubr.msk.f32.mxu1 %vm434_vm2, %v9143_v55  ;;  %11866 = vst [vmem:[#allocation18_spill] sm:$0xff] %v9180_v6  ;;  %11867 = vst [vmem:[#allocation19_spill] sm:$0xff] %v9185_v11  ;;  %v9190_v13 = vld [vmem:[%s11566_s1 + $0x88] sm:$0x3]  ;;  %v3318_v15 = vrot.slane %v9157_v60, 1  ;;  %v3319_v16 = vrot.slane %v9162_v61, 1  ;;  %v9220_v34 = vsel %vm351_vm1, %v363_v56, %v365_v63 }
  0x1d   : > { %11868 = vst [vmem:[#allocation20_spill] sm:$0xff] %v9190_v13  ;;  %11869 = vst [vmem:[#allocation21_spill] sm:$0xff] %v9193_v14  ;;  %v9198_v18 = vld [vmem:[%s9075_s10 + $0x60] sm:$0xff]  ;;  %v9201_v22 = vld [vmem:[%s9075_s10 + $0x68] sm:$0xff]  ;;  %v370_v35 = vrot.slane %v9185_v11, 1  ;;  %v3321_v36 = vrot.slane %v9190_v13, 1  ;;  %v9227_v37 = vsel %vm351_vm1, %v3314_v57, %v3316_v0  ;;  %v9230_v38 = vsel %vm351_vm1, %v367_v7, %v368_v9 }
  0x1e   : > { %7422 = vmatmul.mubr.msk.f32.gmra.mrb[2].mxu0 %vm434_vm2, %v9168_v62  ;;  %v9208_v25 = vld [vmem:[%s11566_s1 + $0x90] sm:$0xff]  ;;  %v9213_v28 = vld [vmem:[%s11566_s1 + $0x98] sm:$0xff]  ;;  %11870 = vst [vmem:[#allocation22_spill] sm:$0xff] %v9220_v34  ;;  %11871 = vst [vmem:[#allocation23_spill] sm:$0xff] %v9227_v37  ;;  %v372_v41 = vrot.slane %v9198_v18, 1  ;;  %v373_v43 = vrot.slane %v9201_v22, 1  ;;  %v9243_v49 = vsel %vm351_vm1, %v3318_v15, %v3319_v16 }
  0x1f   : > { %7878 = vmatmul.mubr.msk.f32.gmra.mrb[6].mxu1 %vm434_vm2, %v9177_v3  ;;  %7424 = vmatprep.mubr.msk.f32.mxu0 %vm434_vm2, %v9180_v6  ;;  %11872 = vst [vmem:[#allocation24_spill] sm:$0xff] %v9230_v38  ;;  %v9235_v44 = vld [vmem:[%s9075_s10 + $0x70] sm:$0x3]  ;;  %v9240_v48 = vld [vmem:[%s11566_s1 + $0xa0] sm:$0x3]  ;;  %11875 = vst [vmem:[#allocation27_spill] sm:$0xff] %v9243_v49  ;;  %v9270_v7 = vsel %vm351_vm1, %v368_v9, %v370_v35 }
  0x20   : > { %7880 = vmatprep.mubr.msk.f32.mxu1 %vm434_vm2, %v9193_v14  ;;  %11873 = vst [vmem:[#allocation25_spill] sm:$0xff] %v9235_v44  ;;  %11874 = vst [vmem:[#allocation26_spill] sm:$0xff] %v9240_v48  ;;  %v3323_v50 = vrot.slane %v9208_v25, 1  ;;  %v3324_v51 = vrot.slane %v9213_v28, 1  ;;  %v9248_v56 = vld [vmem:[%s9075_s10 + $0x78] sm:$0xff]  ;;  %v9251_v57 = vld [vmem:[%s9075_s10 + $0x80] sm:$0xff]  ;;  %v9277_v14 = vsel %vm351_vm1, %v3319_v16, %v3321_v36  ;;  %v9280_v6 = vsel %vm351_vm1, %v372_v41, %v373_v43 }
  0x21   : > { %v9258_v63 = vld [vmem:[%s11566_s1 + $0xa8] sm:$0xff]  ;;  %v9263_v0 = vld [vmem:[%s11566_s1 + $0xb0] sm:$0xff]  ;;  %11876 = vst [vmem:[#allocation28_spill] sm:$0xff] %v9270_v7  ;;  %v375_v15 = vrot.slane %v9235_v44, 1  ;;  %11877 = vst [vmem:[#allocation29_spill] sm:$0xff] %v9277_v14  ;;  %vm1020_vm3 = vcmask 1045504  }
  0x22   : > { %7425 = vmatmul.mubr.msk.f32.gmra.mrb[4].mxu0 %vm434_vm2, %v9220_v34  ;;  %v3326_v34 = vrot.slane %v9240_v48, 1  ;;  %11878 = vst [vmem:[#allocation30_spill] sm:$0xff] %v9280_v6  ;;  %v9285_v9 = vld [vmem:[%s9075_s10 + $0x88] sm:$0x3]  ;;  %v9288_v35 = vsel %vm351_vm1, %v3323_v50, %v3324_v51  ;;  %v3328_v3 = vrot.slane %v9258_v63, 1  ;;  %v9298_v36 = vld [vmem:[%s9075_s10 + $0x90] sm:$0xff] }
  0x23   : > { %7881 = vmatmul.mubr.msk.f32.gmra.mrb[8].mxu1 %vm434_vm2, %v9227_v37  ;;  %7427 = vmatprep.mubr.msk.f32.mxu0 %vm434_vm2, %v9230_v38  ;;  %v377_v37 = vrot.slane %v9248_v56, 1  ;;  %v378_v38 = vrot.slane %v9251_v57, 1  ;;  %11879 = vst [vmem:[#allocation31_spill] sm:$0xff] %v9285_v9  ;;  %11880 = vst [vmem:[#allocation32_spill] sm:$0xff] %v9288_v35  ;;  %v9295_v16 = vld [vmem:[%s11566_s1 + $0xb8] sm:$0x3] }
  0x24   : > { %7883 = vmatprep.mubr.msk.f32.mxu1 %vm434_vm2, %v9243_v49  ;;  %v3329_v49 = vrot.slane %v9263_v0, 1  ;;  %11881 = vst [vmem:[#allocation33_spill] sm:$0xff] %v9295_v16  ;;  %v9301_v41 = vld [vmem:[%s9075_s10 + $0x98] sm:$0xff]  ;;  %v9308_v50 = vld [vmem:[%s11566_s1 + $0xc0] sm:$0xff]  ;;  %v9313_v62 = vld [vmem:[%s11566_s1 + $0xc8] sm:$0xff]  ;;  %v9323_v55 = vsel %vm351_vm1, %v3324_v51, %v3326_v34  ;;  %v380_v54 = vrot.slane %v9285_v9, 1 }
  0x25   : > { %11883 = vst [vmem:[#allocation35_spill] sm:$0xff] %v9323_v55  ;;  %v9327_v42 = vld [vmem:[%s9075_s10 + $0xa0] sm:$0x3]  ;;  %v9332_v33 = vsel %vm351_vm1, %v377_v37, %v378_v38  ;;  %v9340_v34 = vld [vmem:[%s11566_s1 + $0xd0] sm:$0x3]  ;;  %v9348_v37 = vld [vmem:[%s9075_s10 + $0xa8] sm:$0xff] }
  0x26   : > { %7428 = vmatmul.mubr.msk.f32.gmra.mrb[6].mxu0 %vm434_vm2, %v9270_v7  ;;  %v9320_v7 = vsel %vm351_vm1, %v373_v43, %v375_v15  ;;  %11884 = vst [vmem:[#allocation36_spill] sm:$0xff] %v9327_v42  ;;  %11885 = vst [vmem:[#allocation37_spill] sm:$0xff] %v9332_v33  ;;  %v383_v43 = vrot.slane %v9301_v41, 1  ;;  %v9343_v51 = vsel %vm351_vm1, %v3328_v3, %v3329_v49  ;;  %v3333_v15 = vrot.slane %v9308_v50, 1  ;;  %v9351_v27 = vld [vmem:[%s9075_s10 + $0xb0] sm:$0xff]  ;;  %v9358_v21 = vld [vmem:[%s11566_s1 + $0xd8] sm:$0xff] }
  0x27   : > { %7884 = vmatmul.mubr.msk.f32.gmra.mrb[10].mxu1 %vm434_vm2, %v9277_v14  ;;  %7430 = vmatprep.mubr.msk.f32.mxu0 %vm434_vm2, %v9280_v6  ;;  %11882 = vst [vmem:[#allocation34_spill] sm:$0xff] %v9320_v7  ;;  %v3331_v14 = vrot.slane %v9295_v16, 1  ;;  %v382_v6 = vrot.slane %v9298_v36, 1  ;;  %11886 = vst [vmem:[#allocation38_spill] sm:$0xff] %v9340_v34  ;;  %v9363_v3 = vld [vmem:[%s11566_s1 + $0xe0] sm:$0xff]  ;;  %v385_v16 = vrot.slane %v9327_v42, 1 }
  0x28   : > { %7886 = vmatprep.mubr.msk.f32.mxu1 %vm434_vm2, %v9288_v35  ;;  %11887 = vst [vmem:[#allocation39_spill] sm:$0xff] %v9343_v51  ;;  %v3334_v35 = vrot.slane %v9313_v62, 1  ;;  %v3336_v9 = vrot.slane %v9340_v34, 1  ;;  %v3338_v34 = vrot.slane %v9358_v21, 1  ;;  %v9413_v42 = vld [vmem:[%s11566_s1 + $0xf8] sm:$0xff]  ;;  %vm8926_vm4 = vmmov 0  }
  0x29   : > { %v9377_v48 = vsel %vm351_vm1, %v3329_v49, %v3331_v14  ;;  %v9380_v44 = vsel %vm351_vm1, %v382_v6, %v383_v43  ;;  %v9395_v14 = vld [vmem:[%s11566_s1 + $0xe8] sm:$0x3]  ;;  %v9398_v6 = vld [vmem:[%s9075_s10 + $0xc0] sm:$0xff]  ;;  %v9427_v53 = vld [vmem:[%s9075_s10 + $0xd0] sm:$0x3]  ;;  %vm3120_vm5 = vcmask 261120  }
  0x2a   : > { %7431 = vmatmul.mubr.msk.f32.gmra.mrb[8].mxu0 %vm434_vm2, %v9320_v7  ;;  %v9370_v7 = vsel %vm351_vm1, %v378_v38, %v380_v54  ;;  %11889 = vst [vmem:[#allocation41_spill] sm:$0xff] %v9377_v48  ;;  %11890 = vst [vmem:[#allocation42_spill] sm:$0xff] %v9380_v44  ;;  %v9385_v54 = vld [vmem:[%s9075_s10 + $0xb8] sm:$0x3]  ;;  %v9388_v38 = vsel %vm351_vm1, %v3333_v15, %v3334_v35  ;;  %v9401_v49 = vld [vmem:[%s9075_s10 + $0xc8] sm:$0xff]  ;;  %v9423_v13 = vsel %vm351_vm1, %v3334_v35, %v3336_v9 }
  0x2b   : > { %7887 = vmatmul.mubr.msk.f32.gmra.mrb[12].mxu1 %vm434_vm2, %v9323_v55  ;;  %7433 = vmatprep.mubr.msk.f32.mxu0 %vm434_vm2, %v9332_v33  ;;  %11888 = vst [vmem:[#allocation40_spill] sm:$0xff] %v9370_v7  ;;  %v387_v55 = vrot.slane %v9348_v37, 1  ;;  %v388_v33 = vrot.slane %v9351_v27, 1  ;;  %11891 = vst [vmem:[#allocation43_spill] sm:$0xff] %v9385_v54  ;;  %v9408_v15 = vld [vmem:[%s11566_s1 + $0xf0] sm:$0xff]  ;;  %v390_v11 = vrot.slane %v9385_v54, 1 }
  0x2c   : > { %7889 = vmatprep.mubr.msk.f32.mxu1 %vm434_vm2, %v9343_v51  ;;  %11892 = vst [vmem:[#allocation44_spill] sm:$0xff] %v9388_v38  ;;  %v3339_v51 = vrot.slane %v9363_v3, 1  ;;  %11893 = vst [vmem:[#allocation45_spill] sm:$0xff] %v9395_v14  ;;  %v9440_v9 = vld [vmem:[%s11566_s1 + $0x100] sm:$0x3]  ;;  %v9458_v54 = vld [vmem:[%s11566_s1 + $0x108] sm:$0xff] }
  0x2d   : > { %11895 = vst [vmem:[#allocation47_spill] sm:$0xff] %v9423_v13  ;;  %11896 = vst [vmem:[#allocation48_spill] sm:$0xff] %v9427_v53  ;;  %v9432_v52 = vsel %vm351_vm1, %v387_v55, %v388_v33  ;;  %v9448_v55 = vld [vmem:[%s9075_s10 + $0xd8] sm:$0xff]  ;;  %v9468_v26 = vld [vmem:[%s11567_s2 + $0x8] sm:$0x7]  ;;  %v395_v45 = vrot.slane %v9427_v53, 1 }
  0x2e   : > { %7434 = vmatmul.mubr.msk.f32.gmra.mrb[10].mxu0 %vm434_vm2, %v9370_v7  ;;  %v9420_v7 = vsel %vm351_vm1, %v383_v43, %v385_v16  ;;  %11897 = vst [vmem:[#allocation49_spill] sm:$0xff] %v9432_v52  ;;  %v393_v16 = vrot.slane %v9401_v49, 1  ;;  %11898 = vst [vmem:[#allocation50_spill] sm:$0xff] %v9440_v9  ;;  %v9443_v35 = vsel %vm351_vm1, %v3338_v34, %v3339_v51  ;;  %v3343_v43 = vrot.slane %v9408_v15, 1  ;;  %v9463_v34 = vld [vmem:[%s11566_s1 + $0x110] sm:$0xff] }
  0x2f   : > { %7890 = vmatmul.mubr.msk.f32.gmra.mrb[14].mxu1 %vm434_vm2, %v9377_v48  ;;  %7436 = vmatprep.mubr.msk.f32.mxu0 %vm434_vm2, %v9380_v44  ;;  %11894 = vst [vmem:[#allocation46_spill] sm:$0xff] %v9420_v7  ;;  %v3341_v48 = vrot.slane %v9395_v14, 1  ;;  %v392_v44 = vrot.slane %v9398_v6, 1  ;;  %11899 = vst [vmem:[#allocation51_spill] sm:$0xff] %v9443_v35  ;;  %v9451_v14 = vld [vmem:[%s9075_s10 + $0xe0] sm:$0xff]  ;;  %v3346_v19 = vrot.slane %v9440_v9, 1 }
  0x30   : > { %7892 = vmatprep.mubr.msk.f32.mxu1 %vm434_vm2, %v9388_v38  ;;  %v3344_v38 = vrot.slane %v9413_v42, 1  ;;  %11900 = vst [vmem:[#allocation52_spill] sm:$0xff] %v9448_v55  ;;  %11901 = vst [vmem:[#allocation53_spill] sm:$0xff] %v9451_v14  ;;  %v397_v12 = vrot.slane %v9448_v55, 1  ;;  %v9490_v4 = vld [vmem:[%s9075_s10 + $0xe8] sm:$0x3]  ;;  %7516 = vmatprep.subr.msk.mxu0 %vm499_vm0, %v9468_v26 }
  0x31   : > { %11902 = vst [vmem:[#allocation54_spill] sm:$0xff] %v9458_v54  ;;  %11903 = vst [vmem:[#allocation55_spill] sm:$0xff] %v9463_v34  ;;  %v9482_v32 = vsel %vm351_vm1, %v3339_v51, %v3341_v48  ;;  %v3349_v48 = vrot.slane %v9463_v34, 1  ;;  %v9505_v51 = vld [vmem:[%s9075_s10 + $0xf0] sm:$0xff]  ;;  %7966 = vmatprep.subr.msk.mxu1 %vm499_vm0, %v9468_v26  ;;  %v9522_v9 = vld [vmem:[%s11566_s1 + $0x128] sm:$0xff]  ;;  %v400_v34 = vrot.slane %v9490_v4, 1 }
  0x32   : > { %7437 = vmatmul.mubr.msk.f32.gmra.mrb[12].mxu0 %vm434_vm2, %v9420_v7  ;;  %v9475_v7 = vsel %vm351_vm1, %v388_v33, %v390_v11  ;;  %11905 = vst [vmem:[#allocation57_spill] sm:$0xff] %v9482_v32  ;;  %11907 = vst [vmem:[#allocation59_spill] sm:$0xff] %v9490_v4  ;;  %v9495_v33 = vsel %vm351_vm1, %v3343_v43, %v3344_v38  ;;  %v3348_v11 = vrot.slane %v9458_v54, 1  ;;  %v9517_v43 = vld [vmem:[%s11566_s1 + $0x120] sm:$0xff]  ;;  %v9567_v4 = vld [vmem:[%s11566_s1 + $0x138] sm:$0xff] }
  0x33   : > { %7893 = vmatmul.mubr.msk.f32.gmra.mrb[16].mxu1 %vm434_vm2, %v9423_v13  ;;  %7439 = vmatprep.mubr.msk.f32.mxu0 %vm434_vm2, %v9432_v52  ;;  %11904 = vst [vmem:[#allocation56_spill] sm:$0xff] %v9475_v7  ;;  %v9485_v13 = vsel %vm351_vm1, %v392_v44, %v393_v16  ;;  %v398_v52 = vrot.slane %v9451_v14, 1  ;;  %11908 = vst [vmem:[#allocation60_spill] sm:$0xff] %v9495_v33  ;;  %v9502_v44 = vld [vmem:[%s11566_s1 + $0x118] sm:$0x3]  ;;  %v9532_v53 = vsel %vm351_vm1, %v3344_v38, %v3346_v19 }
  0x34   : > { %7895 = vmatprep.mubr.msk.f32.mxu1 %vm434_vm2, %v9443_v35  ;;  %11906 = vst [vmem:[#allocation58_spill] sm:$0xff] %v9485_v13  ;;  %11909 = vst [vmem:[#allocation61_spill] sm:$0xff] %v9502_v44  ;;  %v9508_v35 = vld [vmem:[%s9075_s10 + $0xf8] sm:$0xff]  ;;  %v9536_v14 = vld [vmem:[%s9075_s10 + $0x100] sm:$0x3]  ;;  %v9552_v38 = vsel %vm351_vm1, %v3348_v11, %v3349_v48 }
  0x35   : > { %11910 = vst [vmem:[#allocation62_spill] sm:$0xff] %v9505_v51  ;;  %11911 = vst [vmem:[#allocation63_spill] sm:$0xff] %v9508_v35  ;;  %v9541_v54 = vsel %vm351_vm1, %v397_v12, %v398_v52  ;;  %v9549_v19 = vld [vmem:[%s11566_s1 + $0x130] sm:$0x3]  ;;  %v9557_v12 = vld [vmem:[%s9075_s10 + $0x108] sm:$0xff] }
  0x36   : > { %7440 = vmatmul.mubr.msk.f32.gmra.mrb[14].mxu0 %vm434_vm2, %v9475_v7  ;;  %11912 = vst [vmem:[#allocation64_spill] sm:$0xff] %v9517_v43  ;;  %11913 = vst [vmem:[#allocation65_spill] sm:$0xff] %v9522_v9  ;;  %v9529_v7 = vsel %vm351_vm1, %v393_v16, %v395_v45  ;;  %v403_v45 = vrot.slane %v9508_v35, 1  ;;  %v3353_v16 = vrot.slane %v9517_v43, 1  ;;  %v9572_v11 = vld [vmem:[%s11566_s1 + $0x140] sm:$0xff]  ;;  %v3356_v35 = vrot.slane %v9549_v19, 1 }
  0x37   : > { %7896 = vmatmul.mubr.msk.f32.gmra.mrb[18].mxu1 %vm434_vm2, %v9482_v32  ;;  %7442 = vmatprep.mubr.msk.f32.mxu0 %vm434_vm2, %v9485_v13  ;;  %11914 = vst [vmem:[#allocation66_spill] sm:$0xff] %v9529_v7  ;;  %11915 = vst [vmem:[#allocation67_spill] sm:$0xff] %v9532_v53  ;;  %v3351_v32 = vrot.slane %v9502_v44, 1  ;;  %v402_v13 = vrot.slane %v9505_v51, 1  ;;  %v9560_v44 = vld [vmem:[%s9075_s10 + $0x110] sm:$0xff] }
  0x38   : > { %11916 = vst [vmem:[#allocation68_spill] sm:$0xff] %v9536_v14  ;;  %7898 = vmatprep.mubr.msk.f32.mxu1 %vm434_vm2, %v9495_v33  ;;  %11917 = vst [vmem:[#allocation69_spill] sm:$0xff] %v9541_v54  ;;  %v3354_v33 = vrot.slane %v9522_v9, 1  ;;  %v405_v9 = vrot.slane %v9536_v14, 1  ;;  %v9622_v14 = vld [vmem:[%s11566_s1 + $0x158] sm:$0xff] }
  0x39   : > { %11918 = vst [vmem:[#allocation70_spill] sm:$0xff] %v9549_v19  ;;  %11919 = vst [vmem:[#allocation71_spill] sm:$0xff] %v9552_v38  ;;  %v9586_v43 = vsel %vm351_vm1, %v3349_v48, %v3351_v32  ;;  %v9589_v51 = vsel %vm351_vm1, %v402_v13, %v403_v45  ;;  %v3358_v19 = vrot.slane %v9567_v4, 1  ;;  %v9604_v32 = vld [vmem:[%s11566_s1 + $0x148] sm:$0x3]  ;;  %v9607_v13 = vld [vmem:[%s9075_s10 + $0x120] sm:$0xff] }
  0x3a   : > { %11920 = vst [vmem:[#allocation72_spill] sm:$0xff] %v9557_v12  ;;  %11921 = vst [vmem:[#allocation73_spill] sm:$0xff] %v9560_v44  ;;  %7443 = vmatmul.mubr.msk.f32.gmra.mrb[16].mxu0 %vm434_vm2, %v9529_v7  ;;  %v9579_v7 = vsel %vm351_vm1, %v398_v52, %v400_v34  ;;  %v9594_v52 = vld [vmem:[%s9075_s10 + $0x118] sm:$0x3]  ;;  %v9597_v34 = vsel %vm351_vm1, %v3353_v16, %v3354_v33  ;;  %v9610_v48 = vld [vmem:[%s9075_s10 + $0x128] sm:$0xff] }
  0x3b   : > { %11922 = vst [vmem:[#allocation74_spill] sm:$0xff] %v9567_v4  ;;  %11923 = vst [vmem:[#allocation75_spill] sm:$0xff] %v9572_v11  ;;  %7899 = vmatmul.mubr.msk.f32.gmra.mrb[20].mxu1 %vm434_vm2, %v9532_v53  ;;  %7445 = vmatprep.mubr.msk.f32.mxu0 %vm434_vm2, %v9541_v54  ;;  %v407_v53 = vrot.slane %v9557_v12, 1  ;;  %v408_v54 = vrot.slane %v9560_v44, 1  ;;  %v9617_v16 = vld [vmem:[%s11566_s1 + $0x150] sm:$0xff]  ;;  %v410_v44 = vrot.slane %v9594_v52, 1 }
  0x3c   : > { %11924 = vst [vmem:[#allocation76_spill] sm:$0xff] %v9579_v7  ;;  %7901 = vmatprep.mubr.msk.f32.mxu1 %vm434_vm2, %v9552_v38  ;;  %11925 = vst [vmem:[#allocation77_spill] sm:$0xff] %v9586_v43  ;;  %v3359_v38 = vrot.slane %v9572_v11, 1  ;;  %v9632_v11 = vsel %vm351_vm1, %v3354_v33, %v3356_v35  ;;  %v9636_v4 = vld [vmem:[%s9075_s10 + $0x130] sm:$0x3] }
  0x3d   : > { %11926 = vst [vmem:[#allocation78_spill] sm:$0xff] %v9589_v51  ;;  %11927 = vst [vmem:[#allocation79_spill] sm:$0xff] %v9594_v52  ;;  %v9641_v12 = vsel %vm351_vm1, %v407_v53, %v408_v54  ;;  %v9649_v35 = vld [vmem:[%s11566_s1 + $0x160] sm:$0x3]  ;;  %v9657_v53 = vld [vmem:[%s9075_s10 + $0x138] sm:$0xff] }
  0x3e   : > { %11928 = vst [vmem:[#allocation80_spill] sm:$0xff] %v9597_v34  ;;  %11929 = vst [vmem:[#allocation81_spill] sm:$0xff] %v9604_v32  ;;  %7446 = vmatmul.mubr.msk.f32.gmra.mrb[18].mxu0 %vm434_vm2, %v9579_v7  ;;  %v9629_v7 = vsel %vm351_vm1, %v403_v45, %v405_v9  ;;  %v413_v9 = vrot.slane %v9610_v48, 1  ;;  %v9652_v33 = vsel %vm351_vm1, %v3358_v19, %v3359_v38  ;;  %v3363_v45 = vrot.slane %v9617_v16, 1  ;;  %v9667_v52 = vld [vmem:[%s11566_s1 + $0x168] sm:$0xff]  ;;  %v9672_v19 = vld [vmem:[%s11566_s1 + $0x170] sm:$0xff] }
  0x3f   : > { %11930 = vst [vmem:[#allocation82_spill] sm:$0xff] %v9607_v13  ;;  %11931 = vst [vmem:[#allocation83_spill] sm:$0xff] %v9610_v48  ;;  %7902 = vmatmul.mubr.msk.f32.gmra.mrb[22].mxu1 %vm434_vm2, %v9586_v43  ;;  %7448 = vmatprep.mubr.msk.f32.mxu0 %vm434_vm2, %v9589_v51  ;;  %v3361_v43 = vrot.slane %v9604_v32, 1  ;;  %v412_v51 = vrot.slane %v9607_v13, 1  ;;  %v9660_v32 = vld [vmem:[%s9075_s10 + $0x140] sm:$0xff]  ;;  %v3366_v48 = vrot.slane %v9649_v35, 1 }
  0x40   : > { %11932 = vst [vmem:[#allocation84_spill] sm:$0xff] %v9617_v16  ;;  %11933 = vst [vmem:[#allocation85_spill] sm:$0xff] %v9622_v14  ;;  %7904 = vmatprep.mubr.msk.f32.mxu1 %vm434_vm2, %v9597_v34  ;;  %v3364_v34 = vrot.slane %v9622_v14, 1  ;;  %v415_v14 = vrot.slane %v9636_v4, 1  ;;  %v9694_v55 = vld [vmem:[%s9075_s10 + $0x148] sm:$0x3] }
  0x41   : > { %11934 = vst [vmem:[#allocation86_spill] sm:$0xff] %v9629_v7  ;;  %11935 = vst [vmem:[#allocation87_spill] sm:$0xff] %v9632_v11  ;;  %v9686_v16 = vsel %vm351_vm1, %v3359_v38, %v3361_v43  ;;  %v9689_v13 = vsel %vm351_vm1, %v412_v51, %v413_v9  ;;  %v9704_v43 = vld [vmem:[%s11566_s1 + $0x178] sm:$0x3]  ;;  %v9707_v51 = vld [vmem:[%s9075_s10 + $0x150] sm:$0xff] }
  0x42   : > { %11936 = vst [vmem:[#allocation88_spill] sm:$0xff] %v9636_v4  ;;  %11937 = vst [vmem:[#allocation89_spill] sm:$0xff] %v9641_v12  ;;  %7449 = vmatmul.mubr.msk.f32.gmra.mrb[20].mxu0 %vm434_vm2, %v9629_v7  ;;  %v9679_v7 = vsel %vm351_vm1, %v408_v54, %v410_v44  ;;  %v9697_v54 = vsel %vm351_vm1, %v3363_v45, %v3364_v34  ;;  %v3368_v44 = vrot.slane %v9667_v52, 1  ;;  %v9710_v38 = vld [vmem:[%s9075_s10 + $0x158] sm:$0xff]  ;;  %v420_v4 = vrot.slane %v9694_v55, 1 }
  0x43   : > { %11938 = vst [vmem:[#allocation90_spill] sm:$0xff] %v9649_v35  ;;  %11939 = vst [vmem:[#allocation91_spill] sm:$0xff] %v9652_v33  ;;  %7905 = vmatmul.mubr.msk.f32.gmra.mrb[24].mxu1 %vm434_vm2, %v9632_v11  ;;  %7451 = vmatprep.mubr.msk.f32.mxu0 %vm434_vm2, %v9641_v12  ;;  %v417_v11 = vrot.slane %v9657_v53, 1  ;;  %v418_v12 = vrot.slane %v9660_v32, 1  ;;  %v9719_v45 = vsel %vm351_vm1, %v413_v9, %v415_v14  ;;  %v9734_v14 = vld [vmem:[%s9075_s10 + $0x160] sm:$0x3] }
  0x44   : > { %11940 = vst [vmem:[#allocation92_spill] sm:$0xff] %v9657_v53  ;;  %11941 = vst [vmem:[#allocation93_spill] sm:$0xff] %v9660_v32  ;;  %7907 = vmatprep.mubr.msk.f32.mxu1 %vm434_vm2, %v9652_v33  ;;  %v3369_v33 = vrot.slane %v9672_v19, 1  ;;  %v9722_v35 = vsel %vm351_vm1, %v3364_v34, %v3366_v48  ;;  %v9740_v48 = vld [vmem:[%s9075_s10 + $0x168] sm:$0xff]  ;;  %v9743_v9 = vld [vmem:[%s9075_s10 + $0x170] sm:$0xff] }
  0x45   : > { %11942 = vst [vmem:[#allocation94_spill] sm:$0xff] %v9667_v52  ;;  %11943 = vst [vmem:[#allocation95_spill] sm:$0xff] %v9672_v19  ;;  %v9728_v19 = vsel %vm351_vm1, %v417_v11, %v418_v12  ;;  %v9752_v11 = vsel %vm351_vm1, %v418_v12, %v420_v4 }
  0x46   : > { %11944 = vst [vmem:[#allocation96_spill] sm:$0xff] %v9679_v7  ;;  %11945 = vst [vmem:[#allocation97_spill] sm:$0xff] %v9686_v16  ;;  %7452 = vmatmul.mubr.msk.f32.gmra.mrb[22].mxu0 %vm434_vm2, %v9679_v7  ;;  %v3371_v7 = vrot.slane %v9704_v43, 1  ;;  %v9737_v34 = vsel %vm351_vm1, %v3368_v44, %v3369_v33 }
  0x47   : > { %11946 = vst [vmem:[#allocation98_spill] sm:$0xff] %v9689_v13  ;;  %11947 = vst [vmem:[#allocation99_spill] sm:$0xff] %v9694_v55  ;;  %7908 = vmatmul.mubr.msk.f32.gmra.mrb[26].mxu1 %vm434_vm2, %v9686_v16  ;;  %7454 = vmatprep.mubr.msk.f32.mxu0 %vm434_vm2, %v9689_v13  ;;  %v422_v16 = vrot.slane %v9707_v51, 1  ;;  %v423_v13 = vrot.slane %v9710_v38, 1  ;;  %v9766_v55 = vld [vmem:[%s9075_s10 + $0x178] sm:$0x3] }
  0x48   : > { %11948 = vst [vmem:[#allocation100_spill] sm:$0xff] %v9697_v54  ;;  %11949 = vst [vmem:[#allocation101_spill] sm:$0xff] %v9704_v43  ;;  %7910 = vmatprep.mubr.msk.f32.mxu1 %vm434_vm2, %v9697_v54  ;;  %v425_v54 = vrot.slane %v9734_v14, 1  ;;  %v9758_v44 = vsel %vm351_vm1, %v3369_v33, %v3371_v7  ;;  %v430_v7 = vrot.slane %v9766_v55, 1  ;;  %v11964_v33 = vld [vmem:[#allocation53_spill] sm:$0xff] }
  0x49   : > { %11950 = vst [vmem:[#allocation102_spill] sm:$0xff] %v9719_v45  ;;  %11951 = vst [vmem:[#allocation103_spill] sm:$0xff] %v9722_v35  ;;  %v9761_v43 = vsel %vm351_vm1, %v422_v16, %v423_v13  ;;  %v9788_v16 = vld [vmem:[%s11567_s2 + $0xc] sm:$0x7] }
  0x4a   : > { %11952 = vst [vmem:[#allocation104_spill] sm:$0xff] %v9728_v19  ;;  %11953 = vst [vmem:[#allocation105_spill] sm:$0xff] %v9734_v14  ;;  %7455 = vmatmul.mubr.msk.f32.gmra.mrb[24].mxu0 %vm434_vm2, %v9719_v45  ;;  %v427_v45 = vrot.slane %v9740_v48, 1  ;;  %v9775_v4 = vsel %vm351_vm1, %v423_v13, %v425_v54  ;;  %v11965_v54 = vld [vmem:[#allocation55_spill] sm:$0xff]  ;;  %v3952_v14 = vrot.slane %v8983_v2, 2 }
  0x4b   : > { %11954 = vst [vmem:[#allocation106_spill] sm:$0xff] %v9737_v34  ;;  %7911 = vmatmul.mubr.msk.f32.gmra.mrb[28].mxu1 %vm434_vm2, %v9722_v35  ;;  %7457 = vmatprep.mubr.msk.f32.mxu0 %vm434_vm2, %v9728_v19  ;;  %11955 = vst [vmem:[#allocation107_spill] sm:$0xff] %v9752_v11  ;;  %v428_v35 = vrot.slane %v9743_v9, 1  ;;  %v11975_v19 = vld [vmem:[#allocation84_spill] sm:$0xff] }
  0x4c   : > { %7913 = vmatprep.mubr.msk.f32.mxu1 %vm434_vm2, %v9737_v34  ;;  %11956 = vst [vmem:[#allocation108_spill] sm:$0xff] %v9758_v44  ;;  %11957 = vst [vmem:[#allocation109_spill] sm:$0xff] %v9761_v43  ;;  %v11974_v34 = vld [vmem:[#allocation82_spill] sm:$0xff] }
  0x4d   : > { %11958 = vst [vmem:[#allocation110_spill] sm:$0xff] %v9766_v55  ;;  %11959 = vst [vmem:[#allocation111_spill] sm:$0xff] %v9775_v4  ;;  %v9781_v12 = vsel %vm351_vm1, %v427_v45, %v428_v35  ;;  %v9795_v13 = vsel %vm351_vm1, %v428_v35, %v430_v7  ;;  %v11963_v35 = vld [vmem:[#allocation54_spill] sm:$0xff]  ;;  %v11967_v7 = vld [vmem:[#allocation64_spill] sm:$0xff]  ;;  %v3951_v55 = vrot.slane %v8977_v1, 2 }
  0x4e   : > { %7458 = vmatmul.mubr.msk.f32.gmra.mrb[26].mxu0 %vm434_vm2, %v9752_v11  ;;  %11960 = vst [vmem:[#allocation112_spill] sm:$0xff] %v9781_v12  ;;  %11961 = vst [vmem:[#allocation113_spill] sm:$0xff] %v9795_v13  ;;  %v11966_v45 = vld [vmem:[#allocation62_spill] sm:$0xff]  ;;  %v11973_v11 = vld [vmem:[#allocation75_spill] sm:$0xff] }
  0x4f   : > { %7914 = vmatmul.mubr.msk.f32.gmra.mrb[30].mxu1 %vm434_vm2, %v9758_v44  ;;  %7460 = vmatprep.mubr.msk.f32.mxu0 %vm434_vm2, %v9761_v43  ;;  %v11971_v43 = vld [vmem:[#allocation74_spill] sm:$0xff]  ;;  %v11972_v44 = vld [vmem:[#allocation73_spill] sm:$0xff] }
  0x50   : > { %7918 = vmatprep.mubr.msk.f32.mxu1 %vm434_vm2, %v8977_v1  ;;  %v3956_v1 = vrot.slane %v8994_v5, 2 }
  0x52   : > { %7461 = vmatmul.mubr.msk.f32.gmra.mrb[28].mxu0 %vm434_vm2, %v9775_v4  ;;  %v11970_v4 = vld [vmem:[#allocation72_spill] sm:$0xff] }
  0x53   : > { %7919 = vmatmul.mubr.msk.f32.vlgmr.msra.gmra.mrb[0].mxu1 %vm434_vm2, %v8983_v2  ;;  %7463 = vmatprep.mubr.msk.f32.mxu0 %vm434_vm2, %v9781_v12  ;;  %v11969_v12 = vld [vmem:[#allocation65_spill] sm:$0xff]  ;;  %v3957_v2 = vrot.slane %v9003_v8, 2 }
  0x54   : > { %7921 = vmatprep.mubr.msk.f32.mxu1 %vm434_vm2, %v8994_v5  ;;  %7967 = vmatpush3.msk.msra.mxu1 %vm499_vm0, %v9468_v26  ;;  %v1022_v5 = vrot.slane %v9088_v31, 2 }
  0x55   : > { %8016 = vmatprep.subr.msk.mxu1 %vm499_vm0, %v9788_v16 }
  0x56   : > { %7464 = vmatmul.mubr.msk.f32.gmra.mrb[30].mxu0 %vm434_vm2, %v9795_v13  ;;  %v11968_v13 = vld [vmem:[#allocation63_spill] sm:$0xff] }
  0x57   : > { %7922 = vmatmul.mubr.msk.f32.gmra.mrb[2].mxu1 %vm434_vm2, %v9003_v8  ;;  %7468 = vmatprep.mubr.msk.f32.mxu0 %vm434_vm2, %v9085_v30  ;;  %v9937_v8 = vsel %vm1020_vm3, %v3956_v1, %v3957_v2 }
  0x58   : > { %7924 = vmatprep.mubr.msk.f32.mxu1 %vm434_vm2, %v9010_v10 }
  0x5a   : > { %7469 = vmatmul.mubr.msk.f32.vlgmr.msra.gmra.mrb[0].mxu0 %vm434_vm2, %v9088_v31 }
  0x5b   : > { %7517 = vmatpush3.msk.msra.mxu0 %vm499_vm0, %v9468_v26  ;;  %7925 = vmatmul.mubr.msk.f32.gmra.mrb[4].mxu1 %vm434_vm2, %v9031_v17  ;;  %v11962_v26 = vld [vmem:[#allocation52_spill] sm:$0xff] }
  0x5c   : > { %7471 = vmatprep.mubr.msk.f32.mxu0 %vm434_vm2, %v9102_v39  ;;  %7927 = vmatprep.mubr.msk.f32.mxu1 %vm434_vm2, %v9042_v20  ;;  %11981 = vst [vmem:[#allocation52_spill] sm:$0xff] %v9937_v8 }
  0x5d   : > { %7566 = vmatprep.subr.msk.mxu0 %vm499_vm0, %v9788_v16 }
  0x5e   : > { %7472 = vmatmul.mubr.msk.f32.gmra.mrb[2].mxu0 %vm434_vm2, %v9105_v40 }
  0x5f   : > { %7928 = vmatmul.mubr.msk.f32.gmra.mrb[6].mxu1 %vm434_vm2, %v9053_v23  ;;  %7474 = vmatprep.mubr.msk.f32.mxu0 %vm434_vm2, %v9119_v46 }
  0x60   : > { %7930 = vmatprep.mubr.msk.f32.mxu1 %vm434_vm2, %v9058_v24 }
  0x62   : > { %7475 = vmatmul.mubr.msk.f32.gmra.mrb[4].mxu0 %vm434_vm2, %v9122_v47 }
  0x63   : > { %7931 = vmatmul.mubr.msk.f32.gmra.mrb[8].mxu1 %vm434_vm2, %v9082_v29  ;;  %7477 = vmatprep.mubr.msk.f32.mxu0 %vm434_vm2, %v9148_v58 }
  0x64   : > { %7933 = vmatprep.mubr.msk.f32.mxu1 %vm434_vm2, %v9157_v60 }
  0x66   : > { %7478 = vmatmul.mubr.msk.f32.gmra.mrb[6].mxu0 %vm434_vm2, %v9151_v59 }
  0x67   : > { %7934 = vmatmul.mubr.msk.f32.gmra.mrb[10].mxu1 %vm434_vm2, %v9162_v61  ;;  %7480 = vmatprep.mubr.msk.f32.mxu0 %vm434_vm2, %v9198_v18 }
  0x68   : > { %7936 = vmatprep.mubr.msk.f32.mxu1 %vm434_vm2, %v9208_v25 }
  0x6a   : > { %7481 = vmatmul.mubr.msk.f32.gmra.mrb[8].mxu0 %vm434_vm2, %v9201_v22 }
  0x6b   : > { %7937 = vmatmul.mubr.msk.f32.gmra.mrb[12].mxu1 %vm434_vm2, %v9213_v28  ;;  %7483 = vmatprep.mubr.msk.f32.mxu0 %vm434_vm2, %v9248_v56 }
  0x6c   : > { %7939 = vmatprep.mubr.msk.f32.mxu1 %vm434_vm2, %v9258_v63 }
  0x6e   : > { %7484 = vmatmul.mubr.msk.f32.gmra.mrb[10].mxu0 %vm434_vm2, %v9251_v57 }
  0x6f   : > { %7940 = vmatmul.mubr.msk.f32.gmra.mrb[14].mxu1 %vm434_vm2, %v9263_v0  ;;  %7486 = vmatprep.mubr.msk.f32.mxu0 %vm434_vm2, %v9298_v36 }
  0x70   : > { %7942 = vmatprep.mubr.msk.f32.mxu1 %vm434_vm2, %v9308_v50 }
  0x72   : > { %7487 = vmatmul.mubr.msk.f32.gmra.mrb[12].mxu0 %vm434_vm2, %v9301_v41 }
  0x73   : > { %7943 = vmatmul.mubr.msk.f32.gmra.mrb[16].mxu1 %vm434_vm2, %v9313_v62  ;;  %7489 = vmatprep.mubr.msk.f32.mxu0 %vm434_vm2, %v9348_v37 }
  0x74   : > { %7945 = vmatprep.mubr.msk.f32.mxu1 %vm434_vm2, %v9358_v21 }
  0x76   : > { %7490 = vmatmul.mubr.msk.f32.gmra.mrb[14].mxu0 %vm434_vm2, %v9351_v27 }
  0x77   : > { %7946 = vmatmul.mubr.msk.f32.gmra.mrb[18].mxu1 %vm434_vm2, %v9363_v3  ;;  %7492 = vmatprep.mubr.msk.f32.mxu0 %vm434_vm2, %v9398_v6 }
  0x78   : > { %7948 = vmatprep.mubr.msk.f32.mxu1 %vm434_vm2, %v9408_v15 }
  0x7a   : > { %7493 = vmatmul.mubr.msk.f32.gmra.mrb[16].mxu0 %vm434_vm2, %v9401_v49 }
  0x7b   : > { %7949 = vmatmul.mubr.msk.f32.gmra.mrb[20].mxu1 %vm434_vm2, %v9413_v42  ;;  %7495 = vmatprep.mubr.msk.f32.mxu0 %vm434_vm2, %v11962_v26 }
  0x7c   : > { %7951 = vmatprep.mubr.msk.f32.mxu1 %vm434_vm2, %v11963_v35 }
  0x7e   : > { %7496 = vmatmul.mubr.msk.f32.gmra.mrb[18].mxu0 %vm434_vm2, %v11964_v33 }
  0x7f   : > { %7952 = vmatmul.mubr.msk.f32.gmra.mrb[22].mxu1 %vm434_vm2, %v11965_v54  ;;  %7498 = vmatprep.mubr.msk.f32.mxu0 %vm434_vm2, %v11966_v45 }
  0x80   : > { %7954 = vmatprep.mubr.msk.f32.mxu1 %vm434_vm2, %v11967_v7 }
  0x82   : > { %7499 = vmatmul.mubr.msk.f32.gmra.mrb[20].mxu0 %vm434_vm2, %v11968_v13 }
  0x83   : > { %7955 = vmatmul.mubr.msk.f32.gmra.mrb[24].mxu1 %vm434_vm2, %v11969_v12  ;;  %7501 = vmatprep.mubr.msk.f32.mxu0 %vm434_vm2, %v11970_v4  ;;  %v11976_v4 = vld [vmem:[#allocation83_spill] sm:$0xff] }
  0x84   : > { %7957 = vmatprep.mubr.msk.f32.mxu1 %vm434_vm2, %v11971_v43  ;;  %v11977_v43 = vld [vmem:[#allocation85_spill] sm:$0xff] }
  0x86   : > { %7502 = vmatmul.mubr.msk.f32.gmra.mrb[22].mxu0 %vm434_vm2, %v11972_v44 }
  0x87   : > { %7958 = vmatmul.mubr.msk.f32.gmra.mrb[26].mxu1 %vm434_vm2, %v11973_v11  ;;  %7504 = vmatprep.mubr.msk.f32.mxu0 %vm434_vm2, %v11974_v34  ;;  %v11978_v11 = vld [vmem:[#allocation2_spill] sm:$0xff] }
  0x88   : > { %7960 = vmatprep.mubr.msk.f32.mxu1 %vm434_vm2, %v11975_v19  ;;  %v3954_v44 = vrot.slane %v11978_v11, 2  ;;  %v3953_v19 = vsel %vm1020_vm3, %v3951_v55, %v3952_v14  ;;  %v1021_v55 = vrot.slane %v9085_v30, 2  ;;  %v11983_v30 = vld [vmem:[#allocation4_spill] sm:$0xff] }
  0x89   : > { %v3964_v31 = vrot.slane %v11983_v30, 2 }
  0x8a   : > { %7505 = vmatmul.mubr.msk.f32.gmra.mrb[24].mxu0 %vm434_vm2, %v11976_v4  ;;  %v11979_v4 = vld [vmem:[#allocation95_spill] sm:$0xff]  ;;  %v3955_v11 = vsel %vm1020_vm3, %v3952_v14, %v3954_v44  ;;  %v1026_v44 = vrot.slane %v9102_v39, 2 }
  0x8b   : > { %7961 = vmatmul.mubr.msk.f32.gmra.mrb[28].mxu1 %vm434_vm2, %v11977_v43  ;;  %7507 = vmatprep.mubr.msk.f32.mxu0 %vm434_vm2, %v9657_v53 }
  0x8c   : > { %7963 = vmatprep.mubr.msk.f32.mxu1 %vm434_vm2, %v9667_v52  ;;  %v11980_v52 = vld [vmem:[#allocation3_spill] sm:$0xff] }
  0x8d   : > { %v3959_v53 = vrot.slane %v11980_v52, 2  ;;  %v11982_v52 = vld [vmem:[#allocation8_spill] sm:$0xff] }
  0x8e   : > { %7508 = vmatmul.mubr.msk.f32.gmra.mrb[26].mxu0 %vm434_vm2, %v9660_v32  ;;  %v3961_v32 = vrot.slane %v9010_v10, 2  ;;  %v1024_v14 = vrot.slane %v11982_v52, 2  ;;  %v3966_v52 = vrot.slane %v9042_v20, 2 }
  0x8f   : > { %7964 = vmatmul.mubr.msk.f32.gmra.mrb[30].mxu1 %vm434_vm2, %v11979_v4  ;;  %7510 = vmatprep.mubr.msk.f32.mxu0 %vm434_vm2, %v9707_v51  ;;  %v3962_v4 = vrot.slane %v9031_v17, 2  ;;  %v9955_v10 = vsel %vm1020_vm3, %v3957_v2, %v3959_v53  ;;  %v1023_v17 = vsel %vm1020_vm3, %v1021_v55, %v1022_v5  ;;  %v1031_v2 = vrot.slane %v9119_v46, 2 }
  0x90   : > { %7968 = vmatprep.mubr.msk.f32.mxu1 %vm434_vm2, %v3953_v19  ;;  %v9946_v19 = vld [vmem:[%s11567_s2 + $0x10] sm:$0x7]  ;;  %v1025_v39 = vsel %vm1020_vm3, %v1022_v5, %v1024_v14  ;;  %v1032_v55 = vrot.slane %v9122_v47, 2  ;;  %v3971_v5 = vrot.slane %v9058_v24, 2  ;;  %v3972_v14 = vrot.slane %v9082_v29, 2 }
  0x91   : > { %v9963_v1 = vsel %vm1020_vm3, %v3961_v32, %v3962_v4  ;;  %v11984_v32 = vld [vmem:[#allocation11_spill] sm:$0xff]  ;;  %v9980_v20 = vsel %vm1020_vm3, %v3962_v4, %v3964_v31  ;;  %v11986_v47 = vld [vmem:[#allocation12_spill] sm:$0xff]  ;;  %v11987_v31 = vld [vmem:[#allocation13_spill] sm:$0xff] }
  0x92   : > { %7511 = vmatmul.mubr.msk.f32.gmra.mrb[28].mxu0 %vm434_vm2, %v9710_v38  ;;  %v1029_v53 = vrot.slane %v11984_v32, 2  ;;  %v1034_v4 = vrot.slane %v11986_v47, 2  ;;  %v10011_v29 = vsel %vm1020_vm3, %v1031_v2, %v1032_v55  ;;  %v3977_v32 = vrot.slane %v9162_v61, 2 }
  0x93   : > { %7969 = vmatmul.mubr.msk.f32.vlgmr.msra.gmra.mrb[0].mxu1 %vm434_vm2, %v3955_v11  ;;  %7513 = vmatprep.mubr.msk.f32.mxu0 %vm434_vm2, %v9740_v48  ;;  %v1027_v11 = vrot.slane %v9105_v40, 2  ;;  %v1042_v2 = vrot.slane %v9201_v22, 2  ;;  %v11990_v22 = vld [vmem:[#allocation25_spill] sm:$0xff] }
  0x94   : > { %7971 = vmatprep.mubr.msk.f32.mxu1 %vm434_vm2, %v9937_v8  ;;  %8017 = vmatpush3.msk.msra.mxu1 %vm499_vm0, %v9788_v16  ;;  %v3967_v8 = vrot.slane %v9053_v23, 2  ;;  %v11985_v23 = vld [vmem:[#allocation6_spill] sm:$0xff]  ;;  %v1044_v47 = vrot.slane %v11990_v22, 2 }
  0x95   : > { %8066 = vmatprep.subr.msk.mxu1 %vm499_vm0, %v9946_v19  ;;  %v3969_v40 = vrot.slane %v11985_v23, 2  ;;  %v9986_v30 = vsel %vm1020_vm3, %v1026_v44, %v1027_v11  ;;  %v9999_v46 = vsel %vm1020_vm3, %v1027_v11, %v1029_v53  ;;  %v3974_v44 = vrot.slane %v11987_v31, 2  ;;  %v11989_v53 = vld [vmem:[#allocation20_spill] sm:$0xff] }
  0x96   : > { %7514 = vmatmul.mubr.msk.f32.gmra.mrb[30].mxu0 %vm434_vm2, %v9743_v9  ;;  %v1037_v11 = vrot.slane %v9151_v59, 2  ;;  %v3979_v23 = vrot.slane %v11989_v53, 2 }
  0x97   : > { %7972 = vmatmul.mubr.msk.f32.gmra.mrb[2].mxu1 %vm434_vm2, %v9955_v10  ;;  %7518 = vmatprep.mubr.msk.f32.mxu0 %vm434_vm2, %v1023_v17  ;;  %v9989_v17 = vsel %vm1020_vm3, %v3966_v52, %v3967_v8  ;;  %v10008_v24 = vsel %vm1020_vm3, %v3967_v8, %v3969_v40  ;;  %v10016_v52 = vsel %vm1020_vm3, %v3971_v5, %v3972_v14  ;;  %v1041_v40 = vrot.slane %v9198_v18, 2 }
  0x98   : > { %7974 = vmatprep.mubr.msk.f32.mxu1 %vm434_vm2, %v9963_v1  ;;  %v10032_v59 = vsel %vm1020_vm3, %v3972_v14, %v3974_v44  ;;  %v3981_v5 = vrot.slane %v9208_v25, 2  ;;  %v3982_v14 = vrot.slane %v9213_v28, 2  ;;  %v10062_v25 = vsel %vm1020_vm3, %v3977_v32, %v3979_v23 }
  0x99   : > { %v10065_v28 = vsel %vm1020_vm3, %v1041_v40, %v1042_v2  ;;  %v1046_v44 = vrot.slane %v9248_v56, 2  ;;  %v10081_v56 = vsel %vm1020_vm3, %v1042_v2, %v1044_v47  ;;  %v1051_v23 = vrot.slane %v9298_v36, 2  ;;  %v12001_v47 = vld [vmem:[#allocation38_spill] sm:$0xff] }
  0x9a   : > { %7519 = vmatmul.mubr.msk.f32.vlgmr.msra.gmra.mrb[0].mxu0 %vm434_vm2, %v1025_v39  ;;  %v3976_v39 = vrot.slane %v9157_v60, 2  ;;  %v11988_v60 = vld [vmem:[#allocation19_spill] sm:$0xff]  ;;  %11993 = vst [vmem:[#allocation53_spill] sm:$0xff] %v10081_v56  ;;  %v1052_v40 = vrot.slane %v9301_v41, 2  ;;  %v12000_v41 = vld [vmem:[#allocation36_spill] sm:$0xff] }
  0x9b   : > { %7567 = vmatpush3.msk.msra.mxu0 %vm499_vm0, %v9788_v16  ;;  %7975 = vmatmul.mubr.msk.f32.gmra.mrb[4].mxu1 %vm434_vm2, %v9980_v20  ;;  %v1036_v16 = vrot.slane %v9148_v58, 2  ;;  %v10029_v58 = vsel %vm1020_vm3, %v1032_v55, %v1034_v4  ;;  %v1039_v61 = vrot.slane %v11988_v60, 2  ;;  %v11991_v4 = vld [vmem:[#allocation26_spill] sm:$0xff]  ;;  %v3987_v60 = vrot.slane %v9263_v0, 2  ;;  %v11997_v0 = vld [vmem:[#allocation33_spill] sm:$0xff] }
  0x9c   : > { %7521 = vmatprep.mubr.msk.f32.mxu0 %vm434_vm2, %v9986_v30  ;;  %7977 = vmatprep.mubr.msk.f32.mxu1 %vm434_vm2, %v9989_v17  ;;  %v10044_v55 = vsel %vm1020_vm3, %v3976_v39, %v3977_v32  ;;  %v3984_v31 = vrot.slane %v11991_v4, 2  ;;  %v3986_v39 = vrot.slane %v9258_v63, 2  ;;  %v11995_v32 = vld [vmem:[#allocation31_spill] sm:$0xff]  ;;  %v3989_v53 = vrot.slane %v11997_v0, 2  ;;  %v12009_v0 = vld [vmem:[#allocation45_spill] sm:$0xff] }
  0x9d   : > { %7616 = vmatprep.subr.msk.mxu0 %vm499_vm0, %v9946_v19  ;;  %v10038_v8 = vsel %vm1020_vm3, %v1036_v16, %v1037_v11  ;;  %v10055_v18 = vsel %vm1020_vm3, %v1037_v11, %v1039_v61  ;;  %v1047_v16 = vrot.slane %v9251_v57, 2  ;;  %v10070_v11 = vsel %vm1020_vm3, %v3981_v5, %v3982_v14 }
  0x9e   : > { %7522 = vmatmul.mubr.msk.f32.gmra.mrb[2].mxu0 %vm434_vm2, %v9999_v46  ;;  %11992 = vst [vmem:[#allocation54_spill] sm:$0xff] %v10070_v11  ;;  %v10084_v57 = vsel %vm1020_vm3, %v3982_v14, %v3984_v31  ;;  %v1049_v61 = vrot.slane %v11995_v32, 2  ;;  %v10096_v2 = vsel %vm1020_vm3, %v3986_v39, %v3987_v60  ;;  %v3991_v5 = vrot.slane %v9308_v50, 2 }
  0x9f   : > { %7978 = vmatmul.mubr.msk.f32.gmra.mrb[6].mxu1 %vm434_vm2, %v10008_v24  ;;  %7524 = vmatprep.mubr.msk.f32.mxu0 %vm434_vm2, %v10011_v29  ;;  %11994 = vst [vmem:[#allocation55_spill] sm:$0xff] %v10084_v57  ;;  %v10090_v63 = vsel %vm1020_vm3, %v1046_v44, %v1047_v16  ;;  %11998 = vst [vmem:[#allocation64_spill] sm:$0xff] %v10096_v2  ;;  %v3992_v14 = vrot.slane %v9313_v62, 2  ;;  %v1054_v22 = vrot.slane %v12000_v41, 2  ;;  %v3994_v4 = vrot.slane %v12001_v47, 2  ;;  %v12012_v47 = vld [vmem:[#allocation48_spill] sm:$0xff] }
  0xa0   : > { %7980 = vmatprep.mubr.msk.f32.mxu1 %vm434_vm2, %v10016_v52  ;;  %11996 = vst [vmem:[#allocation62_spill] sm:$0xff] %v10090_v63  ;;  %v10107_v36 = vsel %vm1020_vm3, %v1047_v16, %v1049_v61  ;;  %v10114_v62 = vsel %vm1020_vm3, %v3987_v60, %v3989_v53  ;;  %v10117_v50 = vsel %vm1020_vm3, %v1051_v23, %v1052_v40  ;;  %v1056_v31 = vrot.slane %v9348_v37, 2  ;;  %v12007_v60 = vld [vmem:[#allocation43_spill] sm:$0xff] }
  0xa1   : > { %11999 = vst [vmem:[#allocation63_spill] sm:$0xff] %v10107_v36  ;;  %12002 = vst [vmem:[#allocation65_spill] sm:$0xff] %v10114_v62  ;;  %v1057_v44 = vrot.slane %v9351_v27, 2  ;;  %v10122_v16 = vsel %vm1020_vm3, %v3991_v5, %v3992_v14  ;;  %v3996_v39 = vrot.slane %v9358_v21, 2  ;;  %v3997_v32 = vrot.slane %v9363_v3, 2 }
  0xa2   : > { %7525 = vmatmul.mubr.msk.f32.gmra.mrb[4].mxu0 %vm434_vm2, %v10029_v58  ;;  %12003 = vst [vmem:[#allocation82_spill] sm:$0xff] %v10117_v50  ;;  %12004 = vst [vmem:[#allocation85_spill] sm:$0xff] %v10122_v16  ;;  %v10133_v37 = vsel %vm1020_vm3, %v1052_v40, %v1054_v22  ;;  %v10136_v27 = vsel %vm1020_vm3, %v3992_v14, %v3994_v4  ;;  %v1059_v61 = vrot.slane %v12007_v60, 2  ;;  %v3999_v53 = vrot.slane %v12009_v0, 2 }
  0xa3   : > { %7981 = vmatmul.mubr.msk.f32.gmra.mrb[8].mxu1 %vm434_vm2, %v10032_v59  ;;  %7527 = vmatprep.mubr.msk.f32.mxu0 %vm434_vm2, %v10038_v8  ;;  %12005 = vst [vmem:[#allocation2_spill] sm:$0xff] %v10133_v37  ;;  %12006 = vst [vmem:[#allocation3_spill] sm:$0xff] %v10136_v27  ;;  %v10142_v3 = vsel %vm1020_vm3, %v1056_v31, %v1057_v44  ;;  %v1061_v23 = vrot.slane %v9398_v6, 2  ;;  %v1062_v5 = vrot.slane %v9401_v49, 2  ;;  %v4001_v14 = vrot.slane %v9408_v15, 2  ;;  %v12013_v31 = vld [vmem:[#allocation50_spill] sm:$0xff] }
  0xa4   : > { %7983 = vmatprep.mubr.msk.f32.mxu1 %vm434_vm2, %v10044_v55  ;;  %12008 = vst [vmem:[#allocation8_spill] sm:$0xff] %v10142_v3  ;;  %v10148_v40 = vsel %vm1020_vm3, %v3996_v39, %v3997_v32  ;;  %v4002_v41 = vrot.slane %v9413_v42, 2  ;;  %v10159_v22 = vsel %vm1020_vm3, %v1057_v44, %v1059_v61  ;;  %v1064_v4 = vrot.slane %v12012_v47, 2 }
  0xa5   : > { %12010 = vst [vmem:[#allocation4_spill] sm:$0xff] %v10148_v40  ;;  %12011 = vst [vmem:[#allocation11_spill] sm:$0xff] %v10159_v22  ;;  %v4004_v39 = vrot.slane %v12013_v31, 2  ;;  %v10166_v60 = vsel %vm1020_vm3, %v3997_v32, %v3999_v53  ;;  %v10169_v0 = vsel %vm1020_vm3, %v1061_v23, %v1062_v5  ;;  %v4006_v61 = vrot.slane %v11963_v35, 2  ;;  %v12019_v23 = vld [vmem:[#allocation59_spill] sm:$0xff] }
  0xa6   : > { %7528 = vmatmul.mubr.msk.f32.gmra.mrb[6].mxu0 %vm434_vm2, %v10055_v18  ;;  %12014 = vst [vmem:[#allocation6_spill] sm:$0xff] %v10166_v60  ;;  %12015 = vst [vmem:[#allocation12_spill] sm:$0xff] %v10169_v0  ;;  %v10174_v44 = vsel %vm1020_vm3, %v4001_v14, %v4002_v41  ;;  %v4007_v47 = vrot.slane %v11965_v54, 2  ;;  %v10185_v32 = vsel %vm1020_vm3, %v1062_v5, %v1064_v4  ;;  %v1069_v14 = vrot.slane %v12019_v23, 2 }
  0xa7   : > { %7984 = vmatmul.mubr.msk.f32.gmra.mrb[10].mxu1 %vm434_vm2, %v10062_v25  ;;  %7530 = vmatprep.mubr.msk.f32.mxu0 %vm434_vm2, %v10065_v28  ;;  %12016 = vst [vmem:[#allocation13_spill] sm:$0xff] %v10174_v44  ;;  %12017 = vst [vmem:[#allocation19_spill] sm:$0xff] %v10185_v32  ;;  %v10188_v53 = vsel %vm1020_vm3, %v4002_v41, %v4004_v39  ;;  %v4011_v41 = vrot.slane %v11967_v7, 2  ;;  %v4012_v4 = vrot.slane %v11969_v12, 2 }
  0xa8   : > { %7986 = vmatprep.mubr.msk.f32.mxu1 %vm434_vm2, %v10070_v11  ;;  %12018 = vst [vmem:[#allocation20_spill] sm:$0xff] %v10188_v53  ;;  %v10200_v5 = vsel %vm1020_vm3, %v4006_v61, %v4007_v47  ;;  %v12025_v61 = vld [vmem:[#allocation70_spill] sm:$0xff] }
  0xa9   : > { %12022 = vst [vmem:[#allocation26_spill] sm:$0xff] %v10200_v5  ;;  %v4014_v23 = vrot.slane %v12025_v61, 2 }
  0xaa   : > { %7531 = vmatmul.mubr.msk.f32.gmra.mrb[8].mxu0 %vm434_vm2, %v10081_v56  ;;  %v12050_v56 = vld [vmem:[#allocation95_spill] sm:$0xff] }
  0xab   : > { %7987 = vmatmul.mubr.msk.f32.gmra.mrb[12].mxu1 %vm434_vm2, %v10084_v57  ;;  %7533 = vmatprep.mubr.msk.f32.mxu0 %vm434_vm2, %v10090_v63  ;;  %v12047_v57 = vld [vmem:[#allocation93_spill] sm:$0xff] }
  0xac   : > { %7989 = vmatprep.mubr.msk.f32.mxu1 %vm434_vm2, %v10096_v2 }
  0xae   : > { %7534 = vmatmul.mubr.msk.f32.gmra.mrb[10].mxu0 %vm434_vm2, %v10107_v36  ;;  %v12038_v36 = vld [vmem:[#allocation83_spill] sm:$0xff] }
  0xaf   : > { %7990 = vmatmul.mubr.msk.f32.gmra.mrb[14].mxu1 %vm434_vm2, %v10114_v62  ;;  %7536 = vmatprep.mubr.msk.f32.mxu0 %vm434_vm2, %v10117_v50  ;;  %v12032_v50 = vld [vmem:[#allocation75_spill] sm:$0xff] }
  0xb0   : > { %7992 = vmatprep.mubr.msk.f32.mxu1 %vm434_vm2, %v10122_v16  ;;  %v12029_v16 = vld [vmem:[#allocation73_spill] sm:$0xff]  ;;  %v4017_v61 = vrot.slane %v12032_v50, 2 }
  0xb2   : > { %7537 = vmatmul.mubr.msk.f32.gmra.mrb[12].mxu0 %vm434_vm2, %v10133_v37 }
  0xb3   : > { %7993 = vmatmul.mubr.msk.f32.gmra.mrb[16].mxu1 %vm434_vm2, %v10136_v27  ;;  %7539 = vmatprep.mubr.msk.f32.mxu0 %vm434_vm2, %v10142_v3  ;;  %v1066_v27 = vrot.slane %v11962_v26, 2  ;;  %v1067_v3 = vrot.slane %v11964_v33, 2 }
  0xb4   : > { %7995 = vmatprep.mubr.msk.f32.mxu1 %vm434_vm2, %v10148_v40 }
  0xb5   : > { %v10194_v31 = vsel %vm1020_vm3, %v1066_v27, %v1067_v3  ;;  %v10211_v27 = vsel %vm1020_vm3, %v1067_v3, %v1069_v14  ;;  %v10226_v3 = vsel %vm1020_vm3, %v4011_v41, %v4012_v4  ;;  %v12031_v14 = vld [vmem:[#allocation74_spill] sm:$0xff] }
  0xb6   : > { %7540 = vmatmul.mubr.msk.f32.gmra.mrb[14].mxu0 %vm434_vm2, %v10159_v22  ;;  %12020 = vst [vmem:[#allocation25_spill] sm:$0xff] %v10194_v31  ;;  %v12021_v22 = vld [vmem:[#allocation61_spill] sm:$0xff]  ;;  %12023 = vst [vmem:[#allocation31_spill] sm:$0xff] %v10211_v27 }
  0xb7   : > { %7996 = vmatmul.mubr.msk.f32.gmra.mrb[18].mxu1 %vm434_vm2, %v10166_v60  ;;  %7542 = vmatprep.mubr.msk.f32.mxu0 %vm434_vm2, %v10169_v0  ;;  %v4009_v40 = vrot.slane %v12021_v22, 2  ;;  %v1071_v60 = vrot.slane %v11966_v45, 2  ;;  %v1072_v0 = vrot.slane %v11968_v13, 2  ;;  %v12024_v22 = vld [vmem:[#allocation68_spill] sm:$0xff]  ;;  %12030 = vst [vmem:[#allocation38_spill] sm:$0xff] %v10226_v3 }
  0xb8   : > { %7998 = vmatprep.mubr.msk.f32.mxu1 %vm434_vm2, %v10174_v44  ;;  %v1074_v39 = vrot.slane %v12024_v22, 2  ;;  %v4016_v22 = vrot.slane %v12031_v14, 2 }
  0xb9   : > { %v10218_v44 = vsel %vm1020_vm3, %v4007_v47, %v4009_v40  ;;  %v12035_v47 = vld [vmem:[#allocation79_spill] sm:$0xff] }
  0xba   : > { %7543 = vmatmul.mubr.msk.f32.gmra.mrb[16].mxu0 %vm434_vm2, %v10185_v32  ;;  %12026 = vst [vmem:[#allocation33_spill] sm:$0xff] %v10218_v44  ;;  %v10221_v32 = vsel %vm1020_vm3, %v1071_v60, %v1072_v0  ;;  %v10237_v40 = vsel %vm1020_vm3, %v1072_v0, %v1074_v39  ;;  %v10240_v60 = vsel %vm1020_vm3, %v4012_v4, %v4014_v23  ;;  %v1079_v41 = vrot.slane %v12035_v47, 2  ;;  %v12040_v39 = vld [vmem:[#allocation84_spill] sm:$0xff] }
  0xbb   : > { %7999 = vmatmul.mubr.msk.f32.gmra.mrb[20].mxu1 %vm434_vm2, %v10188_v53  ;;  %7545 = vmatprep.mubr.msk.f32.mxu0 %vm434_vm2, %v10194_v31  ;;  %12027 = vst [vmem:[#allocation36_spill] sm:$0xff] %v10221_v32  ;;  %v12028_v53 = vld [vmem:[#allocation72_spill] sm:$0xff]  ;;  %v1077_v31 = vrot.slane %v12029_v16, 2  ;;  %12033 = vst [vmem:[#allocation43_spill] sm:$0xff] %v10237_v40  ;;  %v10252_v0 = vsel %vm1020_vm3, %v4016_v22, %v4017_v61  ;;  %v4021_v4 = vrot.slane %v12040_v39, 2  ;;  %v4022_v23 = vrot.slane %v11977_v43, 2 }
  0xbc   : > { %8001 = vmatprep.mubr.msk.f32.mxu1 %vm434_vm2, %v10200_v5  ;;  %v1076_v37 = vrot.slane %v12028_v53, 2  ;;  %12034 = vst [vmem:[#allocation45_spill] sm:$0xff] %v10240_v60  ;;  %12039 = vst [vmem:[#allocation50_spill] sm:$0xff] %v10252_v0  ;;  %v12043_v22 = vld [vmem:[#allocation90_spill] sm:$0xff] }
  0xbe   : > { %7546 = vmatmul.mubr.msk.f32.gmra.mrb[18].mxu0 %vm434_vm2, %v10211_v27  ;;  %v10246_v5 = vsel %vm1020_vm3, %v1076_v37, %v1077_v31  ;;  %v12037_v27 = vld [vmem:[#allocation81_spill] sm:$0xff]  ;;  %v10263_v37 = vsel %vm1020_vm3, %v1077_v31, %v1079_v41  ;;  %v10278_v31 = vsel %vm1020_vm3, %v4021_v4, %v4022_v23  ;;  %v12049_v41 = vld [vmem:[#allocation94_spill] sm:$0xff] }
  0xbf   : > { %8002 = vmatmul.mubr.msk.f32.gmra.mrb[22].mxu1 %vm434_vm2, %v10218_v44  ;;  %7548 = vmatprep.mubr.msk.f32.mxu0 %vm434_vm2, %v10221_v32  ;;  %12036 = vst [vmem:[#allocation48_spill] sm:$0xff] %v10246_v5  ;;  %v4019_v62 = vrot.slane %v12037_v27, 2  ;;  %v1081_v44 = vrot.slane %v11974_v34, 2  ;;  %v1082_v32 = vrot.slane %v12038_v36, 2  ;;  %12041 = vst [vmem:[#allocation59_spill] sm:$0xff] %v10263_v37  ;;  %v12042_v27 = vld [vmem:[#allocation88_spill] sm:$0xff] }
  0xc0   : > { %8004 = vmatprep.mubr.msk.f32.mxu1 %vm434_vm2, %v10226_v3  ;;  %v1084_v47 = vrot.slane %v12042_v27, 2  ;;  %v4024_v3 = vrot.slane %v12043_v22, 2  ;;  %12048 = vst [vmem:[#allocation70_spill] sm:$0xff] %v10278_v31  ;;  %v4026_v27 = vrot.slane %v12049_v41, 2  ;;  %v4027_v22 = vrot.slane %v12050_v56, 2 }
  0xc1   : > { %v10270_v2 = vsel %vm1020_vm3, %v4017_v61, %v4019_v62  ;;  %v12052_v61 = vld [vmem:[#allocation99_spill] sm:$0xff] }
  0xc2   : > { %7549 = vmatmul.mubr.msk.f32.gmra.mrb[20].mxu0 %vm434_vm2, %v10237_v40  ;;  %12044 = vst [vmem:[#allocation61_spill] sm:$0xff] %v10270_v2  ;;  %v10273_v40 = vsel %vm1020_vm3, %v1081_v44, %v1082_v32  ;;  %v10289_v62 = vsel %vm1020_vm3, %v1082_v32, %v1084_v47  ;;  %v10292_v44 = vsel %vm1020_vm3, %v4022_v23, %v4024_v3  ;;  %v1089_v4 = vrot.slane %v12052_v61, 2  ;;  %v12055_v3 = vld [vmem:[#allocation105_spill] sm:$0xff] }
  0xc3   : > { %8005 = vmatmul.mubr.msk.f32.gmra.mrb[24].mxu1 %vm434_vm2, %v10240_v60  ;;  %7551 = vmatprep.mubr.msk.f32.mxu0 %vm434_vm2, %v10246_v5  ;;  %12045 = vst [vmem:[#allocation68_spill] sm:$0xff] %v10273_v40  ;;  %v12046_v60 = vld [vmem:[#allocation92_spill] sm:$0xff]  ;;  %v1087_v5 = vrot.slane %v12047_v57, 2  ;;  %12051 = vst [vmem:[#allocation72_spill] sm:$0xff] %v10292_v44  ;;  %v10304_v32 = vsel %vm1020_vm3, %v4026_v27, %v4027_v22  ;;  %v1094_v23 = vrot.slane %v12055_v3, 2  ;;  %v1096_v27 = vrot.slane %v9740_v48, 2 }
  0xc4   : > { %8007 = vmatprep.mubr.msk.f32.mxu1 %vm434_vm2, %v10252_v0  ;;  %v1086_v63 = vrot.slane %v12046_v60, 2  ;;  %v1097_v61 = vrot.slane %v9743_v9, 2  ;;  %v8858_v3 = vld [vmem:[%s11566_s1 + $0x20] sm:$0xff] }
  0xc6   : > { %7552 = vmatmul.mubr.msk.f32.gmra.mrb[22].mxu0 %vm434_vm2, %v10263_v37  ;;  %v10298_v0 = vsel %vm1020_vm3, %v1086_v63, %v1087_v5  ;;  %v12054_v37 = vld [vmem:[#allocation101_spill] sm:$0xff]  ;;  %v10313_v63 = vsel %vm1020_vm3, %v1087_v5, %v1089_v4  ;;  %v10341_v4 = vsel %vm1020_vm3, %v1096_v27, %v1097_v61  ;;  %v10362_v27 = vld [vmem:[%s11566_s1 + $0x30] sm:$0xff] }
  0xc7   : > { %8008 = vmatmul.mubr.msk.f32.gmra.mrb[26].mxu1 %vm434_vm2, %v10270_v2  ;;  %7554 = vmatprep.mubr.msk.f32.mxu0 %vm434_vm2, %v10273_v40  ;;  %12053 = vst [vmem:[#allocation73_spill] sm:$0xff] %v10298_v0  ;;  %v4029_v11 = vrot.slane %v12054_v37, 2  ;;  %v1091_v2 = vrot.slane %v9707_v51, 2  ;;  %v1092_v40 = vrot.slane %v9710_v38, 2 }
  0xc8   : > { %8010 = vmatprep.mubr.msk.f32.mxu1 %vm434_vm2, %v10278_v31 }
  0xc9   : > { %v10319_v37 = vsel %vm1020_vm3, %v4027_v22, %v4029_v11  ;;  %v10322_v47 = vsel %vm1020_vm3, %v1091_v2, %v1092_v40  ;;  %v10333_v5 = vsel %vm1020_vm3, %v1092_v40, %v1094_v23  ;;  %v12057_v11 = vld [vmem:[#allocation110_spill] sm:$0xff]  ;;  %v8857_v2 = vld [vmem:[%s11566_s1 + $0x18] sm:$0xff]  ;;  %v10348_v40 = vld [vmem:[%s11567_s2 + $0x14] sm:$0x7] }
  0xca   : > { %7555 = vmatmul.mubr.msk.f32.gmra.mrb[24].mxu0 %vm434_vm2, %v10289_v62  ;;  %12056 = vst [vmem:[#allocation74_spill] sm:$0xff] %v10322_v47  ;;  %v1099_v22 = vrot.slane %v12057_v11, 2  ;;  %v8861_v11 = vld [vmem:[%s9075_s10 + $0x18] sm:$0xff] }
  0xcb   : > { %8011 = vmatmul.mubr.msk.f32.gmra.mrb[28].mxu1 %vm434_vm2, %v10292_v44  ;;  %7557 = vmatprep.mubr.msk.f32.mxu0 %vm434_vm2, %v10298_v0 }
  0xcc   : > { %8013 = vmatprep.mubr.msk.f32.mxu1 %vm434_vm2, %v10304_v32  ;;  %v10357_v23 = vsel %vm1020_vm3, %v1097_v61, %v1099_v22  ;;  %v10375_v61 = vld [vmem:[%s11566_s1 + $0x38] sm:$0xff]  ;;  %v10384_v22 = vld [vmem:[%s11566_s1 + $0x48] sm:$0xff] }
  0xce   : > { %7558 = vmatmul.mubr.msk.f32.gmra.mrb[26].mxu0 %vm434_vm2, %v10313_v63 }
  0xcf   : > { %8014 = vmatmul.mubr.msk.f32.gmra.mrb[30].mxu1 %vm434_vm2, %v10319_v37  ;;  %7560 = vmatprep.mubr.msk.f32.mxu0 %vm434_vm2, %v10322_v47 }
  0xd0   : > { %8018 = vmatprep.mubr.msk.f32.mxu1 %vm434_vm2, %v8857_v2  ;;  %v8863_v2 = vld [vmem:[%s9075_s10 + $0x20] sm:$0xff] }
  0xd2   : > { %7561 = vmatmul.mubr.msk.f32.gmra.mrb[28].mxu0 %vm434_vm2, %v10333_v5 }
  0xd3   : > { %8019 = vmatmul.mubr.msk.f32.vlgmr.msra.gmra.mrb[0].mxu1 %vm434_vm2, %v8858_v3  ;;  %7563 = vmatprep.mubr.msk.f32.mxu0 %vm434_vm2, %v10341_v4  ;;  %v10395_v3 = vld [vmem:[%s11566_s1 + $0x50] sm:$0xff] }
  0xd4   : > { %8021 = vmatprep.mubr.msk.f32.mxu1 %vm434_vm2, %v10362_v27  ;;  %8067 = vmatpush3.msk.msra.mxu1 %vm499_vm0, %v9946_v19  ;;  %12058 = vst [vmem:[#allocation75_spill] sm:$0xff] %v10395_v3 }
  0xd5   : > { %8116 = vmatprep.subr.msk.mxu1 %vm499_vm0, %v10348_v40 }
  0xd6   : > { %7564 = vmatmul.mubr.msk.f32.gmra.mrb[30].mxu0 %vm434_vm2, %v10357_v23 }
  0xd7   : > { %8022 = vmatmul.mubr.msk.f32.gmra.mrb[2].mxu1 %vm434_vm2, %v10375_v61  ;;  %7568 = vmatprep.mubr.msk.f32.mxu0 %vm434_vm2, %v8861_v11  ;;  %v10400_v11 = vld [vmem:[%s9075_s10 + $0x30] sm:$0xff] }
  0xd8   : > { %8024 = vmatprep.mubr.msk.f32.mxu1 %vm434_vm2, %v10384_v22  ;;  %12059 = vst [vmem:[#allocation79_spill] sm:$0xff] %v10400_v11 }
  0xda   : > { %7569 = vmatmul.mubr.msk.f32.vlgmr.msra.gmra.mrb[0].mxu0 %vm434_vm2, %v8863_v2  ;;  %v10407_v2 = vld [vmem:[%s11566_s1 + $0x60] sm:$0xff] }
  0xdb   : > { %7617 = vmatpush3.msk.msra.mxu0 %vm499_vm0, %v9946_v19  ;;  %8025 = vmatmul.mubr.msk.f32.gmra.mrb[4].mxu1 %vm434_vm2, %v10395_v3  ;;  %12060 = vst [vmem:[#allocation81_spill] sm:$0xff] %v10407_v2  ;;  %v10414_v19 = vld [vmem:[%s9075_s10 + $0x38] sm:$0xff]  ;;  %v10426_v3 = vld [vmem:[%s9075_s10 + $0x48] sm:$0xff] }
  0xdc   : > { %7571 = vmatprep.mubr.msk.f32.mxu0 %vm434_vm2, %v10400_v11  ;;  %8027 = vmatprep.mubr.msk.f32.mxu1 %vm434_vm2, %v10407_v2  ;;  %12061 = vst [vmem:[#allocation83_spill] sm:$0xff] %v10414_v19  ;;  %v10421_v11 = vld [vmem:[%s11566_s1 + $0x68] sm:$0xff]  ;;  %12063 = vst [vmem:[#allocation88_spill] sm:$0xff] %v10426_v3  ;;  %v10433_v2 = vld [vmem:[%s11566_s1 + $0x78] sm:$0xff] }
  0xdd   : > { %7666 = vmatprep.subr.msk.mxu0 %vm499_vm0, %v10348_v40  ;;  %12062 = vst [vmem:[#allocation84_spill] sm:$0xff] %v10421_v11  ;;  %12064 = vst [vmem:[#allocation90_spill] sm:$0xff] %v10433_v2 }
  0xde   : > { %7572 = vmatmul.mubr.msk.f32.gmra.mrb[2].mxu0 %vm434_vm2, %v10414_v19  ;;  %v10438_v19 = vld [vmem:[%s9075_s10 + $0x50] sm:$0xff] }
  0xdf   : > { %8028 = vmatmul.mubr.msk.f32.gmra.mrb[6].mxu1 %vm434_vm2, %v10421_v11  ;;  %7574 = vmatprep.mubr.msk.f32.mxu0 %vm434_vm2, %v10426_v3  ;;  %12065 = vst [vmem:[#allocation92_spill] sm:$0xff] %v10438_v19  ;;  %v10445_v11 = vld [vmem:[%s11566_s1 + $0x80] sm:$0xff] }
  0xe0   : > { %8030 = vmatprep.mubr.msk.f32.mxu1 %vm434_vm2, %v10433_v2  ;;  %12066 = vst [vmem:[#allocation93_spill] sm:$0xff] %v10445_v11  ;;  %v10450_v3 = vld [vmem:[%s9075_s10 + $0x60] sm:$0xff]  ;;  %v10457_v2 = vld [vmem:[%s11566_s1 + $0x90] sm:$0xff] }
  0xe1   : > { %12067 = vst [vmem:[#allocation94_spill] sm:$0xff] %v10450_v3  ;;  %12068 = vst [vmem:[#allocation95_spill] sm:$0xff] %v10457_v2 }
  0xe2   : > { %7575 = vmatmul.mubr.msk.f32.gmra.mrb[4].mxu0 %vm434_vm2, %v10438_v19  ;;  %v10462_v19 = vld [vmem:[%s9075_s10 + $0x68] sm:$0xff] }
  0xe3   : > { %8031 = vmatmul.mubr.msk.f32.gmra.mrb[8].mxu1 %vm434_vm2, %v10445_v11  ;;  %7577 = vmatprep.mubr.msk.f32.mxu0 %vm434_vm2, %v10450_v3  ;;  %12069 = vst [vmem:[#allocation99_spill] sm:$0xff] %v10462_v19  ;;  %v10469_v11 = vld [vmem:[%s11566_s1 + $0x98] sm:$0xff] }
  0xe4   : > { %8033 = vmatprep.mubr.msk.f32.mxu1 %vm434_vm2, %v10457_v2  ;;  %12070 = vst [vmem:[#allocation101_spill] sm:$0xff] %v10469_v11  ;;  %v10474_v3 = vld [vmem:[%s9075_s10 + $0x78] sm:$0xff]  ;;  %v10481_v2 = vld [vmem:[%s11566_s1 + $0xa8] sm:$0xff] }
  0xe5   : > { %12071 = vst [vmem:[#allocation105_spill] sm:$0xff] %v10474_v3  ;;  %12072 = vst [vmem:[#allocation110_spill] sm:$0xff] %v10481_v2 }
  0xe6   : > { %7578 = vmatmul.mubr.msk.f32.gmra.mrb[6].mxu0 %vm434_vm2, %v10462_v19  ;;  %v10486_v19 = vld [vmem:[%s9075_s10 + $0x80] sm:$0xff] }
  0xe7   : > { %8034 = vmatmul.mubr.msk.f32.gmra.mrb[10].mxu1 %vm434_vm2, %v10469_v11  ;;  %7580 = vmatprep.mubr.msk.f32.mxu0 %vm434_vm2, %v10474_v3  ;;  %12073 = vst [vmem:[#allocation114_spill] sm:$0xff] %v10486_v19  ;;  %v10493_v11 = vld [vmem:[%s11566_s1 + $0xb0] sm:$0xff] }
  0xe8   : > { %8036 = vmatprep.mubr.msk.f32.mxu1 %vm434_vm2, %v10481_v2  ;;  %12074 = vst [vmem:[#allocation115_spill] sm:$0xff] %v10493_v11  ;;  %v10498_v3 = vld [vmem:[%s9075_s10 + $0x90] sm:$0xff]  ;;  %v10505_v2 = vld [vmem:[%s11566_s1 + $0xc0] sm:$0xff] }
  0xe9   : > { %12075 = vst [vmem:[#allocation116_spill] sm:$0xff] %v10498_v3  ;;  %12076 = vst [vmem:[#allocation117_spill] sm:$0xff] %v10505_v2 }
  0xea   : > { %7581 = vmatmul.mubr.msk.f32.gmra.mrb[8].mxu0 %vm434_vm2, %v10486_v19  ;;  %v10510_v19 = vld [vmem:[%s9075_s10 + $0x98] sm:$0xff] }
  0xeb   : > { %8037 = vmatmul.mubr.msk.f32.gmra.mrb[12].mxu1 %vm434_vm2, %v10493_v11  ;;  %7583 = vmatprep.mubr.msk.f32.mxu0 %vm434_vm2, %v10498_v3  ;;  %12077 = vst [vmem:[#allocation118_spill] sm:$0xff] %v10510_v19  ;;  %v10517_v11 = vld [vmem:[%s11566_s1 + $0xc8] sm:$0xff] }
  0xec   : > { %8039 = vmatprep.mubr.msk.f32.mxu1 %vm434_vm2, %v10505_v2  ;;  %v10522_v3 = vld [vmem:[%s9075_s10 + $0xa8] sm:$0xff]  ;;  %v10529_v2 = vld [vmem:[%s9075_s10 + $0xb0] sm:$0xff] }
  0xee   : > { %7584 = vmatmul.mubr.msk.f32.gmra.mrb[10].mxu0 %vm434_vm2, %v10510_v19  ;;  %v10536_v19 = vld [vmem:[%s11566_s1 + $0xe0] sm:$0xff] }
  0xef   : > { %8040 = vmatmul.mubr.msk.f32.gmra.mrb[14].mxu1 %vm434_vm2, %v10517_v11  ;;  %7586 = vmatprep.mubr.msk.f32.mxu0 %vm434_vm2, %v10522_v3 }
  0xf0   : > { %8042 = vmatprep.mubr.msk.f32.mxu1 %vm434_vm2, %v9358_v21  ;;  %v10587_v21 = vld [vmem:[%s11566_s1 + $0x180] sm:$0xff] }
  0xf2   : > { %7587 = vmatmul.mubr.msk.f32.gmra.mrb[12].mxu0 %vm434_vm2, %v10529_v2 }
  0xf3   : > { %8043 = vmatmul.mubr.msk.f32.gmra.mrb[16].mxu1 %vm434_vm2, %v10536_v19  ;;  %7589 = vmatprep.mubr.msk.f32.mxu0 %vm434_vm2, %v9398_v6  ;;  %v12078_v6 = vld [vmem:[#allocation5_spill] sm:$0xff] }
  0xf4   : > { %8045 = vmatprep.mubr.msk.f32.mxu1 %vm434_vm2, %v9408_v15  ;;  %v10618_v15 = vld [vmem:[%s11567_s2 + $0x18] sm:$0x7] }
  0xf6   : > { %7590 = vmatmul.mubr.msk.f32.gmra.mrb[14].mxu0 %vm434_vm2, %v9401_v49  ;;  %v10611_v49 = vld [vmem:[%s9075_s10 + $0x180] sm:$0xff] }
  0xf7   : > { %8046 = vmatmul.mubr.msk.f32.gmra.mrb[18].mxu1 %vm434_vm2, %v9413_v42  ;;  %7592 = vmatprep.mubr.msk.f32.mxu0 %vm434_vm2, %v11962_v26  ;;  %v10600_v42 = vld [vmem:[%s11566_s1 + $0x188] sm:$0xff]  ;;  %v12086_v26 = vld [vmem:[#allocation18_spill] sm:$0xff] }
  0xf8   : > { %8048 = vmatprep.mubr.msk.f32.mxu1 %vm434_vm2, %v11963_v35  ;;  %v12087_v35 = vld [vmem:[#allocation21_spill] sm:$0xff] }
  0xfa   : > { %7593 = vmatmul.mubr.msk.f32.gmra.mrb[16].mxu0 %vm434_vm2, %v11964_v33  ;;  %v12088_v33 = vld [vmem:[#allocation22_spill] sm:$0xff] }
  0xfb   : > { %8049 = vmatmul.mubr.msk.f32.gmra.mrb[20].mxu1 %vm434_vm2, %v11965_v54  ;;  %7595 = vmatprep.mubr.msk.f32.mxu0 %vm434_vm2, %v11966_v45  ;;  %v12089_v54 = vld [vmem:[#allocation23_spill] sm:$0xff]  ;;  %v12090_v45 = vld [vmem:[#allocation24_spill] sm:$0xff] }
  0xfc   : > { %8051 = vmatprep.mubr.msk.f32.mxu1 %vm434_vm2, %v11967_v7  ;;  %v12091_v7 = vld [vmem:[#allocation27_spill] sm:$0xff] }
  0xfe   : > { %7596 = vmatmul.mubr.msk.f32.gmra.mrb[18].mxu0 %vm434_vm2, %v11968_v13  ;;  %v12085_v13 = vld [vmem:[#allocation17_spill] sm:$0xff] }
  0xff   : > { %8052 = vmatmul.mubr.msk.f32.gmra.mrb[22].mxu1 %vm434_vm2, %v11969_v12  ;;  %7598 = vmatprep.mubr.msk.f32.mxu0 %vm434_vm2, %v12028_v53  ;;  %v12084_v12 = vld [vmem:[#allocation16_spill] sm:$0xff]  ;;  %v12097_v53 = vld [vmem:[#allocation35_spill] sm:$0xff] }
 0x100   : > { %8054 = vmatprep.mubr.msk.f32.mxu1 %vm434_vm2, %v12031_v14  ;;  %v12098_v14 = vld [vmem:[#allocation37_spill] sm:$0xff] }
 0x102   : > { %7599 = vmatmul.mubr.msk.f32.gmra.mrb[20].mxu0 %vm434_vm2, %v12029_v16  ;;  %v12096_v16 = vld [vmem:[#allocation34_spill] sm:$0xff] }
 0x103   : > { %8055 = vmatmul.mubr.msk.f32.gmra.mrb[24].mxu1 %vm434_vm2, %v12032_v50  ;;  %7601 = vmatprep.mubr.msk.f32.mxu0 %vm434_vm2, %v11974_v34  ;;  %v12081_v34 = vld [vmem:[#allocation10_spill] sm:$0xff]  ;;  %v12095_v50 = vld [vmem:[#allocation32_spill] sm:$0xff] }
 0x104   : > { %8057 = vmatprep.mubr.msk.f32.mxu1 %vm434_vm2, %v12040_v39  ;;  %v12100_v39 = vld [vmem:[#allocation40_spill] sm:$0xff] }
 0x106   : > { %7602 = vmatmul.mubr.msk.f32.gmra.mrb[22].mxu0 %vm434_vm2, %v12038_v36  ;;  %v12094_v36 = vld [vmem:[#allocation30_spill] sm:$0xff] }
 0x107   : > { %8058 = vmatmul.mubr.msk.f32.gmra.mrb[26].mxu1 %vm434_vm2, %v11977_v43  ;;  %7604 = vmatprep.mubr.msk.f32.mxu0 %vm434_vm2, %v12046_v60  ;;  %v12079_v43 = vld [vmem:[#allocation7_spill] sm:$0xff] }
 0x108   : > { %8060 = vmatprep.mubr.msk.f32.mxu1 %vm434_vm2, %v12049_v41  ;;  %v12099_v60 = vld [vmem:[#allocation39_spill] sm:$0xff]  ;;  %v12101_v41 = vld [vmem:[#allocation41_spill] sm:$0xff] }
 0x10a   : > { %7605 = vmatmul.mubr.msk.f32.gmra.mrb[24].mxu0 %vm434_vm2, %v12047_v57  ;;  %v12093_v57 = vld [vmem:[#allocation29_spill] sm:$0xff] }
 0x10b   : > { %8061 = vmatmul.mubr.msk.f32.gmra.mrb[28].mxu1 %vm434_vm2, %v12050_v56  ;;  %7607 = vmatprep.mubr.msk.f32.mxu0 %vm434_vm2, %v9707_v51  ;;  %v10625_v51 = vld [vmem:[%s9075_s10 + $0x188] sm:$0xff]  ;;  %v12092_v56 = vld [vmem:[#allocation28_spill] sm:$0xff] }
 0x10c   : > { %8063 = vmatprep.mubr.msk.f32.mxu1 %vm434_vm2, %v10587_v21 }
 0x10e   : > { %7608 = vmatmul.mubr.msk.f32.gmra.mrb[26].mxu0 %vm434_vm2, %v9710_v38  ;;  %v12080_v38 = vld [vmem:[#allocation9_spill] sm:$0xff] }
 0x10f   : > { %8064 = vmatmul.mubr.msk.f32.gmra.mrb[30].mxu1 %vm434_vm2, %v10600_v42  ;;  %7610 = vmatprep.mubr.msk.f32.mxu0 %vm434_vm2, %v9740_v48  ;;  %v12082_v48 = vld [vmem:[#allocation14_spill] sm:$0xff] }
 0x110   : > { %8068 = vmatprep.mubr.msk.f32.mxu1 %vm434_vm2, %v12078_v6  ;;  %v12103_v6 = vld [vmem:[#allocation44_spill] sm:$0xff] }
 0x112   : > { %7611 = vmatmul.mubr.msk.f32.gmra.mrb[28].mxu0 %vm434_vm2, %v9743_v9  ;;  %v12083_v9 = vld [vmem:[#allocation15_spill] sm:$0xff] }
 0x113   : > { %8069 = vmatmul.mubr.msk.f32.vlgmr.msra.gmra.mrb[0].mxu1 %vm434_vm2, %v12079_v43  ;;  %7613 = vmatprep.mubr.msk.f32.mxu0 %vm434_vm2, %v10611_v49  ;;  %v12104_v43 = vld [vmem:[#allocation46_spill] sm:$0xff] }
 0x114   : > { %8071 = vmatprep.mubr.msk.f32.mxu1 %vm434_vm2, %v12080_v38  ;;  %8117 = vmatpush3.msk.msra.mxu1 %vm499_vm0, %v10348_v40 }
 0x115   : > { %8166 = vmatprep.subr.msk.mxu1 %vm499_vm0, %v10618_v15 }
 0x116   : > { %7614 = vmatmul.mubr.msk.f32.gmra.mrb[30].mxu0 %vm434_vm2, %v10625_v51 }
 0x117   : > { %8072 = vmatmul.mubr.msk.f32.gmra.mrb[2].mxu1 %vm434_vm2, %v12081_v34  ;;  %7618 = vmatprep.mubr.msk.f32.mxu0 %vm434_vm2, %v12082_v48  ;;  %v12105_v48 = vld [vmem:[#allocation47_spill] sm:$0xff] }
 0x118   : > { %8074 = vmatprep.mubr.msk.f32.mxu1 %vm434_vm2, %v12083_v9 }
 0x11a   : > { %7619 = vmatmul.mubr.msk.f32.vlgmr.msra.gmra.mrb[0].mxu0 %vm434_vm2, %v12084_v12  ;;  %v12106_v12 = vld [vmem:[#allocation49_spill] sm:$0xff] }
 0x11b   : > { %7667 = vmatpush3.msk.msra.mxu0 %vm499_vm0, %v10348_v40  ;;  %8075 = vmatmul.mubr.msk.f32.gmra.mrb[4].mxu1 %vm434_vm2, %v12085_v13  ;;  %v12102_v40 = vld [vmem:[#allocation42_spill] sm:$0xff] }
 0x11c   : > { %7621 = vmatprep.mubr.msk.f32.mxu0 %vm434_vm2, %v12086_v26  ;;  %8077 = vmatprep.mubr.msk.f32.mxu1 %vm434_vm2, %v12087_v35 }
 0x11d   : > { %7716 = vmatprep.subr.msk.mxu0 %vm499_vm0, %v10618_v15 }
 0x11e   : > { %7622 = vmatmul.mubr.msk.f32.gmra.mrb[2].mxu0 %vm434_vm2, %v12088_v33 }
 0x11f   : > { %8078 = vmatmul.mubr.msk.f32.gmra.mrb[6].mxu1 %vm434_vm2, %v12089_v54  ;;  %7624 = vmatprep.mubr.msk.f32.mxu0 %vm434_vm2, %v12090_v45 }
 0x120   : > { %8080 = vmatprep.mubr.msk.f32.mxu1 %vm434_vm2, %v12091_v7 }
 0x122   : > { %7625 = vmatmul.mubr.msk.f32.gmra.mrb[4].mxu0 %vm434_vm2, %v12092_v56 }
 0x123   : > { %8081 = vmatmul.mubr.msk.f32.gmra.mrb[8].mxu1 %vm434_vm2, %v12093_v57  ;;  %7627 = vmatprep.mubr.msk.f32.mxu0 %vm434_vm2, %v12094_v36 }
 0x124   : > { %8083 = vmatprep.mubr.msk.f32.mxu1 %vm434_vm2, %v12095_v50  ;;  %v12136_v50 = vld [vmem:[#allocation111_spill] sm:$0xff] }
 0x126   : > { %7628 = vmatmul.mubr.msk.f32.gmra.mrb[6].mxu0 %vm434_vm2, %v12096_v16  ;;  %v12134_v16 = vld [vmem:[#allocation108_spill] sm:$0xff] }
 0x127   : > { %8084 = vmatmul.mubr.msk.f32.gmra.mrb[10].mxu1 %vm434_vm2, %v12097_v53  ;;  %7630 = vmatprep.mubr.msk.f32.mxu0 %vm434_vm2, %v12098_v14  ;;  %v12133_v53 = vld [vmem:[#allocation107_spill] sm:$0xff] }
 0x128   : > { %8086 = vmatprep.mubr.msk.f32.mxu1 %vm434_vm2, %v12099_v60  ;;  %v12107_v60 = vld [vmem:[#allocation51_spill] sm:$0xff] }
 0x12a   : > { %7631 = vmatmul.mubr.msk.f32.gmra.mrb[8].mxu0 %vm434_vm2, %v12100_v39  ;;  %v12108_v39 = vld [vmem:[#allocation56_spill] sm:$0xff] }
 0x12b   : > { %8087 = vmatmul.mubr.msk.f32.gmra.mrb[12].mxu1 %vm434_vm2, %v12101_v41  ;;  %7633 = vmatprep.mubr.msk.f32.mxu0 %vm434_vm2, %v12102_v40  ;;  %v12109_v41 = vld [vmem:[#allocation57_spill] sm:$0xff]  ;;  %v12110_v40 = vld [vmem:[#allocation58_spill] sm:$0xff] }
 0x12c   : > { %8089 = vmatprep.mubr.msk.f32.mxu1 %vm434_vm2, %v12103_v6  ;;  %v12111_v6 = vld [vmem:[#allocation60_spill] sm:$0xff] }
 0x12e   : > { %7634 = vmatmul.mubr.msk.f32.gmra.mrb[10].mxu0 %vm434_vm2, %v12104_v43  ;;  %v12112_v43 = vld [vmem:[#allocation66_spill] sm:$0xff] }
 0x12f   : > { %8090 = vmatmul.mubr.msk.f32.gmra.mrb[14].mxu1 %vm434_vm2, %v12105_v48  ;;  %7636 = vmatprep.mubr.msk.f32.mxu0 %vm434_vm2, %v12106_v12  ;;  %v12113_v48 = vld [vmem:[#allocation67_spill] sm:$0xff]  ;;  %v12114_v12 = vld [vmem:[#allocation69_spill] sm:$0xff] }
 0x130   : > { %8092 = vmatprep.mubr.msk.f32.mxu1 %vm434_vm2, %v12107_v60  ;;  %v12115_v60 = vld [vmem:[#allocation71_spill] sm:$0xff] }
 0x132   : > { %7637 = vmatmul.mubr.msk.f32.gmra.mrb[12].mxu0 %vm434_vm2, %v12108_v39  ;;  %v12116_v39 = vld [vmem:[#allocation76_spill] sm:$0xff] }
 0x133   : > { %8093 = vmatmul.mubr.msk.f32.gmra.mrb[16].mxu1 %vm434_vm2, %v12109_v41  ;;  %7639 = vmatprep.mubr.msk.f32.mxu0 %vm434_vm2, %v12110_v40  ;;  %v12117_v41 = vld [vmem:[#allocation77_spill] sm:$0xff]  ;;  %v12118_v40 = vld [vmem:[#allocation78_spill] sm:$0xff] }
 0x134   : > { %8095 = vmatprep.mubr.msk.f32.mxu1 %vm434_vm2, %v12111_v6  ;;  %v12119_v6 = vld [vmem:[#allocation80_spill] sm:$0xff] }
 0x136   : > { %7640 = vmatmul.mubr.msk.f32.gmra.mrb[14].mxu0 %vm434_vm2, %v12112_v43  ;;  %v12120_v43 = vld [vmem:[#allocation86_spill] sm:$0xff] }
 0x137   : > { %8096 = vmatmul.mubr.msk.f32.gmra.mrb[18].mxu1 %vm434_vm2, %v12113_v48  ;;  %7642 = vmatprep.mubr.msk.f32.mxu0 %vm434_vm2, %v12114_v12  ;;  %v12121_v48 = vld [vmem:[#allocation87_spill] sm:$0xff]  ;;  %v12122_v12 = vld [vmem:[#allocation89_spill] sm:$0xff] }
 0x138   : > { %8098 = vmatprep.mubr.msk.f32.mxu1 %vm434_vm2, %v12115_v60  ;;  %v12123_v60 = vld [vmem:[#allocation91_spill] sm:$0xff] }
 0x13a   : > { %7643 = vmatmul.mubr.msk.f32.gmra.mrb[16].mxu0 %vm434_vm2, %v12116_v39  ;;  %v12124_v39 = vld [vmem:[#allocation96_spill] sm:$0xff] }
 0x13b   : > { %8099 = vmatmul.mubr.msk.f32.gmra.mrb[20].mxu1 %vm434_vm2, %v12117_v41  ;;  %7645 = vmatprep.mubr.msk.f32.mxu0 %vm434_vm2, %v12118_v40  ;;  %v12125_v41 = vld [vmem:[#allocation97_spill] sm:$0xff]  ;;  %v12126_v40 = vld [vmem:[#allocation98_spill] sm:$0xff] }
 0x13c   : > { %8101 = vmatprep.mubr.msk.f32.mxu1 %vm434_vm2, %v12119_v6  ;;  %v12127_v6 = vld [vmem:[#allocation100_spill] sm:$0xff] }
 0x13e   : > { %7646 = vmatmul.mubr.msk.f32.gmra.mrb[18].mxu0 %vm434_vm2, %v12120_v43 }
 0x13f   : > { %8102 = vmatmul.mubr.msk.f32.gmra.mrb[22].mxu1 %vm434_vm2, %v12121_v48  ;;  %7648 = vmatprep.mubr.msk.f32.mxu0 %vm434_vm2, %v12122_v12  ;;  %v4616_v48 = vrot.slane %v10587_v21, 1  ;;  %v4617_v12 = vrot.slane %v10600_v42, 1 }
 0x140   : > { %8104 = vmatprep.mubr.msk.f32.mxu1 %vm434_vm2, %v12123_v60  ;;  %v10738_v60 = vld [vmem:[%s11566_s1 + $0x190] sm:$0x3] }
 0x141   : > { %v4619_v43 = vrot.slane %v10738_v60, 1  ;;  %v10750_v14 = vsel %vm351_vm1, %v4616_v48, %v4617_v12  ;;  %v10766_v48 = vld [vmem:[%s9075_s10 + $0x190] sm:$0x3] }
 0x142   : > { %7649 = vmatmul.mubr.msk.f32.gmra.mrb[20].mxu0 %vm434_vm2, %v12124_v39  ;;  %v12128_v39 = vld [vmem:[#allocation102_spill] sm:$0xff]  ;;  %12132 = vst [vmem:[#allocation5_spill] sm:$0xff] %v10750_v14 }
 0x143   : > { %8105 = vmatmul.mubr.msk.f32.gmra.mrb[24].mxu1 %vm434_vm2, %v12125_v41  ;;  %7651 = vmatprep.mubr.msk.f32.mxu0 %vm434_vm2, %v12126_v40  ;;  %v12129_v41 = vld [vmem:[#allocation103_spill] sm:$0xff]  ;;  %v12130_v40 = vld [vmem:[#allocation104_spill] sm:$0xff] }
 0x144   : > { %8107 = vmatprep.mubr.msk.f32.mxu1 %vm434_vm2, %v12127_v6  ;;  %v12131_v6 = vld [vmem:[#allocation106_spill] sm:$0xff] }
 0x146   : > { %7652 = vmatmul.mubr.msk.f32.gmra.mrb[22].mxu0 %vm434_vm2, %v12128_v39  ;;  %v12135_v39 = vld [vmem:[#allocation109_spill] sm:$0xff] }
 0x147   : > { %8108 = vmatmul.mubr.msk.f32.gmra.mrb[26].mxu1 %vm434_vm2, %v12129_v41  ;;  %7654 = vmatprep.mubr.msk.f32.mxu0 %vm434_vm2, %v12130_v40  ;;  %v1696_v41 = vrot.slane %v10611_v49, 1  ;;  %v1697_v40 = vrot.slane %v10625_v51, 1 }
 0x148   : > { %8110 = vmatprep.mubr.msk.f32.mxu1 %vm434_vm2, %v12131_v6  ;;  %v10763_v6 = vsel %vm351_vm1, %v4617_v12, %v4619_v43  ;;  %v12139_v43 = vld [vmem:[#allocation113_spill] sm:$0xff] }
 0x149   : > { %v10785_v12 = vld [vmem:[%s11567_s2 + $0x1c] sm:$0x7] }
 0x14a   : > { %7655 = vmatmul.mubr.msk.f32.gmra.mrb[24].mxu0 %vm434_vm2, %v12133_v53  ;;  %v12138_v53 = vld [vmem:[#allocation52_spill] sm:$0xff] }
 0x14b   : > { %8111 = vmatmul.mubr.msk.f32.gmra.mrb[28].mxu1 %vm434_vm2, %v12134_v16  ;;  %7657 = vmatprep.mubr.msk.f32.mxu0 %vm434_vm2, %v12135_v39  ;;  %v12137_v16 = vld [vmem:[#allocation112_spill] sm:$0xff]  ;;  %v1699_v39 = vrot.slane %v10766_v48, 1 }
 0x14c   : > { %8113 = vmatprep.mubr.msk.f32.mxu1 %vm434_vm2, %v10750_v14  ;;  %v10778_v14 = vsel %vm351_vm1, %v1696_v41, %v1697_v40  ;;  %v12146_v41 = vld [vmem:[#allocation65_spill] sm:$0xff] }
 0x14e   : > { %7658 = vmatmul.mubr.msk.f32.gmra.mrb[26].mxu0 %vm434_vm2, %v12136_v50 }
 0x14f   : > { %8114 = vmatmul.mubr.msk.f32.gmra.mrb[30].mxu1 %vm434_vm2, %v10763_v6  ;;  %7660 = vmatprep.mubr.msk.f32.mxu0 %vm434_vm2, %v12137_v16  ;;  %v10792_v16 = vsel %vm351_vm1, %v1697_v40, %v1699_v39  ;;  %v12145_v39 = vld [vmem:[#allocation63_spill] sm:$0xff]  ;;  %v12147_v40 = vld [vmem:[#allocation82_spill] sm:$0xff] }
 0x150   : > { %8118 = vmatprep.mubr.msk.f32.mxu1 %vm434_vm2, %v12138_v53  ;;  %v12144_v53 = vld [vmem:[#allocation64_spill] sm:$0xff] }
 0x152   : > { %7661 = vmatmul.mubr.msk.f32.gmra.mrb[28].mxu0 %vm434_vm2, %v12139_v43 }
 0x153   : > { %8119 = vmatmul.mubr.msk.f32.vlgmr.msra.gmra.mrb[0].mxu1 %vm434_vm2, %v9955_v10  ;;  %7663 = vmatprep.mubr.msk.f32.mxu0 %vm434_vm2, %v10778_v14  ;;  %v12140_v10 = vld [vmem:[#allocation54_spill] sm:$0xff] }
 0x154   : > { %8121 = vmatprep.mubr.msk.f32.mxu1 %vm434_vm2, %v9963_v1  ;;  %8167 = vmatpush3.msk.msra.mxu1 %vm499_vm0, %v10618_v15 }
 0x155   : > { %8216 = vmatprep.subr.msk.mxu1 %vm499_vm0, %v10785_v12 }
 0x156   : > { %7664 = vmatmul.mubr.msk.f32.gmra.mrb[30].mxu0 %vm434_vm2, %v10792_v16 }
 0x157   : > { %8122 = vmatmul.mubr.msk.f32.gmra.mrb[2].mxu1 %vm434_vm2, %v9980_v20  ;;  %7668 = vmatprep.mubr.msk.f32.mxu0 %vm434_vm2, %v9986_v30  ;;  %v12141_v30 = vld [vmem:[#allocation53_spill] sm:$0xff] }
 0x158   : > { %8124 = vmatprep.mubr.msk.f32.mxu1 %vm434_vm2, %v9989_v17 }
 0x15a   : > { %7669 = vmatmul.mubr.msk.f32.vlgmr.msra.gmra.mrb[0].mxu0 %vm434_vm2, %v9999_v46  ;;  %v12142_v46 = vld [vmem:[#allocation55_spill] sm:$0xff] }
 0x15b   : > { %7717 = vmatpush3.msk.msra.mxu0 %vm499_vm0, %v10618_v15  ;;  %8125 = vmatmul.mubr.msk.f32.gmra.mrb[4].mxu1 %vm434_vm2, %v10008_v24  ;;  %v12143_v15 = vld [vmem:[#allocation62_spill] sm:$0xff] }
 0x15c   : > { %7671 = vmatprep.mubr.msk.f32.mxu0 %vm434_vm2, %v10011_v29  ;;  %8127 = vmatprep.mubr.msk.f32.mxu1 %vm434_vm2, %v10016_v52 }
 0x15d   : > { %7766 = vmatprep.subr.msk.mxu0 %vm499_vm0, %v10785_v12 }
 0x15e   : > { %7672 = vmatmul.mubr.msk.f32.gmra.mrb[2].mxu0 %vm434_vm2, %v10029_v58 }
 0x15f   : > { %8128 = vmatmul.mubr.msk.f32.gmra.mrb[6].mxu1 %vm434_vm2, %v10032_v59  ;;  %7674 = vmatprep.mubr.msk.f32.mxu0 %vm434_vm2, %v10038_v8 }
 0x160   : > { %8130 = vmatprep.mubr.msk.f32.mxu1 %vm434_vm2, %v10044_v55 }
 0x162   : > { %7675 = vmatmul.mubr.msk.f32.gmra.mrb[4].mxu0 %vm434_vm2, %v10055_v18 }
 0x163   : > { %8131 = vmatmul.mubr.msk.f32.gmra.mrb[8].mxu1 %vm434_vm2, %v10062_v25  ;;  %7677 = vmatprep.mubr.msk.f32.mxu0 %vm434_vm2, %v10065_v28 }
 0x164   : > { %8133 = vmatprep.mubr.msk.f32.mxu1 %vm434_vm2, %v12140_v10  ;;  %v12148_v10 = vld [vmem:[#allocation85_spill] sm:$0xff] }
 0x166   : > { %7678 = vmatmul.mubr.msk.f32.gmra.mrb[6].mxu0 %vm434_vm2, %v12141_v30  ;;  %v12149_v30 = vld [vmem:[#allocation2_spill] sm:$0xff] }
 0x167   : > { %8134 = vmatmul.mubr.msk.f32.gmra.mrb[10].mxu1 %vm434_vm2, %v12142_v46  ;;  %7680 = vmatprep.mubr.msk.f32.mxu0 %vm434_vm2, %v12143_v15  ;;  %v12150_v46 = vld [vmem:[#allocation3_spill] sm:$0xff]  ;;  %v12151_v15 = vld [vmem:[#allocation8_spill] sm:$0xff] }
 0x168   : > { %8136 = vmatprep.mubr.msk.f32.mxu1 %vm434_vm2, %v12144_v53  ;;  %v12152_v53 = vld [vmem:[#allocation4_spill] sm:$0xff] }
 0x16a   : > { %7681 = vmatmul.mubr.msk.f32.gmra.mrb[8].mxu0 %vm434_vm2, %v12145_v39  ;;  %v12153_v39 = vld [vmem:[#allocation11_spill] sm:$0xff] }
 0x16b   : > { %8137 = vmatmul.mubr.msk.f32.gmra.mrb[12].mxu1 %vm434_vm2, %v12146_v41  ;;  %7683 = vmatprep.mubr.msk.f32.mxu0 %vm434_vm2, %v12147_v40  ;;  %v12154_v41 = vld [vmem:[#allocation6_spill] sm:$0xff]  ;;  %v12155_v40 = vld [vmem:[#allocation12_spill] sm:$0xff] }
 0x16c   : > { %8139 = vmatprep.mubr.msk.f32.mxu1 %vm434_vm2, %v12148_v10  ;;  %v12156_v10 = vld [vmem:[#allocation13_spill] sm:$0xff] }
 0x16e   : > { %7684 = vmatmul.mubr.msk.f32.gmra.mrb[10].mxu0 %vm434_vm2, %v12149_v30  ;;  %v12157_v30 = vld [vmem:[#allocation19_spill] sm:$0xff] }
 0x16f   : > { %8140 = vmatmul.mubr.msk.f32.gmra.mrb[14].mxu1 %vm434_vm2, %v12150_v46  ;;  %7686 = vmatprep.mubr.msk.f32.mxu0 %vm434_vm2, %v12151_v15  ;;  %v12158_v46 = vld [vmem:[#allocation20_spill] sm:$0xff]  ;;  %v12159_v15 = vld [vmem:[#allocation25_spill] sm:$0xff] }
 0x170   : > { %8142 = vmatprep.mubr.msk.f32.mxu1 %vm434_vm2, %v12152_v53  ;;  %v12160_v53 = vld [vmem:[#allocation26_spill] sm:$0xff] }
 0x172   : > { %7687 = vmatmul.mubr.msk.f32.gmra.mrb[12].mxu0 %vm434_vm2, %v12153_v39  ;;  %v12161_v39 = vld [vmem:[#allocation31_spill] sm:$0xff] }
 0x173   : > { %8143 = vmatmul.mubr.msk.f32.gmra.mrb[16].mxu1 %vm434_vm2, %v12154_v41  ;;  %7689 = vmatprep.mubr.msk.f32.mxu0 %vm434_vm2, %v12155_v40  ;;  %v12162_v41 = vld [vmem:[#allocation33_spill] sm:$0xff]  ;;  %v12163_v40 = vld [vmem:[#allocation36_spill] sm:$0xff] }
 0x174   : > { %8145 = vmatprep.mubr.msk.f32.mxu1 %vm434_vm2, %v12156_v10  ;;  %v12164_v10 = vld [vmem:[#allocation38_spill] sm:$0xff] }
 0x176   : > { %7690 = vmatmul.mubr.msk.f32.gmra.mrb[14].mxu0 %vm434_vm2, %v12157_v30  ;;  %v12165_v30 = vld [vmem:[#allocation43_spill] sm:$0xff] }
 0x177   : > { %8146 = vmatmul.mubr.msk.f32.gmra.mrb[18].mxu1 %vm434_vm2, %v12158_v46  ;;  %7692 = vmatprep.mubr.msk.f32.mxu0 %vm434_vm2, %v12159_v15  ;;  %v12166_v46 = vld [vmem:[#allocation45_spill] sm:$0xff]  ;;  %v12167_v15 = vld [vmem:[#allocation48_spill] sm:$0xff] }
 0x178   : > { %8148 = vmatprep.mubr.msk.f32.mxu1 %vm434_vm2, %v12160_v53  ;;  %v12168_v53 = vld [vmem:[#allocation50_spill] sm:$0xff] }
 0x17a   : > { %7693 = vmatmul.mubr.msk.f32.gmra.mrb[16].mxu0 %vm434_vm2, %v12161_v39  ;;  %v12169_v39 = vld [vmem:[#allocation59_spill] sm:$0xff] }
 0x17b   : > { %8149 = vmatmul.mubr.msk.f32.gmra.mrb[20].mxu1 %vm434_vm2, %v12162_v41  ;;  %7695 = vmatprep.mubr.msk.f32.mxu0 %vm434_vm2, %v12163_v40  ;;  %v12170_v41 = vld [vmem:[#allocation61_spill] sm:$0xff]  ;;  %v12171_v40 = vld [vmem:[#allocation68_spill] sm:$0xff] }
 0x17c   : > { %8151 = vmatprep.mubr.msk.f32.mxu1 %vm434_vm2, %v12164_v10 }
 0x17e   : > { %7696 = vmatmul.mubr.msk.f32.gmra.mrb[18].mxu0 %vm434_vm2, %v12165_v30  ;;  %v4883_v30 = vrot.slane %v10600_v42, 2 }
 0x17f   : > { %8152 = vmatmul.mubr.msk.f32.gmra.mrb[22].mxu1 %vm434_vm2, %v12166_v46  ;;  %7698 = vmatprep.mubr.msk.f32.mxu0 %vm434_vm2, %v12167_v15  ;;  %v4882_v46 = vrot.slane %v10587_v21, 2 }
 0x180   : > { %8154 = vmatprep.mubr.msk.f32.mxu1 %vm434_vm2, %v12168_v53 }
 0x182   : > { %7699 = vmatmul.mubr.msk.f32.gmra.mrb[20].mxu0 %vm434_vm2, %v12169_v39 }
 0x183   : > { %8155 = vmatmul.mubr.msk.f32.gmra.mrb[24].mxu1 %vm434_vm2, %v12170_v41  ;;  %7701 = vmatprep.mubr.msk.f32.mxu0 %vm434_vm2, %v12171_v40  ;;  %v4885_v40 = vrot.slane %v10738_v60, 2 }
 0x184   : > { %8157 = vmatprep.mubr.msk.f32.mxu1 %vm434_vm2, %v10278_v31  ;;  %v10912_v31 = vsel %vm1020_vm3, %v4882_v46, %v4883_v30  ;;  %v1970_v46 = vrot.slane %v10766_v48, 2 }
 0x185   : > { %v10925_v60 = vsel %vm1020_vm3, %v4883_v30, %v4885_v40  ;;  %v10944_v30 = vld [vmem:[%s11567_s2 + $0x20] sm:$0x7]  ;;  %v12177_v40 = vld [vmem:[#allocation88_spill] sm:$0xff] }
 0x186   : > { %7702 = vmatmul.mubr.msk.f32.gmra.mrb[22].mxu0 %vm434_vm2, %v10289_v62 }
 0x187   : > { %8158 = vmatmul.mubr.msk.f32.gmra.mrb[26].mxu1 %vm434_vm2, %v10292_v44  ;;  %7704 = vmatprep.mubr.msk.f32.mxu0 %vm434_vm2, %v10298_v0  ;;  %v1967_v44 = vrot.slane %v10611_v49, 2  ;;  %v1968_v0 = vrot.slane %v10625_v51, 2 }
 0x188   : > { %8160 = vmatprep.mubr.msk.f32.mxu1 %vm434_vm2, %v10304_v32 }
 0x189   : > { %v10951_v48 = vsel %vm1020_vm3, %v1968_v0, %v1970_v46  ;;  %v12178_v46 = vld [vmem:[#allocation90_spill] sm:$0xff] }
 0x18a   : > { %7705 = vmatmul.mubr.msk.f32.gmra.mrb[24].mxu0 %vm434_vm2, %v10313_v63 }
 0x18b   : > { %8161 = vmatmul.mubr.msk.f32.gmra.mrb[28].mxu1 %vm434_vm2, %v10319_v37  ;;  %7707 = vmatprep.mubr.msk.f32.mxu0 %vm434_vm2, %v10322_v47  ;;  %v10937_v47 = vsel %vm1020_vm3, %v1967_v44, %v1968_v0  ;;  %v12172_v44 = vld [vmem:[#allocation75_spill] sm:$0xff]  ;;  %v12174_v0 = vld [vmem:[#allocation81_spill] sm:$0xff] }
 0x18c   : > { %8163 = vmatprep.mubr.msk.f32.mxu1 %vm434_vm2, %v10912_v31 }
 0x18e   : > { %7708 = vmatmul.mubr.msk.f32.gmra.mrb[26].mxu0 %vm434_vm2, %v10333_v5 }
 0x18f   : > { %8164 = vmatmul.mubr.msk.f32.gmra.mrb[30].mxu1 %vm434_vm2, %v10925_v60  ;;  %7710 = vmatprep.mubr.msk.f32.mxu0 %vm434_vm2, %v10341_v4 }
 0x190   : > { %8168 = vmatprep.mubr.msk.f32.mxu1 %vm434_vm2, %v10362_v27  ;;  %v12173_v27 = vld [vmem:[#allocation79_spill] sm:$0xff] }
 0x192   : > { %7711 = vmatmul.mubr.msk.f32.gmra.mrb[28].mxu0 %vm434_vm2, %v10357_v23 }
 0x193   : > { %8169 = vmatmul.mubr.msk.f32.vlgmr.msra.gmra.mrb[0].mxu1 %vm434_vm2, %v10375_v61  ;;  %7713 = vmatprep.mubr.msk.f32.mxu0 %vm434_vm2, %v10937_v47  ;;  %v12175_v61 = vld [vmem:[#allocation83_spill] sm:$0xff] }
 0x194   : > { %8171 = vmatprep.mubr.msk.f32.mxu1 %vm434_vm2, %v10384_v22  ;;  %8217 = vmatpush3.msk.msra.mxu1 %vm499_vm0, %v10785_v12  ;;  %v12176_v22 = vld [vmem:[#allocation84_spill] sm:$0xff] }
 0x195   : > { %8266 = vmatprep.subr.msk.mxu1 %vm499_vm0, %v10944_v30 }
 0x196   : > { %7714 = vmatmul.mubr.msk.f32.gmra.mrb[30].mxu0 %vm434_vm2, %v10951_v48 }
 0x197   : > { %8172 = vmatmul.mubr.msk.f32.gmra.mrb[2].mxu1 %vm434_vm2, %v12172_v44  ;;  %7718 = vmatprep.mubr.msk.f32.mxu0 %vm434_vm2, %v12173_v27  ;;  %v12179_v44 = vld [vmem:[#allocation92_spill] sm:$0xff]  ;;  %v12180_v27 = vld [vmem:[#allocation93_spill] sm:$0xff] }
 0x198   : > { %8174 = vmatprep.mubr.msk.f32.mxu1 %vm434_vm2, %v12174_v0  ;;  %v12181_v0 = vld [vmem:[#allocation94_spill] sm:$0xff] }
 0x19a   : > { %7719 = vmatmul.mubr.msk.f32.vlgmr.msra.gmra.mrb[0].mxu0 %vm434_vm2, %v12175_v61  ;;  %v12183_v61 = vld [vmem:[#allocation99_spill] sm:$0xff] }
 0x19b   : > { %7767 = vmatpush3.msk.msra.mxu0 %vm499_vm0, %v10785_v12  ;;  %8175 = vmatmul.mubr.msk.f32.gmra.mrb[4].mxu1 %vm434_vm2, %v12176_v22  ;;  %v12182_v12 = vld [vmem:[#allocation95_spill] sm:$0xff]  ;;  %v12184_v22 = vld [vmem:[#allocation101_spill] sm:$0xff] }
 0x19c   : > { %7721 = vmatprep.mubr.msk.f32.mxu0 %vm434_vm2, %v12177_v40  ;;  %8177 = vmatprep.mubr.msk.f32.mxu1 %vm434_vm2, %v12178_v46  ;;  %v12185_v40 = vld [vmem:[#allocation105_spill] sm:$0xff]  ;;  %v12186_v46 = vld [vmem:[#allocation110_spill] sm:$0xff] }
 0x19d   : > { %7816 = vmatprep.subr.msk.mxu0 %vm499_vm0, %v10944_v30 }
 0x19e   : > { %7722 = vmatmul.mubr.msk.f32.gmra.mrb[2].mxu0 %vm434_vm2, %v12179_v44  ;;  %v12187_v44 = vld [vmem:[#allocation114_spill] sm:$0xff] }
 0x19f   : > { %8178 = vmatmul.mubr.msk.f32.gmra.mrb[6].mxu1 %vm434_vm2, %v12180_v27  ;;  %7724 = vmatprep.mubr.msk.f32.mxu0 %vm434_vm2, %v12181_v0  ;;  %v12188_v27 = vld [vmem:[#allocation115_spill] sm:$0xff]  ;;  %v12189_v0 = vld [vmem:[#allocation116_spill] sm:$0xff] }
 0x1a0   : > { %8180 = vmatprep.mubr.msk.f32.mxu1 %vm434_vm2, %v12182_v12  ;;  %v12190_v12 = vld [vmem:[#allocation117_spill] sm:$0xff] }
 0x1a2   : > { %7725 = vmatmul.mubr.msk.f32.gmra.mrb[4].mxu0 %vm434_vm2, %v12183_v61  ;;  %v12191_v61 = vld [vmem:[#allocation118_spill] sm:$0xff] }
 0x1a3   : > { %8181 = vmatmul.mubr.msk.f32.gmra.mrb[8].mxu1 %vm434_vm2, %v12184_v22  ;;  %7727 = vmatprep.mubr.msk.f32.mxu0 %vm434_vm2, %v12185_v40  ;;  %v8888_v22 = vld [vmem:[%s11566_s1 + $0xd8] sm:$0xff]  ;;  %v8889_v40 = vld [vmem:[%s9075_s10 + $0xc0] sm:$0xff] }
 0x1a4   : > { %8183 = vmatprep.mubr.msk.f32.mxu1 %vm434_vm2, %v12186_v46  ;;  %v8894_v46 = vld [vmem:[%s11566_s1 + $0x108] sm:$0xff] }
 0x1a6   : > { %7728 = vmatmul.mubr.msk.f32.gmra.mrb[6].mxu0 %vm434_vm2, %v12187_v44  ;;  %v8895_v44 = vld [vmem:[%s9075_s10 + $0xe0] sm:$0xff] }
 0x1a7   : > { %8184 = vmatmul.mubr.msk.f32.gmra.mrb[10].mxu1 %vm434_vm2, %v12188_v27  ;;  %7730 = vmatprep.mubr.msk.f32.mxu0 %vm434_vm2, %v12189_v0  ;;  %v8896_v27 = vld [vmem:[%s11566_s1 + $0x110] sm:$0xff] }
 0x1a8   : > { %8186 = vmatprep.mubr.msk.f32.mxu1 %vm434_vm2, %v12190_v12  ;;  %v8897_v0 = vld [vmem:[%s9075_s10 + $0xf0] sm:$0xff]  ;;  %v8898_v12 = vld [vmem:[%s11566_s1 + $0x120] sm:$0xff] }
 0x1aa   : > { %7731 = vmatmul.mubr.msk.f32.gmra.mrb[8].mxu0 %vm434_vm2, %v12191_v61  ;;  %v8899_v61 = vld [vmem:[%s9075_s10 + $0xf8] sm:$0xff] }
 0x1ab   : > { %8187 = vmatmul.mubr.msk.f32.gmra.mrb[12].mxu1 %vm434_vm2, %v10517_v11  ;;  %7733 = vmatprep.mubr.msk.f32.mxu0 %vm434_vm2, %v10522_v3  ;;  %v8890_v3 = vld [vmem:[%s11566_s1 + $0xf0] sm:$0xff]  ;;  %v8891_v11 = vld [vmem:[%s9075_s10 + $0xc8] sm:$0xff] }
 0x1ac   : > { %8189 = vmatprep.mubr.msk.f32.mxu1 %vm434_vm2, %v8888_v22  ;;  %v8900_v22 = vld [vmem:[%s11566_s1 + $0x128] sm:$0xff] }
 0x1ae   : > { %7734 = vmatmul.mubr.msk.f32.gmra.mrb[10].mxu0 %vm434_vm2, %v10529_v2  ;;  %v8892_v2 = vld [vmem:[%s11566_s1 + $0xf8] sm:$0xff] }
 0x1af   : > { %8190 = vmatmul.mubr.msk.f32.gmra.mrb[14].mxu1 %vm434_vm2, %v10536_v19  ;;  %7736 = vmatprep.mubr.msk.f32.mxu0 %vm434_vm2, %v8889_v40  ;;  %v8893_v19 = vld [vmem:[%s9075_s10 + $0xd8] sm:$0xff]  ;;  %v8901_v40 = vld [vmem:[%s9075_s10 + $0x108] sm:$0xff] }
 0x1b0   : > { %8192 = vmatprep.mubr.msk.f32.mxu1 %vm434_vm2, %v8890_v3  ;;  %v8902_v3 = vld [vmem:[%s11566_s1 + $0x138] sm:$0xff] }
 0x1b2   : > { %7737 = vmatmul.mubr.msk.f32.gmra.mrb[12].mxu0 %vm434_vm2, %v8891_v11  ;;  %v8903_v11 = vld [vmem:[%s9075_s10 + $0x110] sm:$0xff] }
 0x1b3   : > { %8193 = vmatmul.mubr.msk.f32.gmra.mrb[16].mxu1 %vm434_vm2, %v8892_v2  ;;  %7739 = vmatprep.mubr.msk.f32.mxu0 %vm434_vm2, %v8893_v19  ;;  %v8904_v2 = vld [vmem:[%s11566_s1 + $0x140] sm:$0xff] }
 0x1b4   : > { %8195 = vmatprep.mubr.msk.f32.mxu1 %vm434_vm2, %v8894_v46  ;;  %v8905_v19 = vld [vmem:[%s9075_s10 + $0x120] sm:$0xff]  ;;  %v8906_v46 = vld [vmem:[%s11566_s1 + $0x150] sm:$0xff] }
 0x1b6   : > { %7740 = vmatmul.mubr.msk.f32.gmra.mrb[14].mxu0 %vm434_vm2, %v8895_v44  ;;  %v8907_v44 = vld [vmem:[%s9075_s10 + $0x128] sm:$0xff] }
 0x1b7   : > { %8196 = vmatmul.mubr.msk.f32.gmra.mrb[18].mxu1 %vm434_vm2, %v8896_v27  ;;  %7742 = vmatprep.mubr.msk.f32.mxu0 %vm434_vm2, %v8897_v0  ;;  %v8908_v27 = vld [vmem:[%s11566_s1 + $0x158] sm:$0xff] }
 0x1b8   : > { %8198 = vmatprep.mubr.msk.f32.mxu1 %vm434_vm2, %v8898_v12  ;;  %v8909_v0 = vld [vmem:[%s9075_s10 + $0x138] sm:$0xff]  ;;  %v8910_v12 = vld [vmem:[%s11566_s1 + $0x168] sm:$0xff] }
 0x1ba   : > { %7743 = vmatmul.mubr.msk.f32.gmra.mrb[16].mxu0 %vm434_vm2, %v8899_v61  ;;  %v8911_v61 = vld [vmem:[%s9075_s10 + $0x140] sm:$0xff] }
 0x1bb   : > { %8199 = vmatmul.mubr.msk.f32.gmra.mrb[20].mxu1 %vm434_vm2, %v8900_v22  ;;  %7745 = vmatprep.mubr.msk.f32.mxu0 %vm434_vm2, %v8901_v40  ;;  %v8912_v22 = vld [vmem:[%s11566_s1 + $0x170] sm:$0xff] }
 0x1bc   : > { %8201 = vmatprep.mubr.msk.f32.mxu1 %vm434_vm2, %v8902_v3  ;;  %v8913_v40 = vld [vmem:[%s9075_s10 + $0x150] sm:$0xff]  ;;  %v11096_v3 = vld [vmem:[%s11566_s1 + $0x198] sm:$0xff] }
 0x1be   : > { %7746 = vmatmul.mubr.msk.f32.gmra.mrb[18].mxu0 %vm434_vm2, %v8903_v11  ;;  %v8914_v11 = vld [vmem:[%s9075_s10 + $0x158] sm:$0xff] }
 0x1bf   : > { %8202 = vmatmul.mubr.msk.f32.gmra.mrb[22].mxu1 %vm434_vm2, %v8904_v2  ;;  %7748 = vmatprep.mubr.msk.f32.mxu0 %vm434_vm2, %v8905_v19  ;;  %v8915_v2 = vld [vmem:[%s9075_s10 + $0x168] sm:$0xff]  ;;  %v8916_v19 = vld [vmem:[%s9075_s10 + $0x170] sm:$0xff] }
 0x1c0   : > { %8204 = vmatprep.mubr.msk.f32.mxu1 %vm434_vm2, %v8906_v46  ;;  %v11129_v46 = vld [vmem:[%s9075_s10 + $0x1a0] sm:$0xff] }
 0x1c2   : > { %7749 = vmatmul.mubr.msk.f32.gmra.mrb[20].mxu0 %vm434_vm2, %v8907_v44  ;;  %v12208_v44 = vld [vmem:[#allocation60_spill] sm:$0xff] }
 0x1c3   : > { %8205 = vmatmul.mubr.msk.f32.gmra.mrb[24].mxu1 %vm434_vm2, %v8908_v27  ;;  %7751 = vmatprep.mubr.msk.f32.mxu0 %vm434_vm2, %v8909_v0  ;;  %v12209_v27 = vld [vmem:[#allocation66_spill] sm:$0xff]  ;;  %v12210_v0 = vld [vmem:[#allocation67_spill] sm:$0xff] }
 0x1c4   : > { %8207 = vmatprep.mubr.msk.f32.mxu1 %vm434_vm2, %v8910_v12  ;;  %v12211_v12 = vld [vmem:[#allocation69_spill] sm:$0xff] }
 0x1c6   : > { %7752 = vmatmul.mubr.msk.f32.gmra.mrb[22].mxu0 %vm434_vm2, %v8911_v61  ;;  %v12212_v61 = vld [vmem:[#allocation71_spill] sm:$0xff] }
 0x1c7   : > { %8208 = vmatmul.mubr.msk.f32.gmra.mrb[26].mxu1 %vm434_vm2, %v8912_v22  ;;  %7754 = vmatprep.mubr.msk.f32.mxu0 %vm434_vm2, %v8913_v40  ;;  %v12213_v22 = vld [vmem:[#allocation76_spill] sm:$0xff]  ;;  %v12214_v40 = vld [vmem:[#allocation77_spill] sm:$0xff] }
 0x1c8   : > { %8210 = vmatprep.mubr.msk.f32.mxu1 %vm434_vm2, %v10587_v21  ;;  %v11109_v21 = vld [vmem:[%s11566_s1 + $0x1a0] sm:$0xff] }
 0x1ca   : > { %7755 = vmatmul.mubr.msk.f32.gmra.mrb[24].mxu0 %vm434_vm2, %v8914_v11  ;;  %v12215_v11 = vld [vmem:[#allocation78_spill] sm:$0xff] }
 0x1cb   : > { %8211 = vmatmul.mubr.msk.f32.gmra.mrb[28].mxu1 %vm434_vm2, %v10600_v42  ;;  %7757 = vmatprep.mubr.msk.f32.mxu0 %vm434_vm2, %v8915_v2  ;;  %v11120_v42 = vld [vmem:[%s9075_s10 + $0x198] sm:$0xff]  ;;  %v12216_v2 = vld [vmem:[#allocation80_spill] sm:$0xff] }
 0x1cc   : > { %8213 = vmatprep.mubr.msk.f32.mxu1 %vm434_vm2, %v11096_v3 }
 0x1ce   : > { %7758 = vmatmul.mubr.msk.f32.gmra.mrb[26].mxu0 %vm434_vm2, %v8916_v19  ;;  %v12217_v19 = vld [vmem:[#allocation86_spill] sm:$0xff] }
 0x1cf   : > { %8214 = vmatmul.mubr.msk.f32.gmra.mrb[30].mxu1 %vm434_vm2, %v11109_v21  ;;  %7760 = vmatprep.mubr.msk.f32.mxu0 %vm434_vm2, %v10611_v49  ;;  %v12192_v49 = vld [vmem:[#allocation32_spill] sm:$0xff] }
 0x1d0   : > { %8218 = vmatprep.mubr.msk.f32.mxu1 %vm434_vm2, %v12080_v38  ;;  %v12194_v38 = vld [vmem:[#allocation35_spill] sm:$0xff] }
 0x1d2   : > { %7761 = vmatmul.mubr.msk.f32.gmra.mrb[28].mxu0 %vm434_vm2, %v10625_v51  ;;  %v12193_v51 = vld [vmem:[#allocation34_spill] sm:$0xff] }
 0x1d3   : > { %8219 = vmatmul.mubr.msk.f32.vlgmr.msra.gmra.mrb[0].mxu1 %vm434_vm2, %v12081_v34  ;;  %7763 = vmatprep.mubr.msk.f32.mxu0 %vm434_vm2, %v11120_v42  ;;  %v12195_v34 = vld [vmem:[#allocation37_spill] sm:$0xff] }
 0x1d4   : > { %8221 = vmatprep.mubr.msk.f32.mxu1 %vm434_vm2, %v12083_v9  ;;  %8267 = vmatpush3.msk.msra.mxu1 %vm499_vm0, %v10944_v30  ;;  %v12196_v9 = vld [vmem:[#allocation39_spill] sm:$0xff] }
 0x1d6   : > { %7764 = vmatmul.mubr.msk.f32.gmra.mrb[30].mxu0 %vm434_vm2, %v11129_v46 }
 0x1d7   : > { %8222 = vmatmul.mubr.msk.f32.gmra.mrb[2].mxu1 %vm434_vm2, %v12085_v13  ;;  %7768 = vmatprep.mubr.msk.f32.mxu0 %vm434_vm2, %v12086_v26  ;;  %v12197_v13 = vld [vmem:[#allocation40_spill] sm:$0xff]  ;;  %v12198_v26 = vld [vmem:[#allocation41_spill] sm:$0xff] }
 0x1d8   : > { %8224 = vmatprep.mubr.msk.f32.mxu1 %vm434_vm2, %v12087_v35  ;;  %v12199_v35 = vld [vmem:[#allocation42_spill] sm:$0xff] }
 0x1da   : > { %7769 = vmatmul.mubr.msk.f32.vlgmr.msra.gmra.mrb[0].mxu0 %vm434_vm2, %v12088_v33  ;;  %v12200_v33 = vld [vmem:[#allocation44_spill] sm:$0xff] }
 0x1db   : > { %7817 = vmatpush3.msk.msra.mxu0 %vm499_vm0, %v10944_v30  ;;  %8225 = vmatmul.mubr.msk.f32.gmra.mrb[4].mxu1 %vm434_vm2, %v12089_v54  ;;  %v12201_v54 = vld [vmem:[#allocation46_spill] sm:$0xff] }
 0x1dc   : > { %7771 = vmatprep.mubr.msk.f32.mxu0 %vm434_vm2, %v12090_v45  ;;  %8227 = vmatprep.mubr.msk.f32.mxu1 %vm434_vm2, %v12091_v7  ;;  %v12202_v45 = vld [vmem:[#allocation47_spill] sm:$0xff]  ;;  %v12203_v7 = vld [vmem:[#allocation49_spill] sm:$0xff]  ;;  %v12207_v30 = vld [vmem:[#allocation58_spill] sm:$0xff] }
 0x1de   : > { %7772 = vmatmul.mubr.msk.f32.gmra.mrb[2].mxu0 %vm434_vm2, %v12092_v56  ;;  %v12204_v56 = vld [vmem:[#allocation51_spill] sm:$0xff] }
 0x1df   : > { %8228 = vmatmul.mubr.msk.f32.gmra.mrb[6].mxu1 %vm434_vm2, %v12093_v57  ;;  %7774 = vmatprep.mubr.msk.f32.mxu0 %vm434_vm2, %v12094_v36  ;;  %v12205_v57 = vld [vmem:[#allocation56_spill] sm:$0xff]  ;;  %v12206_v36 = vld [vmem:[#allocation57_spill] sm:$0xff] }
 0x1e0   : > { %8230 = vmatprep.mubr.msk.f32.mxu1 %vm434_vm2, %v12192_v49  ;;  %v12218_v49 = vld [vmem:[#allocation87_spill] sm:$0xff] }
 0x1e2   : > { %7775 = vmatmul.mubr.msk.f32.gmra.mrb[4].mxu0 %vm434_vm2, %v12193_v51  ;;  %v12219_v51 = vld [vmem:[#allocation89_spill] sm:$0xff] }
 0x1e3   : > { %8231 = vmatmul.mubr.msk.f32.gmra.mrb[8].mxu1 %vm434_vm2, %v12194_v38  ;;  %7777 = vmatprep.mubr.msk.f32.mxu0 %vm434_vm2, %v12195_v34  ;;  %v12220_v38 = vld [vmem:[#allocation91_spill] sm:$0xff]  ;;  %v12221_v34 = vld [vmem:[#allocation96_spill] sm:$0xff] }
 0x1e4   : > { %8233 = vmatprep.mubr.msk.f32.mxu1 %vm434_vm2, %v12196_v9  ;;  %v12222_v9 = vld [vmem:[#allocation97_spill] sm:$0xff] }
 0x1e6   : > { %7778 = vmatmul.mubr.msk.f32.gmra.mrb[6].mxu0 %vm434_vm2, %v12197_v13  ;;  %v12223_v13 = vld [vmem:[#allocation98_spill] sm:$0xff] }
 0x1e7   : > { %8234 = vmatmul.mubr.msk.f32.gmra.mrb[10].mxu1 %vm434_vm2, %v12198_v26  ;;  %7780 = vmatprep.mubr.msk.f32.mxu0 %vm434_vm2, %v12199_v35  ;;  %v12224_v26 = vld [vmem:[#allocation100_spill] sm:$0xff]  ;;  %v12225_v35 = vld [vmem:[#allocation102_spill] sm:$0xff] }
 0x1e8   : > { %8236 = vmatprep.mubr.msk.f32.mxu1 %vm434_vm2, %v12200_v33  ;;  %v12226_v33 = vld [vmem:[#allocation103_spill] sm:$0xff] }
 0x1ea   : > { %7781 = vmatmul.mubr.msk.f32.gmra.mrb[8].mxu0 %vm434_vm2, %v12201_v54  ;;  %v12227_v54 = vld [vmem:[#allocation104_spill] sm:$0xff] }
 0x1eb   : > { %8237 = vmatmul.mubr.msk.f32.gmra.mrb[12].mxu1 %vm434_vm2, %v12202_v45  ;;  %7783 = vmatprep.mubr.msk.f32.mxu0 %vm434_vm2, %v12203_v7  ;;  %v12228_v45 = vld [vmem:[#allocation106_spill] sm:$0xff]  ;;  %v5412_v7 = vrot.slane %v11096_v3, 1 }
 0x1ec   : > { %8239 = vmatprep.mubr.msk.f32.mxu1 %vm434_vm2, %v12204_v56  ;;  %v5413_v56 = vrot.slane %v11109_v21, 1 }
 0x1ee   : > { %7784 = vmatmul.mubr.msk.f32.gmra.mrb[10].mxu0 %vm434_vm2, %v12205_v57  ;;  %v11238_v57 = vld [vmem:[%s11566_s1 + $0x1a8] sm:$0x3] }
 0x1ef   : > { %8240 = vmatmul.mubr.msk.f32.gmra.mrb[14].mxu1 %vm434_vm2, %v12206_v36  ;;  %7786 = vmatprep.mubr.msk.f32.mxu0 %vm434_vm2, %v12207_v30  ;;  %v12229_v36 = vld [vmem:[#allocation107_spill] sm:$0xff]  ;;  %v12230_v30 = vld [vmem:[#allocation108_spill] sm:$0xff] }
 0x1f0   : > { %8242 = vmatprep.mubr.msk.f32.mxu1 %vm434_vm2, %v12208_v44  ;;  %v12231_v44 = vld [vmem:[#allocation109_spill] sm:$0xff] }
 0x1f2   : > { %7787 = vmatmul.mubr.msk.f32.gmra.mrb[12].mxu0 %vm434_vm2, %v12209_v27  ;;  %v12232_v27 = vld [vmem:[#allocation5_spill] sm:$0xff] }
 0x1f3   : > { %8243 = vmatmul.mubr.msk.f32.gmra.mrb[16].mxu1 %vm434_vm2, %v12210_v0  ;;  %7789 = vmatprep.mubr.msk.f32.mxu0 %vm434_vm2, %v12211_v12  ;;  %v5415_v0 = vrot.slane %v11238_v57, 1  ;;  %v5414_v12 = vsel %vm351_vm1, %v5412_v7, %v5413_v56  ;;  %v12262_v7 = vld [vmem:[#allocation72_spill] sm:$0xff] }
 0x1f4   : > { %8245 = vmatprep.mubr.msk.f32.mxu1 %vm434_vm2, %v12212_v61  ;;  %v12233_v61 = vld [vmem:[#allocation112_spill] sm:$0xff] }
 0x1f6   : > { %7790 = vmatmul.mubr.msk.f32.gmra.mrb[14].mxu0 %vm434_vm2, %v12213_v22  ;;  %v2507_v22 = vrot.slane %v11120_v42, 1 }
 0x1f7   : > { %8246 = vmatmul.mubr.msk.f32.gmra.mrb[18].mxu1 %vm434_vm2, %v12214_v40  ;;  %7792 = vmatprep.mubr.msk.f32.mxu0 %vm434_vm2, %v12215_v11  ;;  %v2508_v40 = vrot.slane %v11129_v46, 1  ;;  %v5416_v11 = vsel %vm351_vm1, %v5413_v56, %v5415_v0  ;;  %v8927_v56 = vmov 0.0  }
 0x1f8   : > { %8248 = vmatprep.mubr.msk.f32.mxu1 %vm434_vm2, %v12216_v2  ;;  %v11261_v2 = vld [vmem:[%s9075_s10 + $0x1a8] sm:$0x3] }
 0x1fa   : > { %7793 = vmatmul.mubr.msk.f32.gmra.mrb[16].mxu0 %vm434_vm2, %v12217_v19  ;;  %v12249_v19 = vld [vmem:[#allocation12_spill] sm:$0xff] }
 0x1fb   : > { %8249 = vmatmul.mubr.msk.f32.gmra.mrb[20].mxu1 %vm434_vm2, %v12218_v49  ;;  %7795 = vmatprep.mubr.msk.f32.mxu0 %vm434_vm2, %v12219_v51  ;;  %v12250_v49 = vld [vmem:[#allocation13_spill] sm:$0xff]  ;;  %v12251_v51 = vld [vmem:[#allocation19_spill] sm:$0xff] }
 0x1fc   : > { %8251 = vmatprep.mubr.msk.f32.mxu1 %vm434_vm2, %v12220_v38  ;;  %v12252_v38 = vld [vmem:[#allocation20_spill] sm:$0xff] }
 0x1fe   : > { %7796 = vmatmul.mubr.msk.f32.gmra.mrb[18].mxu0 %vm434_vm2, %v12221_v34  ;;  %v12253_v34 = vld [vmem:[#allocation25_spill] sm:$0xff] }
 0x1ff   : > { %8252 = vmatmul.mubr.msk.f32.gmra.mrb[22].mxu1 %vm434_vm2, %v12222_v9  ;;  %7798 = vmatprep.mubr.msk.f32.mxu0 %vm434_vm2, %v12223_v13  ;;  %v12254_v9 = vld [vmem:[#allocation26_spill] sm:$0xff]  ;;  %v12255_v13 = vld [vmem:[#allocation31_spill] sm:$0xff] }
 0x200   : > { %8254 = vmatprep.mubr.msk.f32.mxu1 %vm434_vm2, %v12224_v26  ;;  %v12256_v26 = vld [vmem:[#allocation33_spill] sm:$0xff] }
 0x202   : > { %7799 = vmatmul.mubr.msk.f32.gmra.mrb[20].mxu0 %vm434_vm2, %v12225_v35  ;;  %v12257_v35 = vld [vmem:[#allocation36_spill] sm:$0xff] }
 0x203   : > { %8255 = vmatmul.mubr.msk.f32.gmra.mrb[24].mxu1 %vm434_vm2, %v12226_v33  ;;  %7801 = vmatprep.mubr.msk.f32.mxu0 %vm434_vm2, %v12227_v54  ;;  %v12258_v33 = vld [vmem:[#allocation43_spill] sm:$0xff]  ;;  %v12259_v54 = vld [vmem:[#allocation45_spill] sm:$0xff] }
 0x204   : > { %8257 = vmatprep.mubr.msk.f32.mxu1 %vm434_vm2, %v12228_v45  ;;  %v12260_v45 = vld [vmem:[#allocation68_spill] sm:$0xff] }
 0x206   : > { %7802 = vmatmul.mubr.msk.f32.gmra.mrb[22].mxu0 %vm434_vm2, %v12229_v36 }
 0x207   : > { %8258 = vmatmul.mubr.msk.f32.gmra.mrb[26].mxu1 %vm434_vm2, %v12230_v30  ;;  %7804 = vmatprep.mubr.msk.f32.mxu0 %vm434_vm2, %v12231_v44 }
 0x208   : > { %8260 = vmatprep.mubr.msk.f32.mxu1 %vm434_vm2, %v12232_v27 }
 0x20a   : > { %7805 = vmatmul.mubr.msk.f32.gmra.mrb[24].mxu0 %vm434_vm2, %v12136_v50  ;;  %v2510_v50 = vrot.slane %v11261_v2, 1 }
 0x20b   : > { %8261 = vmatmul.mubr.msk.f32.gmra.mrb[28].mxu1 %vm434_vm2, %v10763_v6  ;;  %7807 = vmatprep.mubr.msk.f32.mxu0 %vm434_vm2, %v12233_v61  ;;  %v2509_v6 = vsel %vm351_vm1, %v2507_v22, %v2508_v40 }
 0x20c   : > { %8263 = vmatprep.mubr.msk.f32.mxu1 %vm434_vm2, %v5414_v12 }
 0x20e   : > { %7808 = vmatmul.mubr.msk.f32.gmra.mrb[26].mxu0 %vm434_vm2, %v12139_v43  ;;  %v2511_v43 = vsel %vm351_vm1, %v2508_v40, %v2510_v50 }
 0x20f   : > { %8264 = vmatmul.mubr.msk.f32.gmra.mrb[30].mxu1 %vm434_vm2, %v5416_v11  ;;  %7810 = vmatprep.mubr.msk.f32.mxu0 %vm434_vm2, %v10778_v14  ;;  %v12248_v14 = vld [vmem:[#allocation6_spill] sm:$0xff] }
 0x210   : > { %8268 = vmatprep.mubr.msk.f32.mxu1 %vm434_vm2, %v9963_v1  ;;  %v12234_v1 = vld [vmem:[#allocation54_spill] sm:$0xff] }
 0x212   : > { %7811 = vmatmul.mubr.msk.f32.gmra.mrb[28].mxu0 %vm434_vm2, %v10792_v16  ;;  %v12247_v16 = vld [vmem:[#allocation11_spill] sm:$0xff] }
 0x213   : > { %8269 = vmatmul.mubr.msk.f32.vlgmr.msra.gmra.mrb[0].mxu1 %vm434_vm2, %v9980_v20  ;;  %7813 = vmatprep.mubr.msk.f32.mxu0 %vm434_vm2, %v2509_v6  ;;  %v12235_v20 = vld [vmem:[#allocation53_spill] sm:$0xff] }
 0x214   : > { %8271 = vmatprep.mubr.msk.f32.mxu1 %vm434_vm2, %v9989_v17  ;;  %v12236_v17 = vld [vmem:[#allocation55_spill] sm:$0xff] }
 0x216   : > { %7814 = vmatmul.mubr.msk.f32.gmra.mrb[30].mxu0 %vm434_vm2, %v2511_v43 }
 0x217   : > { %8272 = vmatmul.mubr.msk.f32.gmra.mrb[2].mxu1 %vm434_vm2, %v10008_v24  ;;  %7818 = vmatprep.mubr.msk.f32.mxu0 %vm434_vm2, %v10011_v29  ;;  %v12237_v24 = vld [vmem:[#allocation62_spill] sm:$0xff]  ;;  %v12238_v29 = vld [vmem:[#allocation64_spill] sm:$0xff] }
 0x218   : > { %8274 = vmatprep.mubr.msk.f32.mxu1 %vm434_vm2, %v10016_v52  ;;  %v12239_v52 = vld [vmem:[#allocation63_spill] sm:$0xff] }
 0x21a   : > { %7819 = vmatmul.mubr.msk.f32.vlgmr.msra.gmra.mrb[0].mxu0 %vm434_vm2, %v10029_v58  ;;  %v12240_v58 = vld [vmem:[#allocation65_spill] sm:$0xff] }
 0x21b   : > { %8275 = vmatmul.mubr.msk.f32.gmra.mrb[4].mxu1 %vm434_vm2, %v10032_v59  ;;  %7821 = vmatprep.mubr.msk.f32.mxu0 %vm434_vm2, %v10038_v8  ;;  %v12241_v59 = vld [vmem:[#allocation82_spill] sm:$0xff]  ;;  %v12242_v8 = vld [vmem:[#allocation85_spill] sm:$0xff] }
 0x21c   : > { %8277 = vmatprep.mubr.msk.f32.mxu1 %vm434_vm2, %v10044_v55  ;;  %v12243_v55 = vld [vmem:[#allocation2_spill] sm:$0xff] }
 0x21e   : > { %7822 = vmatmul.mubr.msk.f32.gmra.mrb[2].mxu0 %vm434_vm2, %v10055_v18  ;;  %v12244_v18 = vld [vmem:[#allocation3_spill] sm:$0xff] }
 0x21f   : > { %8278 = vmatmul.mubr.msk.f32.gmra.mrb[6].mxu1 %vm434_vm2, %v10062_v25  ;;  %7824 = vmatprep.mubr.msk.f32.mxu0 %vm434_vm2, %v10065_v28  ;;  %v12245_v25 = vld [vmem:[#allocation8_spill] sm:$0xff] }
 0x220   : > { %8280 = vmatprep.mubr.msk.f32.mxu1 %vm434_vm2, %v12234_v1  ;;  %v12246_v28 = vld [vmem:[#allocation4_spill] sm:$0xff] }
 0x222   : > { %7825 = vmatmul.mubr.msk.f32.gmra.mrb[4].mxu0 %vm434_vm2, %v12235_v20 }
 0x223   : > { %8281 = vmatmul.mubr.msk.f32.gmra.mrb[8].mxu1 %vm434_vm2, %v12236_v17  ;;  %7827 = vmatprep.mubr.msk.f32.mxu0 %vm434_vm2, %v12237_v24 }
 0x224   : > { %8283 = vmatprep.mubr.msk.f32.mxu1 %vm434_vm2, %v12238_v29 }
 0x226   : > { %7828 = vmatmul.mubr.msk.f32.gmra.mrb[6].mxu0 %vm434_vm2, %v12239_v52 }
 0x227   : > { %8284 = vmatmul.mubr.msk.f32.gmra.mrb[10].mxu1 %vm434_vm2, %v12240_v58  ;;  %7830 = vmatprep.mubr.msk.f32.mxu0 %vm434_vm2, %v12241_v59 }
 0x228   : > { %8286 = vmatprep.mubr.msk.f32.mxu1 %vm434_vm2, %v12242_v8 }
 0x22a   : > { %7831 = vmatmul.mubr.msk.f32.gmra.mrb[8].mxu0 %vm434_vm2, %v12243_v55 }
 0x22b   : > { %8287 = vmatmul.mubr.msk.f32.gmra.mrb[12].mxu1 %vm434_vm2, %v12244_v18  ;;  %7833 = vmatprep.mubr.msk.f32.mxu0 %vm434_vm2, %v12245_v25 }
 0x22c   : > { %8289 = vmatprep.mubr.msk.f32.mxu1 %vm434_vm2, %v12246_v28 }
 0x22e   : > { %7834 = vmatmul.mubr.msk.f32.gmra.mrb[10].mxu0 %vm434_vm2, %v12247_v16 }
 0x22f   : > { %8290 = vmatmul.mubr.msk.f32.gmra.mrb[14].mxu1 %vm434_vm2, %v12248_v14  ;;  %7836 = vmatprep.mubr.msk.f32.mxu0 %vm434_vm2, %v12249_v19 }
 0x230   : > { %8292 = vmatprep.mubr.msk.f32.mxu1 %vm434_vm2, %v12250_v49 }
 0x232   : > { %7837 = vmatmul.mubr.msk.f32.gmra.mrb[12].mxu0 %vm434_vm2, %v12251_v51 }
 0x233   : > { %8293 = vmatmul.mubr.msk.f32.gmra.mrb[16].mxu1 %vm434_vm2, %v12252_v38  ;;  %7839 = vmatprep.mubr.msk.f32.mxu0 %vm434_vm2, %v12253_v34 }
 0x234   : > { %8295 = vmatprep.mubr.msk.f32.mxu1 %vm434_vm2, %v12254_v9 }
 0x236   : > { %7840 = vmatmul.mubr.msk.f32.gmra.mrb[14].mxu0 %vm434_vm2, %v12255_v13 }
 0x237   : > { %8296 = vmatmul.mubr.msk.f32.gmra.mrb[18].mxu1 %vm434_vm2, %v12256_v26  ;;  %7842 = vmatprep.mubr.msk.f32.mxu0 %vm434_vm2, %v12257_v35 }
 0x238   : > { %8298 = vmatprep.mubr.msk.f32.mxu1 %vm434_vm2, %v12164_v10  ;;  %v12261_v10 = vld [vmem:[#allocation70_spill] sm:$0xff] }
 0x23a   : > { %7843 = vmatmul.mubr.msk.f32.gmra.mrb[16].mxu0 %vm434_vm2, %v12258_v33 }
 0x23b   : > { %8299 = vmatmul.mubr.msk.f32.gmra.mrb[20].mxu1 %vm434_vm2, %v12259_v54  ;;  %7845 = vmatprep.mubr.msk.f32.mxu0 %vm434_vm2, %v12167_v15  ;;  %v12263_v15 = vld [vmem:[#allocation73_spill] sm:$0xff] }
 0x23c   : > { %8301 = vmatprep.mubr.msk.f32.mxu1 %vm434_vm2, %v12168_v53  ;;  %v5678_v53 = vrot.slane %v11096_v3, 2  ;;  %v8925_v3 = vmov 0.0|0.0  }
 0x23d   : > { %8327 = vmatprep.subr.bf16.mxu0 %v8925_v3 }
 0x23e   : > { %7846 = vmatmul.mubr.msk.f32.gmra.mrb[18].mxu0 %vm434_vm2, %v12169_v39  ;;  %v5679_v39 = vrot.slane %v11109_v21, 2 }
 0x23f   : > { %8302 = vmatmul.mubr.msk.f32.gmra.mrb[22].mxu1 %vm434_vm2, %v12170_v41  ;;  %7848 = vmatprep.mubr.msk.f32.mxu0 %vm434_vm2, %v12260_v45  ;;  %v5681_v41 = vrot.slane %v11238_v57, 2  ;;  %v11424_v57 = vld [vmem:[%s11568_s3] ss:$0 sm:$0xff] }
 0x240   : > { %8304 = vmatprep.mubr.msk.f32.mxu1 %vm434_vm2, %v12261_v10 }
 0x242   : > { %7849 = vmatmul.mubr.msk.f32.gmra.mrb[20].mxu0 %vm434_vm2, %v10289_v62  ;;  %v12264_v62 = vld [vmem:[#allocation74_spill] sm:$0xff] }
 0x243   : > { %8305 = vmatmul.mubr.msk.f32.gmra.mrb[24].mxu1 %vm434_vm2, %v12262_v7  ;;  %7851 = vmatprep.mubr.msk.f32.mxu0 %vm434_vm2, %v12263_v15 }
 0x244   : > { %8307 = vmatprep.mubr.msk.f32.mxu1 %vm434_vm2, %v10304_v32  ;;  %v5680_v32 = vsel %vm1020_vm3, %v5678_v53, %v5679_v39 }
 0x246   : > { %7852 = vmatmul.mubr.msk.f32.gmra.mrb[22].mxu0 %vm434_vm2, %v10313_v63  ;;  %v2778_v63 = vrot.slane %v11120_v42, 2  ;;  %v6082_v42 = vld [vmem:[%s11569_s4 + $0x18] sm:$0xff] }
 0x247   : > { %8308 = vmatmul.mubr.msk.f32.gmra.mrb[26].mxu1 %vm434_vm2, %v10319_v37  ;;  %7854 = vmatprep.mubr.msk.f32.mxu0 %vm434_vm2, %v12264_v62  ;;  %v2779_v37 = vrot.slane %v11129_v46, 2 }
 0x248   : > { %8310 = vmatprep.mubr.msk.f32.mxu1 %vm434_vm2, %v10912_v31  ;;  %v5682_v31 = vsel %vm1020_vm3, %v5679_v39, %v5681_v41 }
 0x24a   : > { %7855 = vmatmul.mubr.msk.f32.gmra.mrb[24].mxu0 %vm434_vm2, %v10333_v5  ;;  %v2781_v5 = vrot.slane %v11261_v2, 2 }
 0x24b   : > { %8311 = vmatmul.mubr.msk.f32.gmra.mrb[28].mxu1 %vm434_vm2, %v10925_v60  ;;  %7857 = vmatprep.mubr.msk.f32.mxu0 %vm434_vm2, %v10341_v4  ;;  %v2780_v4 = vsel %vm1020_vm3, %v2778_v63, %v2779_v37 }
 0x24c   : > { %8313 = vmatprep.mubr.msk.f32.mxu1 %vm434_vm2, %v5680_v32  ;;  %v2782_v60 = vsel %vm1020_vm3, %v2779_v37, %v2781_v5 }
 0x24e   : > { %7858 = vmatmul.mubr.msk.f32.gmra.mrb[26].mxu0 %vm434_vm2, %v10357_v23  ;;  %v6079_v23 = vld [vmem:[%s11569_s4] sm:$0xff] }
 0x24f   : > { %8314 = vmatmul.mubr.msk.f32.gmra.mrb[30].mxu1 %vm434_vm2, %v5682_v31  ;;  %7860 = vmatprep.mubr.msk.f32.mxu0 %vm434_vm2, %v10937_v47  ;;  %v6080_v47 = vld [vmem:[%s11569_s4 + $0x8] sm:$0xff] }
 0x250   : > { %v8328_v21 = vpack.c.bf16 %v6080_v47, %v6079_v23 }
 0x252   : > { %7861 = vmatmul.mubr.msk.f32.gmra.mrb[28].mxu0 %vm434_vm2, %v10951_v48  ;;  %v6081_v48 = vld [vmem:[%s11569_s4 + $0x10] sm:$0xff] }
 0x253   : > { %7863 = vmatprep.mubr.msk.f32.mxu0 %vm434_vm2, %v2780_v4  ;;  %8329 = vmatpush3.bf16.msra.mxu0 %v8328_v21  ;;  %v8331_v46 = vpack.c.bf16 %v6082_v42, %v6081_v48 }
 0x254   : > { %8330 = vmatprep.subr.bf16.mxu0 %v8925_v3 }
 0x256   : > { %7864 = vmatmul.mubr.msk.f32.gmra.mrb[30].mxu0 %vm434_vm2, %v2782_v60 }
 0x257   : > { %8332 = vmatpush3.bf16.msra.mxu0 %v8331_v46  ;;  %8324 = vmatprep.mubr.msk.f32.mxu0 %vm8926_vm4, %v8927_v56 }
 0x2e6   : > { %v8270_v36 = vpop.f32.mrb[0].mxu1 }
 0x2e7   : > { %v5945_v30 = vadd.f32 %v8270_v36, %v11424_v57  ;;  %v5753_v44 = vpop.f32.mrb[1].mxu1 }
 0x2e8   : > { %v5944_v27 = vadd.f32 %v11424_v57, %v5753_v44 }
 0x2e9   : > { %v5977_v0 = vmax.f32 %v5945_v30, 0.0 }
 0x2ea   : > { %v5976_v12 = vmax.f32 %v5944_v27, 0.0  ;;  %v8273_v61 = vpop.f32.mrb[2].mxu1 }
 0x2eb   : > { %v6009_v22 = vsel %vm3120_vm5, %v5977_v0, 0.0  ;;  %v5947_v40 = vadd.f32 %v8273_v61, %v11424_v57  ;;  %v5763_v11 = vpop.f32.mrb[3].mxu1 }
 0x2ec   : > { %v6008_v2 = vsel %vm3120_vm5, %v5976_v12, 0.0  ;;  %v5946_v50 = vadd.f32 %v11424_v57, %v5763_v11 }
 0x2ed   : > { %v6010_v6 = vadd.f32 %v6009_v22, %v6008_v2  ;;  %v5979_v43 = vmax.f32 %v5947_v40, 0.0  ;;  %v7820_v1 = vpop.f32.mrb[0].mxu0 }
 0x2ee   : > { %v5978_v20 = vmax.f32 %v5946_v50, 0.0  ;;  %v3057_v17 = vadd.f32 %v7820_v1, %v11424_v57  ;;  %v2858_v24 = vpop.f32.mrb[1].mxu0  ;;  %v8276_v29 = vpop.f32.mrb[4].mxu1 }
 0x2ef   : > { %v3056_v52 = vadd.f32 %v11424_v57, %v2858_v24  ;;  %v5949_v58 = vadd.f32 %v8276_v29, %v11424_v57  ;;  %v5773_v59 = vpop.f32.mrb[5].mxu1  ;;  %v6013_v25 = vsel %vm3120_vm5, %v5979_v43, 0.0 }
 0x2f0   : > { %v6011_v8 = vsel %vm3120_vm5, %v5978_v20, 0.0  ;;  %v3089_v55 = vmax.f32 %v3057_v17, 0.0  ;;  %v5948_v18 = vadd.f32 %v11424_v57, %v5773_v59 }
 0x2f1   : > { %v6012_v28 = vadd.f32 %v6011_v8, %v6010_v6  ;;  %v3088_v16 = vmax.f32 %v3056_v52, 0.0  ;;  %v7823_v14 = vpop.f32.mrb[2].mxu0  ;;  %v5981_v49 = vmax.f32 %v5949_v58, 0.0 }
 0x2f2   : > { %v3122_v19 = vsel %vm3120_vm5, %v3089_v55, 0.0  ;;  %v5980_v51 = vmax.f32 %v5948_v18, 0.0  ;;  %v3059_v38 = vadd.f32 %v7823_v14, %v11424_v57  ;;  %v2868_v34 = vpop.f32.mrb[3].mxu0  ;;  %v8279_v9 = vpop.f32.mrb[6].mxu1 }
 0x2f3   : > { %v3121_v13 = vsel %vm3120_vm5, %v3088_v16, 0.0  ;;  %v6014_v26 = vadd.f32 %v6013_v25, %v6012_v28  ;;  %v3058_v35 = vadd.f32 %v11424_v57, %v2868_v34  ;;  %v5783_v33 = vpop.f32.mrb[7].mxu1  ;;  %v5951_v10 = vadd.f32 %v8279_v9, %v11424_v57 }
 0x2f4   : > { %v3123_v54 = vadd.f32 %v3122_v19, %v3121_v13  ;;  %v6015_v45 = vsel %vm3120_vm5, %v5980_v51, 0.0  ;;  %v3091_v15 = vmax.f32 %v3059_v38, 0.0  ;;  %v5950_v39 = vadd.f32 %v11424_v57, %v5783_v33 }
 0x2f5   : > { %v6016_v7 = vadd.f32 %v6015_v45, %v6014_v26  ;;  %v3090_v53 = vmax.f32 %v3058_v35, 0.0  ;;  %v7826_v62 = vpop.f32.mrb[4].mxu0  ;;  %v6017_v41 = vsel %vm3120_vm5, %v5981_v49, 0.0  ;;  %v5983_v32 = vmax.f32 %v5951_v10, 0.0 }
 0x2f6   : > { %v3061_v63 = vadd.f32 %v7826_v62, %v11424_v57  ;;  %v2878_v37 = vpop.f32.mrb[5].mxu0  ;;  %v8282_v31 = vpop.f32.mrb[8].mxu1  ;;  %v5982_v4 = vmax.f32 %v5950_v39, 0.0  ;;  %v3126_v42 = vsel %vm3120_vm5, %v3091_v15, 0.0 }
 0x2f7   : > { %v3124_v5 = vsel %vm3120_vm5, %v3090_v53, 0.0  ;;  %v6018_v60 = vadd.f32 %v6017_v41, %v6016_v7  ;;  %v3060_v23 = vadd.f32 %v11424_v57, %v2878_v37  ;;  %v5793_v47 = vpop.f32.mrb[9].mxu1  ;;  %v5953_v48 = vadd.f32 %v8282_v31, %v11424_v57 }
 0x2f8   : > { %v3125_v3 = vadd.f32 %v3124_v5, %v3123_v54  ;;  %v3093_v21 = vmax.f32 %v3061_v63, 0.0  ;;  %v6019_v46 = vsel %vm3120_vm5, %v5982_v4, 0.0  ;;  %v5952_v36 = vadd.f32 %v11424_v57, %v5793_v47 }
 0x2f9   : > { %v3092_v56 = vmax.f32 %v3060_v23, 0.0  ;;  %v7829_v30 = vpop.f32.mrb[6].mxu0  ;;  %v6021_v44 = vsel %vm3120_vm5, %v5983_v32, 0.0  ;;  %v6020_v27 = vadd.f32 %v6019_v46, %v6018_v60  ;;  %v5985_v12 = vmax.f32 %v5953_v48, 0.0 }
 0x2fa   : > { %v3127_v0 = vadd.f32 %v3126_v42, %v3125_v3  ;;  %v2888_v61 = vpop.f32.mrb[7].mxu0  ;;  %v8285_v22 = vpop.f32.mrb[10].mxu1  ;;  %v5984_v11 = vmax.f32 %v5952_v36, 0.0  ;;  %v3063_v2 = vadd.f32 %v7829_v30, %v11424_v57  ;;  %v3130_v43 = vsel %vm3120_vm5, %v3093_v21, 0.0 }
 0x2fb   : > { %v3128_v40 = vsel %vm3120_vm5, %v3092_v56, 0.0  ;;  %v3062_v50 = vadd.f32 %v11424_v57, %v2888_v61  ;;  %v5803_v6 = vpop.f32.mrb[11].mxu1  ;;  %v6022_v20 = vadd.f32 %v6021_v44, %v6020_v27  ;;  %v5955_v17 = vadd.f32 %v8285_v22, %v11424_v57 }
 0x2fc   : > { %v3129_v1 = vadd.f32 %v3128_v40, %v3127_v0  ;;  %v6023_v24 = vsel %vm3120_vm5, %v5984_v11, 0.0  ;;  %v3095_v29 = vmax.f32 %v3063_v2, 0.0  ;;  %v5954_v58 = vadd.f32 %v11424_v57, %v5803_v6 }
 0x2fd   : > { %v3094_v52 = vmax.f32 %v3062_v50, 0.0  ;;  %v7832_v59 = vpop.f32.mrb[8].mxu0  ;;  %v6024_v8 = vadd.f32 %v6023_v24, %v6022_v20  ;;  %v5987_v18 = vmax.f32 %v5955_v17, 0.0  ;;  %v6025_v14 = vsel %vm3120_vm5, %v5985_v12, 0.0 }
 0x2fe   : > { %v3131_v55 = vadd.f32 %v3130_v43, %v3129_v1  ;;  %v3065_v25 = vadd.f32 %v7832_v59, %v11424_v57  ;;  %v2898_v28 = vpop.f32.mrb[9].mxu0  ;;  %v8288_v16 = vpop.f32.mrb[12].mxu1  ;;  %v5986_v49 = vmax.f32 %v5954_v58, 0.0  ;;  %v3134_v34 = vsel %vm3120_vm5, %v3095_v29, 0.0 }
 0x2ff   : > { %v3132_v19 = vsel %vm3120_vm5, %v3094_v52, 0.0  ;;  %v3064_v51 = vadd.f32 %v11424_v57, %v2898_v28  ;;  %v5813_v38 = vpop.f32.mrb[13].mxu1  ;;  %v6026_v13 = vadd.f32 %v6025_v14, %v6024_v8  ;;  %v5957_v54 = vadd.f32 %v8288_v16, %v11424_v57 }
 0x300   : > { %v3133_v9 = vadd.f32 %v3132_v19, %v3131_v55  ;;  %v3097_v26 = vmax.f32 %v3065_v25, 0.0  ;;  %v6027_v35 = vsel %vm3120_vm5, %v5986_v49, 0.0  ;;  %v5956_v45 = vadd.f32 %v11424_v57, %v5813_v38 }
 0x301   : > { %v3096_v33 = vmax.f32 %v3064_v51, 0.0  ;;  %v7835_v10 = vpop.f32.mrb[10].mxu0  ;;  %v6029_v7 = vsel %vm3120_vm5, %v5987_v18, 0.0  ;;  %v6028_v15 = vadd.f32 %v6027_v35, %v6026_v13  ;;  %v5989_v63 = vmax.f32 %v5957_v54, 0.0 }
 0x302   : > { %v3135_v53 = vadd.f32 %v3134_v34, %v3133_v9  ;;  %v3067_v39 = vadd.f32 %v7835_v10, %v11424_v57  ;;  %v2908_v62 = vpop.f32.mrb[11].mxu0  ;;  %v8291_v41 = vpop.f32.mrb[14].mxu1  ;;  %v5988_v37 = vmax.f32 %v5956_v45, 0.0  ;;  %v3138_v3 = vsel %vm3120_vm5, %v3097_v26, 0.0 }
 0x303   : > { %v3136_v32 = vsel %vm3120_vm5, %v3096_v33, 0.0  ;;  %v3066_v31 = vadd.f32 %v11424_v57, %v2908_v62  ;;  %v5823_v5 = vpop.f32.mrb[15].mxu1  ;;  %v6030_v60 = vadd.f32 %v6029_v7, %v6028_v15  ;;  %v5959_v47 = vadd.f32 %v8291_v41, %v11424_v57 }
 0x304   : > { %v3137_v4 = vadd.f32 %v3136_v32, %v3135_v53  ;;  %v3099_v23 = vmax.f32 %v3067_v39, 0.0  ;;  %v6031_v21 = vsel %vm3120_vm5, %v5988_v37, 0.0  ;;  %v5958_v42 = vadd.f32 %v11424_v57, %v5823_v5 }
 0x305   : > { %v3098_v48 = vmax.f32 %v3066_v31, 0.0  ;;  %v7838_v46 = vpop.f32.mrb[12].mxu0  ;;  %v6033_v56 = vsel %vm3120_vm5, %v5989_v63, 0.0  ;;  %v6032_v36 = vadd.f32 %v6031_v21, %v6030_v60  ;;  %v5991_v44 = vmax.f32 %v5959_v47, 0.0 }
 0x306   : > { %v3139_v30 = vadd.f32 %v3138_v3, %v3137_v4  ;;  %v2918_v27 = vpop.f32.mrb[13].mxu0  ;;  %v8294_v0 = vpop.f32.mrb[16].mxu1  ;;  %v5990_v61 = vmax.f32 %v5958_v42, 0.0  ;;  %v3069_v22 = vadd.f32 %v7838_v46, %v11424_v57  ;;  %v3142_v2 = vsel %vm3120_vm5, %v3099_v23, 0.0 }
 0x307   : > { %v3140_v12 = vsel %vm3120_vm5, %v3098_v48, 0.0  ;;  %v3068_v40 = vadd.f32 %v11424_v57, %v2918_v27  ;;  %v5833_v11 = vpop.f32.mrb[17].mxu1  ;;  %v6034_v6 = vadd.f32 %v6033_v56, %v6032_v36  ;;  %v5961_v43 = vadd.f32 %v8294_v0, %v11424_v57 }
 0x308   : > { %v3141_v50 = vadd.f32 %v3140_v12, %v3139_v30  ;;  %v6035_v1 = vsel %vm3120_vm5, %v5990_v61, 0.0  ;;  %v3101_v20 = vmax.f32 %v3069_v22, 0.0  ;;  %v5960_v24 = vadd.f32 %v11424_v57, %v5833_v11 }
 0x309   : > { %v3100_v17 = vmax.f32 %v3068_v40, 0.0  ;;  %v7841_v29 = vpop.f32.mrb[14].mxu0  ;;  %v6036_v52 = vadd.f32 %v6035_v1, %v6034_v6  ;;  %v5993_v59 = vmax.f32 %v5961_v43, 0.0  ;;  %v6037_v25 = vsel %vm3120_vm5, %v5991_v44, 0.0 }
 0x30a   : > { %v3143_v58 = vadd.f32 %v3142_v2, %v3141_v50  ;;  %v3071_v8 = vadd.f32 %v7841_v29, %v11424_v57  ;;  %v2928_v55 = vpop.f32.mrb[15].mxu0  ;;  %v8297_v18 = vpop.f32.mrb[18].mxu1  ;;  %v5992_v16 = vmax.f32 %v5960_v24, 0.0  ;;  %v3146_v49 = vsel %vm3120_vm5, %v3101_v20, 0.0 }
 0x30b   : > { %v3144_v28 = vsel %vm3120_vm5, %v3100_v17, 0.0  ;;  %v3070_v14 = vadd.f32 %v11424_v57, %v2928_v55  ;;  %v5843_v19 = vpop.f32.mrb[19].mxu1  ;;  %v6038_v38 = vadd.f32 %v6037_v25, %v6036_v52  ;;  %v5963_v26 = vadd.f32 %v8297_v18, %v11424_v57 }
 0x30c   : > { %v3145_v51 = vadd.f32 %v3144_v28, %v3143_v58  ;;  %v3103_v34 = vmax.f32 %v3071_v8, 0.0  ;;  %v6039_v9 = vsel %vm3120_vm5, %v5992_v16, 0.0  ;;  %v5962_v35 = vadd.f32 %v11424_v57, %v5843_v19 }
 0x30d   : > { %v3102_v13 = vmax.f32 %v3070_v14, 0.0  ;;  %v7844_v33 = vpop.f32.mrb[16].mxu0  ;;  %v6041_v54 = vsel %vm3120_vm5, %v5993_v59, 0.0  ;;  %v6040_v45 = vadd.f32 %v6039_v9, %v6038_v38  ;;  %v5995_v62 = vmax.f32 %v5963_v26, 0.0 }
 0x30e   : > { %v3147_v10 = vadd.f32 %v3146_v49, %v3145_v51  ;;  %v3073_v7 = vadd.f32 %v7844_v33, %v11424_v57  ;;  %v2938_v15 = vpop.f32.mrb[17].mxu0  ;;  %v8300_v53 = vpop.f32.mrb[20].mxu1  ;;  %v5994_v41 = vmax.f32 %v5962_v35, 0.0  ;;  %v3150_v60 = vsel %vm3120_vm5, %v3103_v34, 0.0 }
 0x30f   : > { %v3148_v39 = vsel %vm3120_vm5, %v3102_v13, 0.0  ;;  %v3072_v32 = vadd.f32 %v11424_v57, %v2938_v15  ;;  %v5853_v63 = vpop.f32.mrb[21].mxu1  ;;  %v6042_v31 = vadd.f32 %v6041_v54, %v6040_v45  ;;  %v5965_v4 = vadd.f32 %v8300_v53, %v11424_v57 }
 0x310   : > { %v3149_v37 = vadd.f32 %v3148_v39, %v3147_v10  ;;  %v3105_v5 = vmax.f32 %v3073_v7, 0.0  ;;  %v6043_v23 = vsel %vm3120_vm5, %v5994_v41, 0.0  ;;  %v5964_v3 = vadd.f32 %v11424_v57, %v5853_v63 }
 0x311   : > { %v3104_v47 = vmax.f32 %v3072_v32, 0.0  ;;  %v7847_v21 = vpop.f32.mrb[18].mxu0  ;;  %v6045_v48 = vsel %vm3120_vm5, %v5995_v62, 0.0  ;;  %v6044_v42 = vadd.f32 %v6043_v23, %v6042_v31  ;;  %v5997_v56 = vmax.f32 %v5965_v4, 0.0 }
 0x312   : > { %v3151_v46 = vadd.f32 %v3150_v60, %v3149_v37  ;;  %v2948_v36 = vpop.f32.mrb[19].mxu0  ;;  %v8303_v30 = vpop.f32.mrb[22].mxu1  ;;  %v5996_v27 = vmax.f32 %v5964_v3, 0.0  ;;  %v3075_v0 = vadd.f32 %v7847_v21, %v11424_v57  ;;  %v3154_v22 = vsel %vm3120_vm5, %v3105_v5, 0.0 }
 0x313   : > { %v3152_v44 = vsel %vm3120_vm5, %v3104_v47, 0.0  ;;  %v3074_v12 = vadd.f32 %v11424_v57, %v2948_v36  ;;  %v5863_v61 = vpop.f32.mrb[23].mxu1  ;;  %v6046_v11 = vadd.f32 %v6045_v48, %v6044_v42  ;;  %v5967_v2 = vadd.f32 %v8303_v30, %v11424_v57 }
 0x314   : > { %v3153_v40 = vadd.f32 %v3152_v44, %v3151_v46  ;;  %v6047_v50 = vsel %vm3120_vm5, %v5996_v27, 0.0  ;;  %v3107_v6 = vmax.f32 %v3075_v0, 0.0  ;;  %v5966_v1 = vadd.f32 %v11424_v57, %v5863_v61 }
 0x315   : > { %v3106_v43 = vmax.f32 %v3074_v12, 0.0  ;;  %v7850_v20 = vpop.f32.mrb[20].mxu0  ;;  %v6048_v17 = vadd.f32 %v6047_v50, %v6046_v11  ;;  %v5999_v29 = vmax.f32 %v5967_v2, 0.0  ;;  %v6049_v8 = vsel %vm3120_vm5, %v5997_v56, 0.0 }
 0x316   : > { %v3155_v24 = vadd.f32 %v3154_v22, %v3153_v40  ;;  %v3077_v52 = vadd.f32 %v7850_v20, %v11424_v57  ;;  %v2958_v58 = vpop.f32.mrb[21].mxu0  ;;  %v8306_v59 = vpop.f32.mrb[24].mxu1  ;;  %v5998_v18 = vmax.f32 %v5966_v1, 0.0  ;;  %v3158_v16 = vsel %vm3120_vm5, %v3107_v6, 0.0 }
 0x317   : > { %v3156_v55 = vsel %vm3120_vm5, %v3106_v43, 0.0  ;;  %v3076_v25 = vadd.f32 %v11424_v57, %v2958_v58  ;;  %v5873_v28 = vpop.f32.mrb[25].mxu1  ;;  %v6050_v19 = vadd.f32 %v6049_v8, %v6048_v17  ;;  %v5969_v34 = vadd.f32 %v8306_v59, %v11424_v57 }
 0x318   : > { %v3157_v14 = vadd.f32 %v3156_v55, %v3155_v24  ;;  %v3109_v49 = vmax.f32 %v3077_v52, 0.0  ;;  %v6051_v51 = vsel %vm3120_vm5, %v5998_v18, 0.0  ;;  %v5968_v9 = vadd.f32 %v11424_v57, %v5873_v28 }
 0x319   : > { %v3108_v38 = vmax.f32 %v3076_v25, 0.0  ;;  %v7853_v13 = vpop.f32.mrb[22].mxu0  ;;  %v6053_v26 = vsel %vm3120_vm5, %v5999_v29, 0.0  ;;  %v6052_v35 = vadd.f32 %v6051_v51, %v6050_v19  ;;  %v6001_v15 = vmax.f32 %v5969_v34, 0.0 }
 0x31a   : > { %v3159_v33 = vadd.f32 %v3158_v16, %v3157_v14  ;;  %v3079_v54 = vadd.f32 %v7853_v13, %v11424_v57  ;;  %v2968_v45 = vpop.f32.mrb[23].mxu0  ;;  %v8309_v10 = vpop.f32.mrb[26].mxu1  ;;  %v6000_v53 = vmax.f32 %v5968_v9, 0.0  ;;  %v3162_v31 = vsel %vm3120_vm5, %v3109_v49, 0.0 }
 0x31b   : > { %v3160_v7 = vsel %vm3120_vm5, %v3108_v38, 0.0  ;;  %v3078_v39 = vadd.f32 %v11424_v57, %v2968_v45  ;;  %v5883_v62 = vpop.f32.mrb[27].mxu1  ;;  %v6054_v32 = vadd.f32 %v6053_v26, %v6052_v35  ;;  %v5971_v37 = vadd.f32 %v8309_v10, %v11424_v57 }
 0x31c   : > { %v3161_v41 = vadd.f32 %v3160_v7, %v3159_v33  ;;  %v3111_v63 = vmax.f32 %v3079_v54, 0.0  ;;  %v6055_v5 = vsel %vm3120_vm5, %v6000_v53, 0.0  ;;  %v5970_v60 = vadd.f32 %v11424_v57, %v5883_v62 }
 0x31d   : > { %v3110_v4 = vmax.f32 %v3078_v39, 0.0  ;;  %v7856_v23 = vpop.f32.mrb[24].mxu0  ;;  %v6057_v47 = vsel %vm3120_vm5, %v6001_v15, 0.0  ;;  %v6056_v3 = vadd.f32 %v6055_v5, %v6054_v32  ;;  %v6003_v48 = vmax.f32 %v5971_v37, 0.0 }
 0x31e   : > { %v3163_v21 = vadd.f32 %v3162_v31, %v3161_v41  ;;  %v2978_v42 = vpop.f32.mrb[25].mxu0  ;;  %v8312_v46 = vpop.f32.mrb[28].mxu1  ;;  %v6002_v36 = vmax.f32 %v5970_v60, 0.0  ;;  %v3081_v30 = vadd.f32 %v7856_v23, %v11424_v57  ;;  %v3166_v0 = vsel %vm3120_vm5, %v3111_v63, 0.0 }
 0x31f   : > { %v3164_v56 = vsel %vm3120_vm5, %v3110_v4, 0.0  ;;  %v3080_v44 = vadd.f32 %v11424_v57, %v2978_v42  ;;  %v5893_v27 = vpop.f32.mrb[29].mxu1  ;;  %v6058_v61 = vadd.f32 %v6057_v47, %v6056_v3  ;;  %v5973_v22 = vadd.f32 %v8312_v46, %v11424_v57 }
 0x320   : > { %v3165_v12 = vadd.f32 %v3164_v56, %v3163_v21  ;;  %v6059_v40 = vsel %vm3120_vm5, %v6002_v36, 0.0  ;;  %v3113_v11 = vmax.f32 %v3081_v30, 0.0  ;;  %v5972_v50 = vadd.f32 %v11424_v57, %v5893_v27 }
 0x321   : > { %v3112_v2 = vmax.f32 %v3080_v44, 0.0  ;;  %v7859_v6 = vpop.f32.mrb[26].mxu0  ;;  %v6060_v43 = vadd.f32 %v6059_v40, %v6058_v61  ;;  %v6005_v20 = vmax.f32 %v5973_v22, 0.0  ;;  %v6061_v52 = vsel %vm3120_vm5, %v6003_v48, 0.0 }
 0x322   : > { %v3167_v1 = vadd.f32 %v3166_v0, %v3165_v12  ;;  %v3083_v17 = vadd.f32 %v7859_v6, %v11424_v57  ;;  %v2988_v24 = vpop.f32.mrb[27].mxu0  ;;  %v8315_v29 = vpop.f32.mrb[30].mxu1  ;;  %v6004_v59 = vmax.f32 %v5972_v50, 0.0  ;;  %v3170_v18 = vsel %vm3120_vm5, %v3113_v11, 0.0 }
 0x323   : > { %v3168_v58 = vsel %vm3120_vm5, %v3112_v2, 0.0  ;;  %v3082_v8 = vadd.f32 %v11424_v57, %v2988_v24  ;;  %v5903_v55 = vpop.f32.mrb[31].mxu1  ;;  %v6062_v28 = vadd.f32 %v6061_v52, %v6060_v43  ;;  %v5975_v49 = vadd.f32 %v8315_v29, %v11424_v57  ;;  %v6083_v24 = vld [vmem:[%s11570_s5] sm:$0x1] }
 0x324   : > { %v3169_v25 = vadd.f32 %v3168_v58, %v3167_v1  ;;  %v3115_v16 = vmax.f32 %v3083_v17, 0.0  ;;  %v6063_v14 = vsel %vm3120_vm5, %v6004_v59, 0.0  ;;  %v5974_v51 = vadd.f32 %v11424_v57, %v5903_v55 }
 0x325   : > { %v3114_v19 = vmax.f32 %v3082_v8, 0.0  ;;  %v7862_v38 = vpop.f32.mrb[28].mxu0  ;;  %v6065_v34 = vsel %vm3120_vm5, %v6005_v20, 0.0  ;;  %v6064_v9 = vadd.f32 %v6063_v14, %v6062_v28  ;;  %v6007_v54 = vmax.f32 %v5975_v49, 0.0 }
 0x326   : > { %v3171_v13 = vadd.f32 %v3170_v18, %v3169_v25  ;;  %v3085_v26 = vadd.f32 %v7862_v38, %v11424_v57  ;;  %v2998_v35 = vpop.f32.mrb[29].mxu0  ;;  %v6006_v45 = vmax.f32 %v5974_v51, 0.0  ;;  %v3174_v53 = vsel %vm3120_vm5, %v3115_v16, 0.0 }
 0x327   : > { %v3172_v33 = vsel %vm3120_vm5, %v3114_v19, 0.0  ;;  %v3084_v10 = vadd.f32 %v11424_v57, %v2998_v35  ;;  %v6066_v15 = vadd.f32 %v6065_v34, %v6064_v9  ;;  %v6069_v4 = vsel %vm3120_vm5, %v6007_v54, 0.0 }
 0x328   : > { %v3173_v7 = vadd.f32 %v3172_v33, %v3171_v13  ;;  %v6067_v39 = vsel %vm3120_vm5, %v6006_v45, 0.0  ;;  %v3117_v62 = vmax.f32 %v3085_v26, 0.0 }
 0x329   : > { %v3116_v41 = vmax.f32 %v3084_v10, 0.0  ;;  %v7865_v32 = vpop.f32.mrb[30].mxu0  ;;  %v6068_v63 = vadd.f32 %v6067_v39, %v6066_v15 }
 0x32a   : > { %v3175_v37 = vadd.f32 %v3174_v53, %v3173_v7  ;;  %v3087_v31 = vadd.f32 %v7865_v32, %v11424_v57  ;;  %v3008_v5 = vpop.f32.mrb[31].mxu0  ;;  %v3178_v21 = vsel %vm3120_vm5, %v3117_v62, 0.0 }
 0x32b   : > { %v3176_v60 = vsel %vm3120_vm5, %v3116_v41, 0.0  ;;  %v3086_v23 = vadd.f32 %v11424_v57, %v3008_v5  ;;  %v6070_v47 = vadd.f32 %v6069_v4, %v6068_v63 }
 0x32c   : > { %v3177_v3 = vadd.f32 %v3176_v60, %v3175_v37  ;;  %v3119_v48 = vmax.f32 %v3087_v31, 0.0 }
 0x32d   : > { %v3118_v42 = vmax.f32 %v3086_v23, 0.0  ;;  %v6071_v46 = vrot.slane %v6070_v47, 4 }
 0x32e   : > { %v3179_v56 = vadd.f32 %v3178_v21, %v3177_v3  ;;  %v3182_v27 = vsel %vm3120_vm5, %v3119_v48, 0.0 }
 0x32f   : > { %v3180_v36 = vsel %vm3120_vm5, %v3118_v42, 0.0  ;;  %v6072_v30 = vadd.f32 %v6071_v46, %v6070_v47 }
 0x330   : > { %v3181_v44 = vadd.f32 %v3180_v36, %v3179_v56 }
 0x331   : > { %v6073_v0 = vrot.slane %v6072_v30, 2 }
 0x332   : > { %v3183_v12 = vadd.f32 %v3182_v27, %v3181_v44 }
 0x333   : > { %v6074_v61 = vadd.f32 %v6073_v0, %v6072_v30 }
 0x334   : > { %v3184_v22 = vrot.slane %v3183_v12, 4 }
 0x335   : > { %v6075_v40 = vrot.slane %v6074_v61, 1 }
 0x336   : > { %v3185_v57 = vadd.f32 %v3184_v22, %v3183_v12 }
 0x337   : > { %v6076_v50 = vadd.f32 %v6075_v40, %v6074_v61 }
 0x338   : > { %v3186_v11 = vrot.slane %v3185_v57, 2 }
 0x339   : > { %v6077_v1 = vmul.f32 0.00390625, %v6076_v50 }
 0x33a   : > { %v3187_v2 = vadd.f32 %v3186_v11, %v3185_v57 }
 0x33c   : > { %v3188_v6 = vrot.slane %v3187_v2, 1 }
 0x33e   : > { %v3189_v43 = vadd.f32 %v3188_v6, %v3187_v2 }
 0x340   : > { %v3190_v20 = vmul.f32 0.00390625, %v3189_v43 }
 0x342   : > { %v6078_v17 = vadd.f32 %v6077_v1, %v3190_v20 }
 0x344   : > { %8325 = vmatmul.mubr.msk.f32.vlgmr.msra.gmra.mrb[32].mxu0 %vm3120_vm5, %v6078_v17 }
 0x417   : > { %v6153_v29 = vpop.f32.mrb[32].mxu0 }
 0x418   : > { %v6154_v52 = vadd.f32 %v6153_v29, %v6083_v24  ;;  %v8326_v58 = vpop.f32.mrb[33].mxu0 }
 0x41a   : > { %6157 = vst [vmem:[%s247_s12] sm:$0x1] %v6154_v52 }
 0x41b PF: > { %s16_s21 = sadd.s32 1, %s8923_s21  }
 0x41c   : > { %p13_p4 = scmp.ge.s32.totalorder %s16_s21, 4  }
 0x41e   :  { %15 = sbr.rel (!%p13_p4) target bundleno = 1 (0x1), region = 82 }

</bundles_post_ra>
